<compile_context>
chip_gen: v7x
topology: tpu7x:2x2x1
jax: 0.10.0
libtpu: 0.0.40
codegen_flags: <defaults>
</compile_context>

<pallas_src>
import jax
import jax.numpy as jnp
from jax.experimental import pallas as pl
from jax.experimental.pallas import tpu as pltpu

LAYER_DIMS = [784, 512, 128, 10]
NUM_CLASSES = LAYER_DIMS[-1]
D_IN_PAD = 896      # 784 padded to 7*128 -> uniform MXU K passes, aligned DMA
D_OUT_PAD = 128     # class axis padded to full lane width -> lane-dense stores


def _round_up(x, m):
    return (x + m - 1) // m * m


def mlp_kernel(x_ref, w1_ref, b1_ref, w2_ref, b2_ref, w3_ref, b3_ref, out_ref):
    """Fused 3-layer MLP forward with a padded (lane-dense) class axis.

    softmax(relu(relu(x@W1+b1)@W2+b2)@W3+b3) over the first NUM_CLASSES lanes;
    padded lanes are masked out before the softmax. Matmuls accumulate in f32
    on the MXU; all elementwise / softmax math stays f32.
    """
    x = x_ref[...]

    h1 = jnp.dot(x, w1_ref[...], preferred_element_type=jnp.float32)
    h1 = jnp.maximum(h1 + b1_ref[...], 0.0)

    h2 = jnp.dot(h1.astype(w2_ref.dtype), w2_ref[...],
                 preferred_element_type=jnp.float32)
    h2 = jnp.maximum(h2 + b2_ref[...], 0.0)

    logits = jnp.dot(h2.astype(w3_ref.dtype), w3_ref[...],
                     preferred_element_type=jnp.float32)
    logits = logits + b3_ref[...]

    # Mask the zero-padded class lanes so they don't contribute to the softmax.
    lane = jax.lax.broadcasted_iota(jnp.int32, logits.shape, 1)
    logits = jnp.where(lane < NUM_CLASSES, logits, -1e30)

    m = jnp.max(logits, axis=-1, keepdims=True)
    e = jnp.exp(logits - m)                      # padded lanes -> exp(-huge) = 0
    denom = jnp.sum(e, axis=-1, keepdims=True)
    out_ref[...] = e * pl.reciprocal(denom, approx=True)


def mnist_classifier_forward(x_nchw, params, *, batch_tile=128,
                             compute_dtype=jnp.float32):
    """Pallas-backed forward pass of MNISTClassifier (mem_enabled=False path).

    Weights are stored as (in_dim, out_dim), i.e. the transpose of PyTorch's
    nn.Linear layout, so y = x @ W + b matches F.linear(x, W_pt, b).
    """
    w1, b1, w2, b2, w3, b3 = params
    B = x_nchw.shape[0]
    d_in, d_h1, d_h2, d_out = LAYER_DIMS

    # nn.Flatten(): (B, 1, 28, 28) -> (B, 784); zero-pad K to 896 and the batch
    # up to a multiple of the tile (handles ragged batches, extra rows discarded).
    x2d = x_nchw.reshape(B, -1).astype(jnp.float32)
    assert x2d.shape[1] == d_in
    b_pad = _round_up(max(B, 1), batch_tile)
    x2d = jnp.pad(x2d, ((0, b_pad - B), (0, D_IN_PAD - d_in)))
    x2d = x2d.astype(compute_dtype)

    # Pad W1 rows (K) and W3/b3 columns (N) with zeros; cast matmul inputs to
    # compute_dtype (bf16 halves MXU time + weight DMA; accumulation stays f32).
    w1p = jnp.pad(w1.astype(jnp.float32),
                  ((0, D_IN_PAD - d_in), (0, 0))).astype(compute_dtype)
    w2p = w2.astype(compute_dtype)
    w3p = jnp.pad(w3.astype(jnp.float32),
                  ((0, 0), (0, D_OUT_PAD - d_out))).astype(compute_dtype)
    # Biases as (1, N) lane-major rows, kept in f32.
    b1p = b1.astype(jnp.float32).reshape(1, d_h1)
    b2p = b2.astype(jnp.float32).reshape(1, d_h2)
    b3p = jnp.pad(b3.astype(jnp.float32), (0, D_OUT_PAD - d_out)).reshape(1, D_OUT_PAD)

    grid = (b_pad // batch_tile,)

    compiler_kwargs = dict(dimension_semantics=("parallel",))
    if batch_tile >= 512:
        # Large tiles: raise the scoped-VMEM ceiling above the 16/32 MiB default.
        compiler_kwargs["vmem_limit_bytes"] = 64 * 1024 * 1024

    out = pl.pallas_call(
        mlp_kernel,
        out_shape=jax.ShapeDtypeStruct((b_pad, D_OUT_PAD), jnp.float32),
        grid=grid,
        in_specs=[
            pl.BlockSpec((batch_tile, D_IN_PAD), lambda i: (i, 0)),  # x tile
            pl.BlockSpec((D_IN_PAD, d_h1), lambda i: (0, 0)),        # W1 (K-padded)
            pl.BlockSpec((1, d_h1), lambda i: (0, 0)),               # b1
            pl.BlockSpec((d_h1, d_h2), lambda i: (0, 0)),            # W2
            pl.BlockSpec((1, d_h2), lambda i: (0, 0)),               # b2
            pl.BlockSpec((d_h2, D_OUT_PAD), lambda i: (0, 0)),       # W3 (N-padded)
            pl.BlockSpec((1, D_OUT_PAD), lambda i: (0, 0)),          # b3 (N-padded)
        ],
        out_specs=pl.BlockSpec((batch_tile, D_OUT_PAD), lambda i: (i, 0)),
        compiler_params=pltpu.CompilerParams(**compiler_kwargs),
    )(x2d, w1p, b1p, w2p, b2p, w3p, b3p)

    # Strip batch padding and the padded class lanes.
    return out[:B, :d_out]


def init_params(key):
    """Deterministic nn.Linear-style init: U(-1/sqrt(fan_in), 1/sqrt(fan_in)).

    Weights returned in (in_dim, out_dim) layout (transpose of PyTorch).
    """
    params = []
    for in_dim, out_dim in zip(LAYER_DIMS[:-1], LAYER_DIMS[1:]):
        key, kw, kb = jax.random.split(key, 3)
        bound = 1.0 / jnp.sqrt(jnp.float32(in_dim))
        w = jax.random.uniform(kw, (in_dim, out_dim), jnp.float32, -bound, bound)
        b = jax.random.uniform(kb, (out_dim,), jnp.float32, -bound, bound)
        params.extend([w, b])
    return tuple(params)


def reference_forward(x_nchw, params):
    """Pure-JAX reference matching the PyTorch forward semantics."""
    w1, b1, w2, b2, w3, b3 = params
    x = x_nchw.reshape(x_nchw.shape[0], -1).astype(jnp.float32)
    x = jax.nn.relu(x @ w1 + b1)
    x = jax.nn.relu(x @ w2 + b2)
    x = x @ w3 + b3
    return jax.nn.softmax(x, axis=1)


if __name__ == "__main__":
    key = jax.random.PRNGKey(0)
    k_params, k_x = jax.random.split(key)
    params = init_params(k_params)

    # Non-multiple of the batch tile on purpose: exercises ragged-batch padding
    # and yields a grid of 2 tiles (shards across v7x's two TensorCores).
    B = 200
    x = jax.random.normal(k_x, (B, 1, 28, 28), dtype=jnp.float32)

    ref = reference_forward(x, params)

    # f32 matmul-input path (semantics check; approx reciprocal -> modest atol).
    out_f32 = jax.block_until_ready(
        mnist_classifier_forward(x, params, batch_tile=128,
                                 compute_dtype=jnp.float32))
    assert out_f32.shape == (B, NUM_CLASSES)
    assert jnp.allclose(out_f32, ref, atol=5e-3), "f32 mismatch vs reference"
    assert jnp.allclose(jnp.sum(out_f32, axis=1), jnp.ones((B,)), atol=5e-3)

    # bf16 matmul-input path (MXU throughput / weight-DMA win), f32 accumulation.
    out_bf16 = jax.block_until_ready(
        mnist_classifier_forward(x, params, batch_tile=128,
                                 compute_dtype=jnp.bfloat16))
    assert out_bf16.shape == (B, NUM_CLASSES)
    assert jnp.allclose(out_bf16, ref, atol=5e-2), "bf16 mismatch vs reference"

    print("KERNEL_OK")
</pallas_src>

<mosaic_0001>
module attributes {stable_mosaic.version = 11 : i64} {
  func.func @mlp_kernel(%arg0: i32, %arg1: memref<128x896xf32, #tpu.memory_space<vmem>>, %arg2: memref<896x512xf32, #tpu.memory_space<vmem>>, %arg3: memref<1x512xf32, #tpu.memory_space<vmem>>, %arg4: memref<512x128xf32, #tpu.memory_space<vmem>>, %arg5: memref<1x128xf32, #tpu.memory_space<vmem>>, %arg6: memref<128x128xf32, #tpu.memory_space<vmem>>, %arg7: memref<1x128xf32, #tpu.memory_space<vmem>>, %arg8: memref<128x128xf32, #tpu.memory_space<vmem>>) attributes {dimension_semantics = [#tpu.dimension_semantics<parallel>], iteration_bounds = array<i64: 2>, scalar_prefetch = 0 : i64, scratch_operands = 0 : i64, tpu.core_type = #tpu.core_type<tc>, window_params = [{transform_indices = @transform_0, window_bounds = array<i64: 128, 896>}, {pipeline_mode = #tpu.pipeline_mode<synchronous>, transform_indices = @transform_1, window_bounds = array<i64: 896, 512>}, {pipeline_mode = #tpu.pipeline_mode<synchronous>, transform_indices = @transform_2, window_bounds = array<i64: 1, 512>}, {pipeline_mode = #tpu.pipeline_mode<synchronous>, transform_indices = @transform_3, window_bounds = array<i64: 512, 128>}, {pipeline_mode = #tpu.pipeline_mode<synchronous>, transform_indices = @transform_4, window_bounds = array<i64: 1, 128>}, {pipeline_mode = #tpu.pipeline_mode<synchronous>, transform_indices = @transform_5, window_bounds = array<i64: 128, 128>}, {pipeline_mode = #tpu.pipeline_mode<synchronous>, transform_indices = @transform_6, window_bounds = array<i64: 1, 128>}, {transform_indices = @transform_7, window_bounds = array<i64: 128, 128>}]} {
    %c0 = arith.constant 0 : index
    %c0_0 = arith.constant 0 : index
    %0 = vector.load %arg1[%c0, %c0_0] : memref<128x896xf32, #tpu.memory_space<vmem>>, vector<128x896xf32>
    %c0_1 = arith.constant 0 : index
    %c0_2 = arith.constant 0 : index
    %1 = vector.load %arg2[%c0_1, %c0_2] : memref<896x512xf32, #tpu.memory_space<vmem>>, vector<896x512xf32>
    %cst = arith.constant dense<0.000000e+00> : vector<128x512xf32>
    %2 = tpu.matmul %0, %1, %cst {dimension_numbers = #tpu.dot_dimension_numbers<[1], [0], [0], [1], [0, 0, 1, 1], [], []>} : vector<128x896xf32>, vector<896x512xf32>, vector<128x512xf32> -> vector<128x512xf32>
    %c0_3 = arith.constant 0 : index
    %c0_4 = arith.constant 0 : index
    %3 = vector.load %arg3[%c0_3, %c0_4] : memref<1x512xf32, #tpu.memory_space<vmem>>, vector<1x512xf32>
    %4 = vector.broadcast %3 : vector<1x512xf32> to vector<128x512xf32>
    %5 = arith.addf %2, %4 : vector<128x512xf32>
    %cst_5 = arith.constant 0.000000e+00 : f32
    %6 = vector.broadcast %cst_5 : f32 to vector<128x512xf32>
    %7 = arith.maximumf %5, %6 : vector<128x512xf32>
    %c0_6 = arith.constant 0 : index
    %c0_7 = arith.constant 0 : index
    %8 = vector.load %arg4[%c0_6, %c0_7] : memref<512x128xf32, #tpu.memory_space<vmem>>, vector<512x128xf32>
    %cst_8 = arith.constant dense<0.000000e+00> : vector<128x128xf32>
    %9 = tpu.matmul %7, %8, %cst_8 {dimension_numbers = #tpu.dot_dimension_numbers<[1], [0], [0], [1], [0, 0, 1, 1], [], []>} : vector<128x512xf32>, vector<512x128xf32>, vector<128x128xf32> -> vector<128x128xf32>
    %c0_9 = arith.constant 0 : index
    %c0_10 = arith.constant 0 : index
    %10 = vector.load %arg5[%c0_9, %c0_10] : memref<1x128xf32, #tpu.memory_space<vmem>>, vector<1x128xf32>
    %11 = vector.broadcast %10 : vector<1x128xf32> to vector<128x128xf32>
    %12 = arith.addf %9, %11 : vector<128x128xf32>
    %cst_11 = arith.constant 0.000000e+00 : f32
    %13 = vector.broadcast %cst_11 : f32 to vector<128x128xf32>
    %14 = arith.maximumf %12, %13 : vector<128x128xf32>
    %c0_12 = arith.constant 0 : index
    %c0_13 = arith.constant 0 : index
    %15 = vector.load %arg6[%c0_12, %c0_13] : memref<128x128xf32, #tpu.memory_space<vmem>>, vector<128x128xf32>
    %cst_14 = arith.constant dense<0.000000e+00> : vector<128x128xf32>
    %16 = tpu.matmul %14, %15, %cst_14 {dimension_numbers = #tpu.dot_dimension_numbers<[1], [0], [0], [1], [0, 0, 1, 1], [], []>} : vector<128x128xf32>, vector<128x128xf32>, vector<128x128xf32> -> vector<128x128xf32>
    %c0_15 = arith.constant 0 : index
    %c0_16 = arith.constant 0 : index
    %17 = vector.load %arg7[%c0_15, %c0_16] : memref<1x128xf32, #tpu.memory_space<vmem>>, vector<1x128xf32>
    %18 = vector.broadcast %17 : vector<1x128xf32> to vector<128x128xf32>
    %19 = arith.addf %16, %18 : vector<128x128xf32>
    %20 = tpu.iota {dimensions = array<i32: 1>} : vector<128x128xi32>
    %c10_i32 = arith.constant 10 : i32
    %21 = vector.broadcast %c10_i32 : i32 to vector<128x128xi32>
    %22 = arith.cmpi slt, %20, %21 : vector<128x128xi32>
    %cst_17 = arith.constant -1.000000e+30 : f32
    %23 = vector.broadcast %cst_17 : f32 to vector<128x128xf32>
    %24 = arith.select %22, %19, %23 : vector<128x128xi1>, vector<128x128xf32>
    %cst_18 = arith.constant dense<0xFF800000> : vector<128xf32>
    %25 = vector.multi_reduction <maximumf>, %24, %cst_18 [1] : vector<128x128xf32> to vector<128xf32>
    %26 = vector.shape_cast %25 : vector<128xf32> to vector<128x1xf32>
    %27 = vector.broadcast %26 : vector<128x1xf32> to vector<128x128xf32>
    %28 = arith.subf %24, %27 : vector<128x128xf32>
    %29 = math.exp %28 : vector<128x128xf32>
    %cst_19 = arith.constant dense<0.000000e+00> : vector<128xf32>
    %30 = vector.multi_reduction <add>, %29, %cst_19 [1] : vector<128x128xf32> to vector<128xf32>
    %31 = vector.shape_cast %30 : vector<128xf32> to vector<128x1xf32>
    %32 = tpu.reciprocal %31 {approx = true} : vector<128x1xf32> -> vector<128x1xf32>
    %33 = vector.broadcast %32 : vector<128x1xf32> to vector<128x128xf32>
    %34 = arith.mulf %29, %33 : vector<128x128xf32>
    %c0_20 = arith.constant 0 : index
    %c0_21 = arith.constant 0 : index
    %35 = vector.load %arg8[%c0_20, %c0_21] : memref<128x128xf32, #tpu.memory_space<vmem>>, vector<128x128xf32>
    tpu.vector_store %arg8[%c0_20, %c0_21], %34 {strides = array<i32>} : memref<128x128xf32, #tpu.memory_space<vmem>>, vector<128x128xf32>,
    return
  }
  func.func @transform_0(%arg0: i32) -> (i32, i32) {
    %c0_i32 = arith.constant 0 : i32
    %c0_i32_0 = arith.constant 0 : i32
    return %arg0, %c0_i32 : i32, i32
  }
  func.func @transform_1(%arg0: i32) -> (i32, i32) {
    %c0_i32 = arith.constant 0 : i32
    %c0_i32_0 = arith.constant 0 : i32
    %c0_i32_1 = arith.constant 0 : i32
    return %c0_i32, %c0_i32_0 : i32, i32
  }
  func.func @transform_2(%arg0: i32) -> (i32, i32) {
    %c0_i32 = arith.constant 0 : i32
    %c0_i32_0 = arith.constant 0 : i32
    %c0_i32_1 = arith.constant 0 : i32
    return %c0_i32, %c0_i32_0 : i32, i32
  }
  func.func @transform_3(%arg0: i32) -> (i32, i32) {
    %c0_i32 = arith.constant 0 : i32
    %c0_i32_0 = arith.constant 0 : i32
    %c0_i32_1 = arith.constant 0 : i32
    return %c0_i32, %c0_i32_0 : i32, i32
  }
  func.func @transform_4(%arg0: i32) -> (i32, i32) {
    %c0_i32 = arith.constant 0 : i32
    %c0_i32_0 = arith.constant 0 : i32
    %c0_i32_1 = arith.constant 0 : i32
    return %c0_i32, %c0_i32_0 : i32, i32
  }
  func.func @transform_5(%arg0: i32) -> (i32, i32) {
    %c0_i32 = arith.constant 0 : i32
    %c0_i32_0 = arith.constant 0 : i32
    %c0_i32_1 = arith.constant 0 : i32
    return %c0_i32, %c0_i32_0 : i32, i32
  }
  func.func @transform_6(%arg0: i32) -> (i32, i32) {
    %c0_i32 = arith.constant 0 : i32
    %c0_i32_0 = arith.constant 0 : i32
    %c0_i32_1 = arith.constant 0 : i32
    return %c0_i32, %c0_i32_0 : i32, i32
  }
  func.func @transform_7(%arg0: i32) -> (i32, i32) {
    %c0_i32 = arith.constant 0 : i32
    %c0_i32_0 = arith.constant 0 : i32
    return %arg0, %c0_i32 : i32, i32
  }
}

</mosaic_0001>

<bundles_post_ra>
// kernel: tpu_custom_call.1
= control target key start
LH: loop header
LB: loop body
LE: loop exit
PB: predicated region body
PF: predicated region fallthrough
CT: control target
= control target key end

     0   :  { %s5521_s0 = inlined_call_operand.hbm [shape: f32[256,896], index: 0, kind: input, shape index: {}]   ;;  %s5522_s1 = inlined_call_operand.hbm [shape: f32[896,512], index: 1, kind: input, shape index: {}]   ;;  %s5523_s2 = inlined_call_operand.hbm [shape: f32[1,512], index: 2, kind: input, shape index: {}]   ;;  %s5524_s3 = inlined_call_operand.hbm [shape: f32[512,128], index: 3, kind: input, shape index: {}]   ;;  %s5525_s4 = inlined_call_operand.hbm [shape: f32[1,128], index: 4, kind: input, shape index: {}]   ;;  %s5526_s5 = inlined_call_operand.hbm [shape: f32[128,128], index: 5, kind: input, shape index: {}]   ;;  %s5527_s6 = inlined_call_operand.hbm [shape: f32[1,128], index: 6, kind: input, shape index: {}]   ;;  %s5528_s7 = inlined_call_operand.hbm [shape: f32[256,128], index: 7, kind: output, shape index: {}]  }
   0x1   :  { %5532 = sst [smem:[#allocation20_spill]] %s5522_s1 }
   0x2   :  { %12 = vsyncpa [#allocation3], 0 }
   0x3   :  { %14 = vsyncpa [#allocation3 + $0x1], 0 }
   0x4   :  { %15 = vsyncpa [#allocation6], 0 }
   0x5   :  { %16 = vsyncpa [#allocation9], 0 }
   0x6   :  { %17 = vsyncpa [#allocation12], 0 }
   0x7   :  { %18 = vsyncpa [#allocation4], 0 }
   0x8   :  { %20 = vsyncpa [#allocation4 + $0x1], 0  ;;  %s4793_s24 = smov 0   ;;  %s4795_s25 = smov 0  }
   0x9   :  { %s4797_s26 = smov 0   ;;  %s4799_s27 = smov 0  }
   0xa LB: > { %s4736_s28 = smov [#allocation5]   ;;  %s4814_s30 = sadd.s32 4294967295, %s4734_s27   ;;  %s4734_s27 = sphi %s4799_s27, %s5555_s27   ;;  %s4730_s26 = sphi %s4797_s26, %s5554_s26   ;;  %s4726_s25 = sphi %s4795_s25, %s5553_s25   ;;  %s4722_s24 = sphi %s4793_s24, %s5552_s24  }
   0xb   : > { %s221_s29 = sshll.u32 %s4736_s28, 4  ;;  %p3184_p0 = scmp.ge.s32.totalorder %s4734_s27, 1  ;;  %s4819_s29 = int_to_ptr.vmem [resolvable:$true] %s221_s29 }
   0xc   : > { %p5529_p1 = scmp.eq.s32.totalorder %s4814_s30, 0  ;;  %p209_p2 = scmp.lt.s32.totalorder %s4734_s27, 3 }
   0xd   : > { %s4737_s9 = smov [#allocation8]   ;;  %s4738_s12 = smov [#allocation11]  }
   0xe   : > { %p4821_p3 = pnand %p3184_p0, %p209_p2  ;;  %s245_s10 = sshll.u32 %s4737_s9, 4  ;;  %s4834_s10 = int_to_ptr.vmem [resolvable:$true] %s245_s10 }
   0xf   : > { %s4836_s13 = sshll.u32 %s4738_s12, 4  ;;  %s5535_s1 = sld [smem:[#allocation20_spill]]  ;;  %s270_s13 = int_to_ptr.vmem [resolvable:$true] %s4836_s13 }
  0x10   : > { %s5533_s8 = scalar_select %p4821_p3, 1, 0 }
  0x11   : > { %p4306_p5 = pneg %p4821_p3 }
  0x13   : > { %p4830_p6 = pnand %p4306_p5, %p5529_p1 }
  0x15   : > { %s4458_s16 = scalar_lea.hbm %s5535_s1, 57344  ;;  %p4846_p8 = pneg %p4830_p6 }
  0x16   : > { %p4459_p7 = scmp.ne.s32.totalorder %s5535_s1, %s4458_s16  ;;  %p4465_p11 = scmp.lt.u32.totalorder %s4458_s16, %s5535_s1 }
  0x18   : > { %p4461_p9 = pnand %p4846_p8, %p4459_p7 }
  0x1a   : > { %p4462_p10 = pneg %p4461_p9 }
  0x1c   : > { %p4467_p12 = pnand %p4465_p11, %p4462_p10 }
  0x1e   : > { %4470 = shalt.err (!%p4467_p12)
}
  0x1f   : > { %s4471_s22 = scalar_lea.vmem %s4819_s29, 57344  ;;  %p4479_p5 = scmp.lt.s32.totalorder %s4819_s29, %s4819_s29 }
  0x20   : > { %p4472_p13 = scmp.ne.s32.totalorder %s4819_s29, %s4471_s22  ;;  %p4480_p4 = scmp.lt.s32.totalorder %s4471_s22, %s4471_s22 }
  0x22   : > { %p4474_p0 = pnand %p4472_p13, %p4846_p8  ;;  %p4481_p7 = por %p4480_p4, %p4479_p5 }
  0x24   : > { %p4475_p2 = pneg %p4474_p0 }
  0x26   : > { %p4482_p9 = pnand %p4481_p7, %p4475_p2 }
  0x28   : > { %4485 = shalt.err (!%p4482_p9)
}
  0x29   : > { %s4739_s23 = smov 512   ;;  %s4740_s28 = smov 32  }
  0x2a   : > { %4309 = dma.hbm_to_vmem [thread:$0]  (!%p4830_p6), %s5535_s1, 57344, %s4819_s29, [#allocation6], %s4739_s23, %s4739_s23, %s4740_s28  }
  0x2b   : > { %s4486_s16 = scalar_lea.hbm %s5524_s3, 8192 }
  0x2c   : > { %p4487_p4 = scmp.ne.s32.totalorder %s5524_s3, %s4486_s16  ;;  %p4493_p12 = scmp.lt.u32.totalorder %s4486_s16, %s5524_s3 }
  0x2e   : > { %p4489_p10 = pnand %p4487_p4, %p4846_p8 }
  0x30   : > { %p4490_p11 = pneg %p4489_p10 }
  0x32   : > { %p4495_p13 = pnand %p4493_p12, %p4490_p11 }
  0x34   : > { %4498 = shalt.err (!%p4495_p13)
}
  0x35   : > { %s4499_s29 = scalar_lea.vmem %s4834_s10, 8192  ;;  %p4507_p7 = scmp.lt.s32.totalorder %s4834_s10, %s4834_s10 }
  0x36   : > { %p4500_p0 = scmp.ne.s32.totalorder %s4834_s10, %s4499_s29  ;;  %p4508_p9 = scmp.lt.s32.totalorder %s4499_s29, %s4499_s29 }
  0x38   : > { %p4502_p2 = pnand %p4500_p0, %p4846_p8  ;;  %p4509_p4 = por %p4508_p9, %p4507_p7 }
  0x3a   : > { %p4503_p5 = pneg %p4502_p2 }
  0x3c   : > { %p4510_p10 = pnand %p4509_p4, %p4503_p5 }
  0x3e   : > { %4513 = shalt.err (!%p4510_p10)
}
  0x3f   : > { %s4741_s22 = smov 128   ;;  %s4742_s23 = smov 8  }
  0x40   : > { %4315 = dma.hbm_to_vmem [thread:$0]  (!%p4830_p6), %s5524_s3, 8192, %s4834_s10, [#allocation9], %s4741_s22, %s4741_s22, %s4742_s23  }
  0x41   : > { %s4514_s15 = scalar_lea.hbm %s5526_s5, 2048 }
  0x42   : > { %p4515_p11 = scmp.ne.s32.totalorder %s5526_s5, %s4514_s15  ;;  %p4521_p0 = scmp.lt.u32.totalorder %s4514_s15, %s5526_s5 }
  0x44   : > { %p4517_p12 = pnand %p4515_p11, %p4846_p8 }
  0x46   : > { %p4518_p13 = pneg %p4517_p12 }
  0x48   : > { %p4523_p2 = pnand %p4521_p0, %p4518_p13 }
  0x4a   : > { %4526 = shalt.err (!%p4523_p2)
}
  0x4b   : > { %s4527_s21 = scalar_lea.vmem %s270_s13, 2048  ;;  %p4535_p4 = scmp.lt.s32.totalorder %s270_s13, %s270_s13 }
  0x4c   : > { %p4528_p5 = scmp.ne.s32.totalorder %s270_s13, %s4527_s21  ;;  %p4536_p10 = scmp.lt.s32.totalorder %s4527_s21, %s4527_s21 }
  0x4e   : > { %p4530_p7 = pnand %p4528_p5, %p4846_p8  ;;  %p4537_p1 = por %p4536_p10, %p4535_p4 }
  0x50   : > { %p4531_p9 = pneg %p4530_p7 }
  0x52   : > { %p4538_p3 = pnand %p4537_p1, %p4531_p9 }
  0x54   : > { %4541 = shalt.err (!%p4538_p3)
}
  0x55   : > { %4321 = dma.hbm_to_vmem [thread:$0]  (!%p4830_p6), %s5526_s5, 2048, %s270_s13, [#allocation12], %s4741_s22, %s4741_s22, %s4742_s23  }
  0x56   : > { %s4743_s28 = smov [#allocation7]   ;;  %s4744_s12 = smov [#allocation10]  }
  0x57   : > { %s235_s9 = sshll.u32 %s4743_s28, 4  ;;  %s259_s14 = sshll.u32 %s4744_s12, 4  ;;  %s236_s9 = int_to_ptr.vmem [resolvable:$true] %s235_s9  ;;  %s260_s14 = int_to_ptr.vmem [resolvable:$true] %s259_s14 }
  0x58   : > { %s4542_s17 = scalar_lea.hbm %s5523_s2, 64 }
  0x59   : > { %p4543_p1 = scmp.ne.s32.totalorder %s5523_s2, %s4542_s17  ;;  %p4549_p12 = scmp.lt.u32.totalorder %s4542_s17, %s5523_s2 }
  0x5b   : > { %p4545_p3 = pnand %p4543_p1, %p4846_p8 }
  0x5d   : > { %p4546_p11 = pneg %p4545_p3 }
  0x5f   : > { %p4551_p13 = pnand %p4549_p12, %p4546_p11 }
  0x61   : > { %4554 = shalt.err (!%p4551_p13)
}
  0x62   : > { %s4555_s13 = scalar_lea.vmem %s236_s9, 64  ;;  %p4563_p7 = scmp.lt.s32.totalorder %s236_s9, %s236_s9 }
  0x63   : > { %p4556_p0 = scmp.ne.s32.totalorder %s236_s9, %s4555_s13  ;;  %p4564_p9 = scmp.lt.s32.totalorder %s4555_s13, %s4555_s13 }
  0x65   : > { %p4558_p2 = pnand %p4556_p0, %p4846_p8  ;;  %p4565_p4 = por %p4564_p9, %p4563_p7 }
  0x67   : > { %p4559_p5 = pneg %p4558_p2 }
  0x69   : > { %p4566_p10 = pnand %p4565_p4, %p4559_p5 }
  0x6b   : > { %4569 = shalt.err (!%p4566_p10)
}
  0x6c   : > { %4312 = dma.hbm_to_vmem [thread:$0]  (!%p4830_p6), %s5523_s2, 64, %s236_s9, [#allocation6]  }
  0x6d   : > { %s4570_s12 = scalar_lea.hbm %s5525_s4, 16 }
  0x6e   : > { %p4571_p1 = scmp.ne.s32.totalorder %s5525_s4, %s4570_s12  ;;  %p4577_p12 = scmp.lt.u32.totalorder %s4570_s12, %s5525_s4 }
  0x70   : > { %p4573_p3 = pnand %p4571_p1, %p4846_p8 }
  0x72   : > { %p4574_p11 = pneg %p4573_p3 }
  0x74   : > { %p4579_p13 = pnand %p4577_p12, %p4574_p11 }
  0x76   : > { %4582 = shalt.err (!%p4579_p13)
}
  0x77   : > { %s4583_s20 = scalar_lea.vmem %s260_s14, 16  ;;  %s4590_s9 = scalar_lea.vmem %s260_s14, 32 }
  0x78   : > { %p4584_p0 = scmp.ne.s32.totalorder %s260_s14, %s4583_s20  ;;  %p4591_p7 = scmp.lt.s32.totalorder %s260_s14, %s260_s14 }
  0x79   : > { %p4592_p9 = scmp.lt.s32.totalorder %s4590_s9, %s4583_s20 }
  0x7a   : > { %p4586_p2 = pnand %p4584_p0, %p4846_p8 }
  0x7b   : > { %p4593_p4 = por %p4592_p9, %p4591_p7 }
  0x7c   : > { %p4587_p5 = pneg %p4586_p2 }
  0x7e   : > { %p4594_p10 = pnand %p4593_p4, %p4587_p5 }
  0x80   : > { %4597 = shalt.err (!%p4594_p10)
}
  0x81   : > { %4318 = dma.hbm_to_vmem [thread:$0]  (!%p4830_p6), %s5525_s4, 16, %s260_s14, [#allocation9]  }
  0x82   : > { %s4745_s13 = smov [#allocation13]   ;;  %s4598_s28 = scalar_lea.hbm %s5527_s6, 16 }
  0x83   : > { %s283_s22 = sshll.u32 %s4745_s13, 4  ;;  %p4599_p1 = scmp.ne.s32.totalorder %s5527_s6, %s4598_s28  ;;  %s284_s22 = int_to_ptr.vmem [resolvable:$true] %s283_s22 }
  0x84   : > { %p4605_p12 = scmp.lt.u32.totalorder %s4598_s28, %s5527_s6 }
  0x85   : > { %p4601_p3 = pnand %p4599_p1, %p4846_p8 }
  0x87   : > { %p4602_p11 = pneg %p4601_p3 }
  0x89   : > { %p4607_p13 = pnand %p4605_p12, %p4602_p11 }
  0x8b   : > { %4610 = shalt.err (!%p4607_p13)
}
  0x8c   : > { %s4611_s14 = scalar_lea.vmem %s284_s22, 16  ;;  %s4618_s18 = scalar_lea.vmem %s284_s22, 32 }
  0x8d   : > { %p4612_p0 = scmp.ne.s32.totalorder %s284_s22, %s4611_s14  ;;  %p4619_p7 = scmp.lt.s32.totalorder %s284_s22, %s284_s22 }
  0x8e   : > { %p4620_p9 = scmp.lt.s32.totalorder %s4618_s18, %s4611_s14 }
  0x8f   : > { %p4614_p2 = pnand %p4612_p0, %p4846_p8 }
  0x90   : > { %p4621_p4 = por %p4620_p9, %p4619_p7 }
  0x91   : > { %p4615_p5 = pneg %p4614_p2 }
  0x93   : > { %p4622_p10 = pnand %p4621_p4, %p4615_p5 }
  0x95   : > { %4625 = shalt.err (!%p4622_p10)
}
  0x96   : > { %4324 = dma.hbm_to_vmem [thread:$0]  (!%p4830_p6), %s5527_s6, 16, %s284_s22, [#allocation12]  }
  0x97   : > { %s3183_s19 = sadd.s32 4294967294, %s4734_s27   ;;  %s4965_s11 = sadd.s32 1, %s4734_s27  }
  0x98   : > { %s30_s21 = ssub.s32 %s4734_s27, %s4965_s11  ;;  %s33_s10 = sadd.s32 1, %s4730_s26 }
  0x99   : > { %p31_p8 = scmp.eq.s32.totalorder %s30_s21, 0  ;;  %p40_p1 = scmp.ne.s32.totalorder %s4730_s26, %s4726_s25 }
  0x9a   : > { %p41_p3 = scmp.eq.s32.totalorder %s4734_s27, 0  ;;  %p46_p11 = scmp.ne.s32.totalorder %s4726_s25, %s4722_s24 }
  0x9b   : > { %s4976_s13 = scalar_select %p31_p8, %s4730_s26, %s33_s10  }
  0x9c   : > { %p42_p12 = por %p41_p3, %p40_p1  ;;  %p5537_p13 = scmp.eq.s32.totalorder %s4814_s30, 0 }
  0x9d   : > { %p196_p6 = scmp.eq.s32.totalorder %s4814_s30, 1  ;;  %p202_p2 = scmp.eq.s32.totalorder %s3183_s19, 1 }
  0x9e   : > { %p4980_p0 = por %p5537_p13, %p46_p11  ;;  %p4339_p5 = scmp.lt.s32.totalorder %s4734_s27, 2 }
  0x9f   : > { %s294_s22 = sand.u32 1, %s4730_s26   ;;  %p4987_p7 = por %p196_p6, %p40_p1 }
  0xa0   : > { %p4991_p9 = por %p202_p2, %p46_p11  ;;  %s4275_s12 = smul.u32 896, %s294_s22 }
  0xa1   : > { %s5539_s29 = scalar_select %p4987_p7, 1, 0 }
  0xa2   : > { %s5540_s28 = scalar_select %p4991_p9, 1, 0 }
  0xa3   : > { %s4276_s15 = smul.u32 14336, %s4734_s27  ;;  %p4996_p4 = pnand %p4339_p5, %p42_p12 }
  0xa4   : > { %s298_s20 = scalar_lea.vmem [#allocation2], %s4275_s12  ;;  %s5007_s19 = scalar_lea.sflag [#allocation3], %s294_s22 }
  0xa5   : > { %s5003_s18 = scalar_lea.hbm %s5521_s0, %s4276_s15  ;;  %s306_s9 = sshll.u32 %s298_s20, 4  ;;  %s5005_s9 = int_to_ptr.vmem [resolvable:$true] %s306_s9 }
  0xa6   : > { %s4626_s21 = scalar_lea.hbm %s5003_s18, 14336  ;;  %p4628_p8 = pneg %p4996_p4 }
  0xa7   : > { %p4627_p10 = scmp.ne.s32.totalorder %s5003_s18, %s4626_s21  ;;  %s4631_s17 = scalar_lea.hbm %s5521_s0, 28672 }
  0xa8   : > { %p4632_p11 = scmp.lt.u32.totalorder %s5003_s18, %s5521_s0  ;;  %p4633_p12 = scmp.lt.u32.totalorder %s4631_s17, %s4626_s21 }
  0xa9   : > { %p4629_p1 = pnand %p4628_p8, %p4627_p10  ;;  %p4635_p6 = scmp.lt.u32.totalorder %s4626_s21, %s5003_s18 }
  0xaa   : > { %p4634_p13 = por %p4633_p12, %p4632_p11 }
  0xab   : > { %p4630_p3 = pneg %p4629_p1 }
  0xac   : > { %p4636_p2 = por %p4635_p6, %p4634_p13 }
  0xae   : > { %p4637_p5 = pnand %p4636_p2, %p4630_p3 }
  0xb0   : > { %4640 = shalt.err (!%p4637_p5)
}
  0xb1   : > { %s4641_s22 = scalar_lea.vmem %s5005_s9, 14336  ;;  %s4746_s12 = smov [#allocation2]  }
  0xb2   : > { %p4642_p10 = scmp.ne.s32.totalorder %s5005_s9, %s4641_s22  ;;  %s4646_s20 = sshll.u32 %s4746_s12, 4  ;;  %s4647_s20 = int_to_ptr.vmem [resolvable:$false] %s4646_s20 }
  0xb3   : > { %s4648_s1 = scalar_lea.vmem %s4647_s20, 28672  ;;  %p4649_p7 = scmp.lt.s32.totalorder %s5005_s9, %s4647_s20 }
  0xb4   : > { %p4644_p1 = pnand %p4642_p10, %p4628_p8  ;;  %p4650_p11 = scmp.lt.s32.totalorder %s4648_s1, %s4641_s22 }
  0xb6   : > { %p4645_p9 = pneg %p4644_p1  ;;  %p4651_p12 = por %p4650_p11, %p4649_p7 }
  0xb8   : > { %p4652_p13 = pnand %p4651_p12, %p4645_p9 }
  0xba   : > { %4655 = shalt.err (!%p4652_p13)
}
  0xbb   : > { %s4747_s21 = smov 896   ;;  %s4748_s10 = smov 56  }
  0xbc   : > { %4328 = dma.hbm_to_vmem [thread:$0]  (!%p4996_p4), %s5003_s18, 14336, %s5005_s9, %s5007_s19, %s4747_s21, %s4747_s21, %s4748_s10  }
  0xbd   : > { %p5542_p8 = scmp.ne.s32.totalorder %s5533_s8, 0 }
  0xbe   : > { %s5038_s15 = sand.u32 (!%p5542_p8), 1, %s4726_s25  }
  0xbf   : > { %318 = sbr.rel (%p5542_p8) target bundleno = 1511 (0x5e7), region = 48  ;;  %s321_s14 = scalar_lea.sflag (!%p5542_p8), [#allocation3], %s5038_s15 }
  0xc0   : > { %s4277_s17 = smul.u32 (!%p5542_p8), 896, %s5038_s15 }
  0xc2   : > { %s5042_s22 = scalar_lea.vmem (!%p5542_p8), [#allocation2], %s4277_s17 }
  0xc6   : > { %4701 = dma.done.wait (%p4980_p0), %s321_s14, 14336  }
  0xc7   : > { %4703 = vsyncadd (%p4980_p0), %s321_s14, 4294952960  ;;  %p5543_p7 = scmp.eq.s32.totalorder %s4814_s30, 0 }
  0xc9   : > { %4705 = dma.done.wait (%p5543_p7), [#allocation6], 57408   ;;  %p5544_p9 = pmov %p5543_p7 }
  0xca   : > { %p5545_p4 = pmov %p5543_p7 }
  0xcb   : > { %4707 = vsyncadd (%p5544_p9), [#allocation6], 4294909888 }
  0xcc   : > { %4709 = dma.done.wait (%p5545_p4), [#allocation9], 8208   ;;  %p5546_p3 = pmov %p5545_p4 }
  0xce   : > { %4711 = vsyncadd (%p5546_p3), [#allocation9], 4294959088  ;;  %p5547_p6 = pmov %p5546_p3 }
  0xcf   : > { %p5548_p2 = pmov %p5546_p3 }
  0xd0   : > { %4713 = dma.done.wait (%p5547_p6), [#allocation12], 2064  }
  0xd1   : > { %4715 = vsyncadd (%p5548_p2), [#allocation12], 4294965232  ;;  %v494_v0 = vld [vmem:[#allocation5 + $0x8] sm:$0xff]  ;;  %v496_v2 = vld [vmem:[#allocation5 + $0x18] sm:$0xff]  ;;  %s3202_s8 = sshll.u32 %s5038_s15, 7  ;;  %s3210_s16 = sshll.u32 %s4814_s30, 11 }
  0xd2   : > { %v498_v1 = vld [vmem:[#allocation5 + $0x28] sm:$0xff]  ;;  %v500_v4 = vld [vmem:[#allocation5 + $0x38] sm:$0xff]  ;;  %v493_v5 = vld [vmem:[#allocation5] sm:$0xff]  ;;  %s5437_s23 = scalar_lea.vmem [#allocation14], %s3202_s8  ;;  %s5472_s12 = scalar_lea.hbm %s5528_s7, %s3210_s16 }
  0xd3   : > { %v3459_v3 = vpack.c.bf16 %v498_v1, %v494_v0  ;;  %v497_v6 = vld [vmem:[#allocation5 + $0x20] sm:$0xff]  ;;  %v3683_v7 = vpack.c.bf16 %v500_v4, %v496_v2  ;;  %v495_v9 = vld [vmem:[#allocation5 + $0x10] sm:$0xff]  ;;  %v502_v11 = vld [vmem:[#allocation5 + $0x48] sm:$0xff]  ;;  %s3053_s18 = sshll.u32 %s5437_s23, 4  ;;  %s3040_s30 = scalar_lea.sflag [#allocation4], %s5038_s15  ;;  %s5474_s18 = int_to_ptr.vmem [resolvable:$true] %s3053_s18 }
  0xd4   : > { %v3461_v8 = vpack.c.bf16 %v497_v6, %v493_v5  ;;  %v499_v10 = vld [vmem:[#allocation5 + $0x30] sm:$0xff]  ;;  %v506_v13 = vld [vmem:[#allocation5 + $0x68] sm:$0xff]  ;;  %v504_v14 = vld [vmem:[#allocation5 + $0x58] sm:$0xff]  ;;  %s4656_s20 = scalar_lea.vmem %s5474_s18, 2048  ;;  %p5549_p5 = scmp.ne.s32.totalorder %s5539_s29, 0 }
  0xd5   : > { %3460 = vmatprep.subr.bf16.mxu0 %v3459_v3  ;;  %v3685_v12 = vpack.c.bf16 %v499_v10, %v495_v9  ;;  %v508_v15 = vld [vmem:[#allocation5 + $0x78] sm:$0xff]  ;;  %3684 = vmatprep.subr.bf16.mxu1 %v3683_v7  ;;  %v3463_v16 = vpack.c.bf16 %v506_v13, %v502_v11  ;;  %v501_v18 = vld [vmem:[#allocation5 + $0x40] sm:$0xff]  ;;  %v503_v20 = vld [vmem:[#allocation5 + $0x50] sm:$0xff]  ;;  %p4657_p0 = scmp.ne.s32.totalorder %s5474_s18, %s4656_s20  ;;  %s4750_s1 = smov [#allocation14]  }
  0xd6   : > { %3462 = vmatpush1.bf16.msra.mxu0 %v3461_v8  ;;  %v3687_v17 = vpack.c.bf16 %v508_v15, %v504_v14  ;;  %v505_v19 = vld [vmem:[#allocation5 + $0x60] sm:$0xff]  ;;  %v507_v22 = vld [vmem:[#allocation5 + $0x70] sm:$0xff]  ;;  %v510_v23 = vld [vmem:[#allocation5 + $0x88] sm:$0xff]  ;;  %s4660_s21 = sshll.u32 %s4750_s1, 4  ;;  %s4661_s21 = int_to_ptr.vmem [resolvable:$false] %s4660_s21 }
  0xd7   : > { %3686 = vmatpush1.bf16.msra.mxu1 %v3685_v12  ;;  %v3465_v21 = vpack.c.bf16 %v505_v19, %v501_v18  ;;  %v514_v24 = vld [vmem:[#allocation5 + $0xa8] sm:$0xff]  ;;  %3464 = vmatprep.subr.bf16.mxu0 %v3463_v16  ;;  %v3689_v25 = vpack.c.bf16 %v507_v22, %v503_v20  ;;  %v512_v27 = vld [vmem:[#allocation5 + $0x98] sm:$0xff]  ;;  %v509_v29 = vld [vmem:[#allocation5 + $0x80] sm:$0xff]  ;;  %p4658_p10 = pnand %p4657_p0, %p5549_p5  ;;  %s4662_s10 = scalar_lea.vmem %s4661_s21, 4096 }
  0xd8   : > { %3688 = vmatprep.subr.bf16.mxu1 %v3687_v17  ;;  %v3467_v26 = vpack.c.bf16 %v514_v24, %v510_v23  ;;  %v516_v28 = vld [vmem:[#allocation5 + $0xb8] sm:$0xff]  ;;  %v513_v31 = vld [vmem:[#allocation5 + $0xa0] sm:$0xff]  ;;  %v511_v32 = vld [vmem:[#allocation5 + $0x90] sm:$0xff]  ;;  %p4663_p11 = scmp.lt.s32.totalorder %s5474_s18, %s4661_s21  ;;  %p4664_p12 = scmp.lt.s32.totalorder %s4662_s10, %s4656_s20 }
  0xd9   : > { %v3691_v30 = vpack.c.bf16 %v516_v28, %v512_v27  ;;  %v515_v33 = vld [vmem:[#allocation5 + $0xb0] sm:$0xff]  ;;  %v3469_v34 = vpack.c.bf16 %v513_v31, %v509_v29  ;;  %v518_v35 = vld [vmem:[#allocation5 + $0xc8] sm:$0xff]  ;;  %v520_v37 = vld [vmem:[#allocation5 + $0xd8] sm:$0xff]  ;;  %p4659_p1 = pneg %p4658_p10 }
  0xda   : > { %3466 = vmatpush1.bf16.msra.mxu0 %v3465_v21  ;;  %v522_v36 = vld [vmem:[#allocation5 + $0xe8] sm:$0xff]  ;;  %v3693_v38 = vpack.c.bf16 %v515_v33, %v511_v32  ;;  %v524_v40 = vld [vmem:[#allocation5 + $0xf8] sm:$0xff]  ;;  %v517_v41 = vld [vmem:[#allocation5 + $0xc0] sm:$0xff]  ;;  %p4665_p13 = por %p4664_p12, %p4663_p11 }
  0xdb   : > { %3690 = vmatpush1.bf16.msra.mxu1 %v3689_v25  ;;  %3468 = vmatprep.subr.bf16.mxu0 %v3467_v26  ;;  %v3471_v39 = vpack.c.bf16 %v522_v36, %v518_v35  ;;  %v521_v42 = vld [vmem:[#allocation5 + $0xe0] sm:$0xff]  ;;  %v3695_v43 = vpack.c.bf16 %v524_v40, %v520_v37  ;;  %v519_v44 = vld [vmem:[#allocation5 + $0xd0] sm:$0xff]  ;;  %v526_v46 = vld [vmem:[#allocation5 + $0x108] sm:$0xff] }
  0xdc   : > { %3692 = vmatprep.subr.bf16.mxu1 %v3691_v30  ;;  %v523_v45 = vld [vmem:[#allocation5 + $0xf0] sm:$0xff]  ;;  %v530_v47 = vld [vmem:[#allocation5 + $0x128] sm:$0xff]  ;;  %v528_v48 = vld [vmem:[#allocation5 + $0x118] sm:$0xff]  ;;  %v3473_v50 = vpack.c.bf16 %v521_v42, %v517_v41  ;;  %p4666_p8 = pnand %p4665_p13, %p4659_p1 }
  0xdd   : > { %v532_v49 = vld [vmem:[#allocation5 + $0x138] sm:$0xff]  ;;  %v3697_v51 = vpack.c.bf16 %v523_v45, %v519_v44  ;;  %v3475_v52 = vpack.c.bf16 %v530_v47, %v526_v46  ;;  %v525_v53 = vld [vmem:[#allocation5 + $0x100] sm:$0xff]  ;;  %v527_v55 = vld [vmem:[#allocation5 + $0x110] sm:$0xff] }
  0xde   : > { %3470 = vmatpush1.bf16.msra.mxu0 %v3469_v34  ;;  %v529_v54 = vld [vmem:[#allocation5 + $0x120] sm:$0xff]  ;;  %v3699_v56 = vpack.c.bf16 %v532_v49, %v528_v48  ;;  %v531_v57 = vld [vmem:[#allocation5 + $0x130] sm:$0xff]  ;;  %v534_v58 = vld [vmem:[#allocation5 + $0x148] sm:$0xff] }
  0xdf   : > { %3694 = vmatpush1.bf16.msra.mxu1 %v3693_v38  ;;  %3472 = vmatprep.subr.bf16.mxu0 %v3471_v39  ;;  %v538_v59 = vld [vmem:[#allocation5 + $0x168] sm:$0xff]  ;;  %v536_v60 = vld [vmem:[#allocation5 + $0x158] sm:$0xff]  ;;  %v3477_v62 = vpack.c.bf16 %v529_v54, %v525_v53  ;;  %v3701_v63 = vpack.c.bf16 %v531_v57, %v527_v55  ;;  %v533_v1 = vld [vmem:[#allocation5 + $0x140] sm:$0xff] }
  0xe0   : > { %3696 = vmatprep.subr.bf16.mxu1 %v3695_v43  ;;  %v540_v61 = vld [vmem:[#allocation5 + $0x178] sm:$0xff]  ;;  %v3479_v0 = vpack.c.bf16 %v538_v59, %v534_v58  ;;  %v537_v2 = vld [vmem:[#allocation5 + $0x160] sm:$0xff]  ;;  %v535_v3 = vld [vmem:[#allocation5 + $0x150] sm:$0xff] }
  0xe1   : > { %v3703_v4 = vpack.c.bf16 %v540_v61, %v536_v60  ;;  %v539_v5 = vld [vmem:[#allocation5 + $0x170] sm:$0xff]  ;;  %v542_v6 = vld [vmem:[#allocation5 + $0x188] sm:$0xff]  ;;  %v544_v8 = vld [vmem:[#allocation5 + $0x198] sm:$0xff]  ;;  %v3481_v10 = vpack.c.bf16 %v537_v2, %v533_v1 }
  0xe2   : > { %3474 = vmatpush1.bf16.msra.mxu0 %v3473_v50  ;;  %v546_v7 = vld [vmem:[#allocation5 + $0x1a8] sm:$0xff]  ;;  %v548_v9 = vld [vmem:[#allocation5 + $0x1b8] sm:$0xff]  ;;  %v3705_v11 = vpack.c.bf16 %v539_v5, %v535_v3  ;;  %v541_v13 = vld [vmem:[#allocation5 + $0x180] sm:$0xff] }
  0xe3   : > { %3698 = vmatpush1.bf16.msra.mxu1 %v3697_v51  ;;  %3476 = vmatprep.subr.bf16.mxu0 %v3475_v52  ;;  %v3483_v12 = vpack.c.bf16 %v546_v7, %v542_v6  ;;  %v545_v14 = vld [vmem:[#allocation5 + $0x1a0] sm:$0xff]  ;;  %v543_v15 = vld [vmem:[#allocation5 + $0x190] sm:$0xff]  ;;  %v3707_v16 = vpack.c.bf16 %v548_v9, %v544_v8  ;;  %v550_v18 = vld [vmem:[#allocation5 + $0x1c8] sm:$0xff] }
  0xe4   : > { %3700 = vmatprep.subr.bf16.mxu1 %v3699_v56  ;;  %v547_v17 = vld [vmem:[#allocation5 + $0x1b0] sm:$0xff]  ;;  %v554_v19 = vld [vmem:[#allocation5 + $0x1e8] sm:$0xff]  ;;  %v552_v20 = vld [vmem:[#allocation5 + $0x1d8] sm:$0xff]  ;;  %v3485_v22 = vpack.c.bf16 %v545_v14, %v541_v13 }
  0xe5   : > { %v556_v21 = vld [vmem:[#allocation5 + $0x1f8] sm:$0xff]  ;;  %v3709_v23 = vpack.c.bf16 %v547_v17, %v543_v15  ;;  %v3487_v24 = vpack.c.bf16 %v554_v19, %v550_v18  ;;  %v549_v25 = vld [vmem:[#allocation5 + $0x1c0] sm:$0xff]  ;;  %v551_v27 = vld [vmem:[#allocation5 + $0x1d0] sm:$0xff] }
  0xe6   : > { %3478 = vmatpush1.bf16.msra.mxu0 %v3477_v62  ;;  %v553_v26 = vld [vmem:[#allocation5 + $0x1e0] sm:$0xff]  ;;  %v3711_v28 = vpack.c.bf16 %v556_v21, %v552_v20  ;;  %v555_v29 = vld [vmem:[#allocation5 + $0x1f0] sm:$0xff]  ;;  %v558_v30 = vld [vmem:[#allocation5 + $0x208] sm:$0xff] }
  0xe7   : > { %3702 = vmatpush1.bf16.msra.mxu1 %v3701_v63  ;;  %3480 = vmatprep.subr.bf16.mxu0 %v3479_v0  ;;  %v562_v31 = vld [vmem:[#allocation5 + $0x228] sm:$0xff]  ;;  %v560_v32 = vld [vmem:[#allocation5 + $0x218] sm:$0xff]  ;;  %v3489_v34 = vpack.c.bf16 %v553_v26, %v549_v25  ;;  %v3713_v35 = vpack.c.bf16 %v555_v29, %v551_v27  ;;  %v557_v37 = vld [vmem:[#allocation5 + $0x200] sm:$0xff] }
  0xe8   : > { %3704 = vmatprep.subr.bf16.mxu1 %v3703_v4  ;;  %v564_v33 = vld [vmem:[#allocation5 + $0x238] sm:$0xff]  ;;  %v3491_v36 = vpack.c.bf16 %v562_v31, %v558_v30  ;;  %v561_v38 = vld [vmem:[#allocation5 + $0x220] sm:$0xff]  ;;  %v559_v39 = vld [vmem:[#allocation5 + $0x210] sm:$0xff] }
  0xe9   : > { %v3715_v40 = vpack.c.bf16 %v564_v33, %v560_v32  ;;  %v563_v41 = vld [vmem:[#allocation5 + $0x230] sm:$0xff]  ;;  %v566_v42 = vld [vmem:[#allocation5 + $0x248] sm:$0xff]  ;;  %v568_v44 = vld [vmem:[#allocation5 + $0x258] sm:$0xff]  ;;  %v3493_v46 = vpack.c.bf16 %v561_v38, %v557_v37 }
  0xea   : > { %3482 = vmatpush1.bf16.msra.mxu0 %v3481_v10  ;;  %v570_v43 = vld [vmem:[#allocation5 + $0x268] sm:$0xff]  ;;  %v572_v45 = vld [vmem:[#allocation5 + $0x278] sm:$0xff]  ;;  %v3717_v47 = vpack.c.bf16 %v563_v41, %v559_v39  ;;  %v565_v49 = vld [vmem:[#allocation5 + $0x240] sm:$0xff] }
  0xeb   : > { %3706 = vmatpush1.bf16.msra.mxu1 %v3705_v11  ;;  %3484 = vmatprep.subr.bf16.mxu0 %v3483_v12  ;;  %v3495_v48 = vpack.c.bf16 %v570_v43, %v566_v42  ;;  %v569_v50 = vld [vmem:[#allocation5 + $0x260] sm:$0xff]  ;;  %v567_v51 = vld [vmem:[#allocation5 + $0x250] sm:$0xff]  ;;  %v3719_v52 = vpack.c.bf16 %v572_v45, %v568_v44  ;;  %v574_v54 = vld [vmem:[#allocation5 + $0x288] sm:$0xff] }
  0xec   : > { %3708 = vmatprep.subr.bf16.mxu1 %v3707_v16  ;;  %v571_v53 = vld [vmem:[#allocation5 + $0x270] sm:$0xff]  ;;  %v578_v55 = vld [vmem:[#allocation5 + $0x2a8] sm:$0xff]  ;;  %v576_v56 = vld [vmem:[#allocation5 + $0x298] sm:$0xff]  ;;  %v3497_v58 = vpack.c.bf16 %v569_v50, %v565_v49 }
  0xed   : > { %v580_v57 = vld [vmem:[#allocation5 + $0x2b8] sm:$0xff]  ;;  %v3721_v59 = vpack.c.bf16 %v571_v53, %v567_v51  ;;  %v3499_v60 = vpack.c.bf16 %v578_v55, %v574_v54  ;;  %v573_v61 = vld [vmem:[#allocation5 + $0x280] sm:$0xff]  ;;  %v575_v63 = vld [vmem:[#allocation5 + $0x290] sm:$0xff] }
  0xee   : > { %3486 = vmatpush1.bf16.msra.mxu0 %v3485_v22  ;;  %v577_v62 = vld [vmem:[#allocation5 + $0x2a0] sm:$0xff]  ;;  %v3723_v0 = vpack.c.bf16 %v580_v57, %v576_v56  ;;  %v579_v1 = vld [vmem:[#allocation5 + $0x2b0] sm:$0xff]  ;;  %v582_v2 = vld [vmem:[#allocation5 + $0x2c8] sm:$0xff] }
  0xef   : > { %3710 = vmatpush1.bf16.msra.mxu1 %v3709_v23  ;;  %3488 = vmatprep.subr.bf16.mxu0 %v3487_v24  ;;  %v586_v3 = vld [vmem:[#allocation5 + $0x2e8] sm:$0xff]  ;;  %v584_v4 = vld [vmem:[#allocation5 + $0x2d8] sm:$0xff]  ;;  %v3501_v6 = vpack.c.bf16 %v577_v62, %v573_v61  ;;  %v581_v7 = vld [vmem:[#allocation5 + $0x2c0] sm:$0xff]  ;;  %v3725_v8 = vpack.c.bf16 %v579_v1, %v575_v63 }
  0xf0   : > { %3712 = vmatprep.subr.bf16.mxu1 %v3711_v28  ;;  %v588_v5 = vld [vmem:[#allocation5 + $0x2f8] sm:$0xff]  ;;  %v3503_v9 = vpack.c.bf16 %v586_v3, %v582_v2  ;;  %v585_v10 = vld [vmem:[#allocation5 + $0x2e0] sm:$0xff]  ;;  %v583_v11 = vld [vmem:[#allocation5 + $0x2d0] sm:$0xff] }
  0xf1   : > { %v587_v12 = vld [vmem:[#allocation5 + $0x2f0] sm:$0xff]  ;;  %v3727_v13 = vpack.c.bf16 %v588_v5, %v584_v4  ;;  %v590_v14 = vld [vmem:[#allocation5 + $0x308] sm:$0xff]  ;;  %v592_v17 = vld [vmem:[#allocation5 + $0x318] sm:$0xff]  ;;  %v3505_v19 = vpack.c.bf16 %v585_v10, %v581_v7 }
  0xf2   : > { %3490 = vmatpush1.bf16.msra.mxu0 %v3489_v34  ;;  %v594_v15 = vld [vmem:[#allocation5 + $0x328] sm:$0xff]  ;;  %v596_v18 = vld [vmem:[#allocation5 + $0x338] sm:$0xff]  ;;  %v3729_v20 = vpack.c.bf16 %v587_v12, %v583_v11  ;;  %v589_v22 = vld [vmem:[#allocation5 + $0x300] sm:$0xff] }
  0xf3   : > { %3714 = vmatpush1.bf16.msra.mxu1 %v3713_v35  ;;  %3492 = vmatprep.subr.bf16.mxu0 %v3491_v36  ;;  %v382_v16 = vld [vmem:[%s5042_s22 + $0x8] sm:$0xff]  ;;  %v3507_v21 = vpack.c.bf16 %v594_v15, %v590_v14  ;;  %v593_v23 = vld [vmem:[#allocation5 + $0x320] sm:$0xff]  ;;  %v591_v24 = vld [vmem:[#allocation5 + $0x310] sm:$0xff]  ;;  %v3731_v25 = vpack.c.bf16 %v596_v18, %v592_v17 }
  0xf4   : > { %3716 = vmatprep.subr.bf16.mxu1 %v3715_v40  ;;  %1027 = vmatprep.mubr.f32.mxu0 %v382_v16  ;;  %v595_v26 = vld [vmem:[#allocation5 + $0x330] sm:$0xff]  ;;  %v598_v27 = vld [vmem:[#allocation5 + $0x348] sm:$0xff]  ;;  %v600_v29 = vld [vmem:[#allocation5 + $0x358] sm:$0xff]  ;;  %v3509_v31 = vpack.c.bf16 %v593_v23, %v589_v22 }
  0xf5   : > { %1671 = vmatprep.mubr.f32.mxu1 %v382_v16  ;;  %v602_v28 = vld [vmem:[#allocation5 + $0x368] sm:$0xff]  ;;  %v604_v30 = vld [vmem:[#allocation5 + $0x378] sm:$0xff]  ;;  %v3733_v32 = vpack.c.bf16 %v595_v26, %v591_v24  ;;  %v597_v34 = vld [vmem:[#allocation5 + $0x340] sm:$0xff] }
  0xf6   : > { %3494 = vmatpush1.bf16.msra.mxu0 %v3493_v46  ;;  %v3511_v33 = vpack.c.bf16 %v602_v28, %v598_v27  ;;  %v601_v35 = vld [vmem:[#allocation5 + $0x360] sm:$0xff]  ;;  %v599_v36 = vld [vmem:[#allocation5 + $0x350] sm:$0xff]  ;;  %v3735_v37 = vpack.c.bf16 %v604_v30, %v600_v29  ;;  %v606_v39 = vld [vmem:[#allocation5 + $0x388] sm:$0xff] }
  0xf7   : > { %3718 = vmatpush1.bf16.msra.mxu1 %v3717_v47  ;;  %3496 = vmatprep.subr.bf16.mxu0 %v3495_v48  ;;  %v603_v38 = vld [vmem:[#allocation5 + $0x370] sm:$0xff]  ;;  %v610_v40 = vld [vmem:[#allocation5 + $0x3a8] sm:$0xff]  ;;  %v608_v41 = vld [vmem:[#allocation5 + $0x398] sm:$0xff]  ;;  %v3513_v43 = vpack.c.bf16 %v601_v35, %v597_v34 }
  0xf8   : > { %3720 = vmatprep.subr.bf16.mxu1 %v3719_v52  ;;  %v612_v42 = vld [vmem:[#allocation5 + $0x3b8] sm:$0xff]  ;;  %v3737_v44 = vpack.c.bf16 %v603_v38, %v599_v36  ;;  %v3515_v45 = vpack.c.bf16 %v610_v40, %v606_v39  ;;  %v605_v46 = vld [vmem:[#allocation5 + $0x380] sm:$0xff]  ;;  %v607_v48 = vld [vmem:[#allocation5 + $0x390] sm:$0xff] }
  0xf9   : > { %v609_v47 = vld [vmem:[#allocation5 + $0x3a0] sm:$0xff]  ;;  %v3739_v49 = vpack.c.bf16 %v612_v42, %v608_v41  ;;  %v611_v50 = vld [vmem:[#allocation5 + $0x3b0] sm:$0xff]  ;;  %v614_v51 = vld [vmem:[#allocation5 + $0x3c8] sm:$0xff] }
  0xfa   : > { %3498 = vmatpush1.bf16.msra.mxu0 %v3497_v58  ;;  %v618_v52 = vld [vmem:[#allocation5 + $0x3e8] sm:$0xff]  ;;  %v616_v53 = vld [vmem:[#allocation5 + $0x3d8] sm:$0xff]  ;;  %v3517_v55 = vpack.c.bf16 %v609_v47, %v605_v46  ;;  %v3741_v56 = vpack.c.bf16 %v611_v50, %v607_v48  ;;  %v613_v58 = vld [vmem:[#allocation5 + $0x3c0] sm:$0xff] }
  0xfb   : > { %3722 = vmatpush1.bf16.msra.mxu1 %v3721_v59  ;;  %3500 = vmatprep.subr.bf16.mxu0 %v3499_v60  ;;  %v620_v54 = vld [vmem:[#allocation5 + $0x3f8] sm:$0xff]  ;;  %v3519_v57 = vpack.c.bf16 %v618_v52, %v614_v51  ;;  %v617_v59 = vld [vmem:[#allocation5 + $0x3e0] sm:$0xff]  ;;  %v615_v60 = vld [vmem:[#allocation5 + $0x3d0] sm:$0xff] }
  0xfc   : > { %3724 = vmatprep.subr.bf16.mxu1 %v3723_v0  ;;  %v3743_v61 = vpack.c.bf16 %v620_v54, %v616_v53  ;;  %v619_v62 = vld [vmem:[#allocation5 + $0x3f0] sm:$0xff]  ;;  %v622_v63 = vld [vmem:[#allocation5 + $0x408] sm:$0xff]  ;;  %v624_v1 = vld [vmem:[#allocation5 + $0x418] sm:$0xff]  ;;  %v3521_v3 = vpack.c.bf16 %v617_v59, %v613_v58 }
  0xfd   : > { %v626_v0 = vld [vmem:[#allocation5 + $0x428] sm:$0xff]  ;;  %v628_v2 = vld [vmem:[#allocation5 + $0x438] sm:$0xff]  ;;  %v3745_v4 = vpack.c.bf16 %v619_v62, %v615_v60  ;;  %v625_v7 = vld [vmem:[#allocation5 + $0x420] sm:$0xff] }
  0xfe   : > { %3502 = vmatpush1.bf16.msra.mxu0 %v3501_v6  ;;  %v3523_v5 = vpack.c.bf16 %v626_v0, %v622_v63  ;;  %v621_v6 = vld [vmem:[#allocation5 + $0x400] sm:$0xff]  ;;  %v627_v10 = vld [vmem:[#allocation5 + $0x430] sm:$0xff]  ;;  %v630_v11 = vld [vmem:[#allocation5 + $0x448] sm:$0xff] }
  0xff   : > { %3726 = vmatpush1.bf16.msra.mxu1 %v3725_v8  ;;  %3504 = vmatprep.subr.bf16.mxu0 %v3503_v9  ;;  %v3747_v8 = vpack.c.bf16 %v628_v2, %v624_v1  ;;  %v623_v9 = vld [vmem:[#allocation5 + $0x410] sm:$0xff]  ;;  %v634_v12 = vld [vmem:[#allocation5 + $0x468] sm:$0xff]  ;;  %v3525_v14 = vpack.c.bf16 %v625_v7, %v621_v6  ;;  %v632_v15 = vld [vmem:[#allocation5 + $0x458] sm:$0xff] }
 0x100   : > { %3728 = vmatprep.subr.bf16.mxu1 %v3727_v13  ;;  %v381_v13 = vld [vmem:[%s5042_s22] sm:$0xff]  ;;  %v636_v16 = vld [vmem:[#allocation5 + $0x478] sm:$0xff]  ;;  %v3749_v17 = vpack.c.bf16 %v627_v10, %v623_v9  ;;  %v631_v22 = vld [vmem:[#allocation5 + $0x450] sm:$0xff] }
 0x101   : > { %v629_v18 = vld [vmem:[#allocation5 + $0x440] sm:$0xff]  ;;  %v635_v23 = vld [vmem:[#allocation5 + $0x470] sm:$0xff]  ;;  %v3751_v24 = vpack.c.bf16 %v636_v16, %v632_v15  ;;  %v642_v26 = vld [vmem:[#allocation5 + $0x4a8] sm:$0xff] }
 0x102   : > { %3506 = vmatpush1.bf16.msra.mxu0 %v3505_v19  ;;  %v633_v19 = vld [vmem:[#allocation5 + $0x460] sm:$0xff]  ;;  %v388_v27 = vld [vmem:[%s5042_s22 + $0x38] sm:$0xff]  ;;  %v639_v36 = vld [vmem:[#allocation5 + $0x490] sm:$0xff] }
 0x103   : > { %3730 = vmatpush1.bf16.msra.mxu1 %v3729_v20  ;;  %3508 = vmatprep.subr.bf16.mxu0 %v3507_v21  ;;  %v389_v20 = vld [vmem:[%s5042_s22 + $0x40] sm:$0xff]  ;;  %v3527_v21 = vpack.c.bf16 %v634_v12, %v630_v11  ;;  %v3529_v28 = vpack.c.bf16 %v633_v19, %v629_v18  ;;  %v640_v29 = vld [vmem:[#allocation5 + $0x498] sm:$0xff]  ;;  %v646_v39 = vld [vmem:[#allocation5 + $0x4c8] sm:$0xff] }
 0x104   : > { %3732 = vmatprep.subr.bf16.mxu1 %v3731_v25  ;;  %v638_v25 = vld [vmem:[#allocation5 + $0x488] sm:$0xff]  ;;  %v644_v30 = vld [vmem:[#allocation5 + $0x4b8] sm:$0xff]  ;;  %v395_v41 = vld [vmem:[%s5042_s22 + $0x70] sm:$0xff] }
 0x105   : > { %v396_v34 = vld [vmem:[%s5042_s22 + $0x78] sm:$0xff]  ;;  %v3531_v35 = vpack.c.bf16 %v642_v26, %v638_v25  ;;  %v3755_v38 = vpack.c.bf16 %v644_v30, %v640_v29  ;;  %v650_v40 = vld [vmem:[#allocation5 + $0x4e8] sm:$0xff]  ;;  %v645_v46 = vld [vmem:[#allocation5 + $0x4c0] sm:$0xff] }
 0x106   : > { %3510 = vmatpush1.bf16.msra.mxu0 %v3509_v31  ;;  %v3753_v31 = vpack.c.bf16 %v635_v23, %v631_v22  ;;  %v649_v47 = vld [vmem:[#allocation5 + $0x4e0] sm:$0xff]  ;;  %v403_v48 = vld [vmem:[%s5042_s22 + $0xb0] sm:$0xff]  ;;  %v654_v53 = vld [vmem:[#allocation5 + $0x508] sm:$0xff] }
 0x107   : > { %3734 = vmatpush1.bf16.msra.mxu1 %v3733_v32  ;;  %3512 = vmatprep.subr.bf16.mxu0 %v3511_v33  ;;  %v637_v32 = vld [vmem:[#allocation5 + $0x480] sm:$0xff]  ;;  %v647_v50 = vld [vmem:[#allocation5 + $0x4d0] sm:$0xff]  ;;  %v658_v54 = vld [vmem:[#allocation5 + $0x528] sm:$0xff] }
 0x108   : > { %3736 = vmatprep.subr.bf16.mxu1 %v3735_v37  ;;  %v641_v33 = vld [vmem:[#allocation5 + $0x4a0] sm:$0xff]  ;;  %v643_v37 = vld [vmem:[#allocation5 + $0x4b0] sm:$0xff]  ;;  %v660_v58 = vld [vmem:[#allocation5 + $0x538] sm:$0xff]  ;;  %v3539_v63 = vpack.c.bf16 %v658_v54, %v654_v53 }
 0x109   : > { %v3533_v42 = vpack.c.bf16 %v641_v33, %v637_v32  ;;  %v651_v51 = vld [vmem:[#allocation5 + $0x4f0] sm:$0xff]  ;;  %v653_v60 = vld [vmem:[#allocation5 + $0x500] sm:$0xff]  ;;  %v410_v62 = vld [vmem:[%s5042_s22 + $0xe8] sm:$0xff] }
 0x10a   : > { %3514 = vmatpush1.bf16.msra.mxu0 %v3513_v43  ;;  %v648_v43 = vld [vmem:[#allocation5 + $0x4d8] sm:$0xff]  ;;  %v3761_v59 = vpack.c.bf16 %v651_v51, %v647_v50  ;;  %v655_v0 = vld [vmem:[#allocation5 + $0x510] sm:$0xff]  ;;  %v661_v10 = vld [vmem:[#allocation5 + $0x540] sm:$0xff] }
 0x10b   : > { %3738 = vmatpush1.bf16.msra.mxu1 %v3737_v44  ;;  %3516 = vmatprep.subr.bf16.mxu0 %v3515_v45  ;;  %v652_v44 = vld [vmem:[#allocation5 + $0x4f8] sm:$0xff]  ;;  %v3757_v45 = vpack.c.bf16 %v643_v37, %v639_v36  ;;  %v659_v1 = vld [vmem:[#allocation5 + $0x530] sm:$0xff]  ;;  %v665_v11 = vld [vmem:[#allocation5 + $0x560] sm:$0xff] }
 0x10c   : > { %3740 = vmatprep.subr.bf16.mxu1 %v3739_v49  ;;  %v3535_v49 = vpack.c.bf16 %v650_v40, %v646_v39  ;;  %v3759_v52 = vpack.c.bf16 %v652_v44, %v648_v43  ;;  %v664_v7 = vld [vmem:[#allocation5 + $0x558] sm:$0xff]  ;;  %v3765_v9 = vpack.c.bf16 %v659_v1, %v655_v0  ;;  %v417_v12 = vld [vmem:[%s5042_s22 + $0x120] sm:$0xff]  ;;  %v667_v15 = vld [vmem:[#allocation5 + $0x570] sm:$0xff] }
 0x10d   : > { %v674_v18 = vld [vmem:[#allocation5 + $0x5a8] sm:$0xff]  ;;  %v416_v19 = vld [vmem:[%s5042_s22 + $0x118] sm:$0xff]  ;;  %v673_v25 = vld [vmem:[#allocation5 + $0x5a0] sm:$0xff] }
 0x10e   : > { %3518 = vmatpush1.bf16.msra.mxu0 %v3517_v55  ;;  %v402_v55 = vld [vmem:[%s5042_s22 + $0xa8] sm:$0xff]  ;;  %v676_v22 = vld [vmem:[#allocation5 + $0x5b8] sm:$0xff]  ;;  %v675_v29 = vld [vmem:[#allocation5 + $0x5b0] sm:$0xff] }
 0x10f   : > { %3742 = vmatpush1.bf16.msra.mxu1 %v3741_v56  ;;  %3520 = vmatprep.subr.bf16.mxu0 %v3519_v57  ;;  %v3537_v56 = vpack.c.bf16 %v649_v47, %v645_v46  ;;  %v656_v57 = vld [vmem:[#allocation5 + $0x518] sm:$0xff]  ;;  %v682_v32 = vld [vmem:[#allocation5 + $0x5e8] sm:$0xff]  ;;  %v423_v33 = vld [vmem:[%s5042_s22 + $0x150] sm:$0xff] }
 0x110   : > { %3744 = vmatprep.subr.bf16.mxu1 %v3743_v61  ;;  %v657_v61 = vld [vmem:[#allocation5 + $0x520] sm:$0xff]  ;;  %v3763_v2 = vpack.c.bf16 %v660_v58, %v656_v57  ;;  %v424_v26 = vld [vmem:[%s5042_s22 + $0x158] sm:$0xff]  ;;  %v431_v40 = vld [vmem:[%s5042_s22 + $0x190] sm:$0xff] }
 0x111   : > { %v3541_v6 = vpack.c.bf16 %v657_v61, %v653_v60  ;;  %v684_v36 = vld [vmem:[#allocation5 + $0x5f8] sm:$0xff]  ;;  %v681_v39 = vld [vmem:[#allocation5 + $0x5e0] sm:$0xff]  ;;  %v683_v43 = vld [vmem:[#allocation5 + $0x5f0] sm:$0xff] }
 0x112   : > { %3522 = vmatpush1.bf16.msra.mxu0 %v3521_v3  ;;  %v662_v3 = vld [vmem:[#allocation5 + $0x548] sm:$0xff]  ;;  %v692_v50 = vld [vmem:[#allocation5 + $0x638] sm:$0xff]  ;;  %v689_v53 = vld [vmem:[#allocation5 + $0x620] sm:$0xff] }
 0x113   : > { %3746 = vmatpush1.bf16.msra.mxu1 %v3745_v4  ;;  %3524 = vmatprep.subr.bf16.mxu0 %v3523_v5  ;;  %v666_v4 = vld [vmem:[#allocation5 + $0x568] sm:$0xff]  ;;  %v409_v5 = vld [vmem:[%s5042_s22 + $0xe0] sm:$0xff]  ;;  %v691_v57 = vld [vmem:[#allocation5 + $0x630] sm:$0xff] }
 0x114   : > { %3748 = vmatprep.subr.bf16.mxu1 %v3747_v8  ;;  %v668_v8 = vld [vmem:[#allocation5 + $0x578] sm:$0xff]  ;;  %v690_v46 = vld [vmem:[#allocation5 + $0x628] sm:$0xff]  ;;  %v437_v61 = vld [vmem:[%s5042_s22 + $0x1c0] sm:$0xff] }
 0x115   : > { %1028 = vmatmul.mubr.f32.vlgmr.msra.gmra.mrb[0].mxu0 %v381_v13  ;;  %v3767_v16 = vpack.c.bf16 %v668_v8, %v664_v7  ;;  %v430_v47 = vld [vmem:[%s5042_s22 + $0x188] sm:$0xff]  ;;  %v700_v0 = vld [vmem:[#allocation5 + $0x678] sm:$0xff]  ;;  %v699_v7 = vld [vmem:[#allocation5 + $0x670] sm:$0xff] }
 0x116   : > { %1672 = vmatmul.mubr.f32.vlgmr.msra.gmra.mrb[0].mxu1 %v381_v13  ;;  %3526 = vmatpush1.bf16.msra.mxu0 %v3525_v14  ;;  %v3543_v13 = vpack.c.bf16 %v666_v4, %v662_v3  ;;  %v663_v14 = vld [vmem:[#allocation5 + $0x550] sm:$0xff]  ;;  %v438_v54 = vld [vmem:[%s5042_s22 + $0x1c8] sm:$0xff]  ;;  %v697_v3 = vld [vmem:[#allocation5 + $0x660] sm:$0xff] }
 0x117   : > { %3750 = vmatpush1.bf16.msra.mxu1 %v3749_v17  ;;  %1033 = vmatprep.mubr.f32.mxu0 %v389_v20  ;;  %v670_v17 = vld [vmem:[#allocation5 + $0x588] sm:$0xff]  ;;  %v3769_v23 = vpack.c.bf16 %v667_v15, %v663_v14  ;;  %v445_v4 = vld [vmem:[%s5042_s22 + $0x200] sm:$0xff]  ;;  %v708_v14 = vld [vmem:[#allocation5 + $0x6b8] sm:$0xff] }
 0x118   : > { %1677 = vmatprep.mubr.f32.mxu1 %v389_v20  ;;  %3528 = vmatprep.subr.bf16.mxu0 %v3527_v21  ;;  %v3545_v20 = vpack.c.bf16 %v665_v11, %v661_v10  ;;  %v672_v21 = vld [vmem:[#allocation5 + $0x598] sm:$0xff]  ;;  %v698_v60 = vld [vmem:[#allocation5 + $0x668] sm:$0xff] }
 0x119   : > { %1034 = vmatmul.mubr.f32.gmra.mrb[2].mxu0 %v388_v27  ;;  %3752 = vmatprep.subr.bf16.mxu1 %v3751_v24  ;;  %v669_v24 = vld [vmem:[#allocation5 + $0x580] sm:$0xff]  ;;  %v3771_v30 = vpack.c.bf16 %v676_v22, %v672_v21  ;;  %v706_v10 = vld [vmem:[#allocation5 + $0x6a8] sm:$0xff]  ;;  %v444_v11 = vld [vmem:[%s5042_s22 + $0x1f8] sm:$0xff] }
 0x11a   : > { %1678 = vmatmul.mubr.f32.gmra.mrb[2].mxu1 %v388_v27  ;;  %3530 = vmatpush1.bf16.msra.mxu0 %v3529_v28  ;;  %v3547_v27 = vpack.c.bf16 %v674_v18, %v670_v17  ;;  %v671_v28 = vld [vmem:[#allocation5 + $0x590] sm:$0xff]  ;;  %v705_v17 = vld [vmem:[#allocation5 + $0x6a0] sm:$0xff]  ;;  %v452_v18 = vld [vmem:[%s5042_s22 + $0x238] sm:$0xff] }
 0x11b   : > { %3754 = vmatpush1.bf16.msra.mxu1 %v3753_v31  ;;  %1039 = vmatprep.mubr.f32.mxu0 %v396_v34  ;;  %v678_v31 = vld [vmem:[#allocation5 + $0x5c8] sm:$0xff]  ;;  %v3773_v37 = vpack.c.bf16 %v675_v29, %v671_v28  ;;  %v707_v21 = vld [vmem:[#allocation5 + $0x6b0] sm:$0xff]  ;;  %v716_v28 = vld [vmem:[#allocation5 + $0x6f8] sm:$0xff] }
 0x11c   : > { %1683 = vmatprep.mubr.f32.mxu1 %v396_v34  ;;  %3532 = vmatprep.subr.bf16.mxu0 %v3531_v35  ;;  %v3549_v34 = vpack.c.bf16 %v673_v25, %v669_v24  ;;  %v680_v35 = vld [vmem:[#allocation5 + $0x5d8] sm:$0xff]  ;;  %v714_v24 = vld [vmem:[#allocation5 + $0x6e8] sm:$0xff]  ;;  %v451_v25 = vld [vmem:[%s5042_s22 + $0x230] sm:$0xff] }
 0x11d   : > { %1040 = vmatmul.mubr.f32.gmra.mrb[4].mxu0 %v395_v41  ;;  %3756 = vmatprep.subr.bf16.mxu1 %v3755_v38  ;;  %v677_v38 = vld [vmem:[#allocation5 + $0x5c0] sm:$0xff]  ;;  %v3775_v44 = vpack.c.bf16 %v684_v36, %v680_v35  ;;  %v715_v35 = vld [vmem:[#allocation5 + $0x6f0] sm:$0xff] }
 0x11e   : > { %1684 = vmatmul.mubr.f32.gmra.mrb[4].mxu1 %v395_v41  ;;  %3534 = vmatpush1.bf16.msra.mxu0 %v3533_v42  ;;  %v3551_v41 = vpack.c.bf16 %v682_v32, %v678_v31  ;;  %v679_v42 = vld [vmem:[#allocation5 + $0x5d0] sm:$0xff]  ;;  %v713_v31 = vld [vmem:[#allocation5 + $0x6e0] sm:$0xff] }
 0x11f   : > { %3758 = vmatpush1.bf16.msra.mxu1 %v3757_v45  ;;  %1045 = vmatprep.mubr.f32.mxu0 %v403_v48  ;;  %v686_v45 = vld [vmem:[#allocation5 + $0x608] sm:$0xff]  ;;  %v3777_v51 = vpack.c.bf16 %v683_v43, %v679_v42  ;;  %v459_v32 = vld [vmem:[%s5042_s22 + $0x270] sm:$0xff]  ;;  %v724_v42 = vld [vmem:[#allocation5 + $0x738] sm:$0xff] }
 0x120   : > { %1689 = vmatprep.mubr.f32.mxu1 %v403_v48  ;;  %3536 = vmatprep.subr.bf16.mxu0 %v3535_v49  ;;  %v3553_v48 = vpack.c.bf16 %v681_v39, %v677_v38  ;;  %v688_v49 = vld [vmem:[#allocation5 + $0x618] sm:$0xff]  ;;  %v722_v38 = vld [vmem:[#allocation5 + $0x728] sm:$0xff] }
 0x121   : > { %1046 = vmatmul.mubr.f32.gmra.mrb[6].mxu0 %v402_v55  ;;  %3760 = vmatprep.subr.bf16.mxu1 %v3759_v52  ;;  %v685_v52 = vld [vmem:[#allocation5 + $0x600] sm:$0xff]  ;;  %v3779_v58 = vpack.c.bf16 %v692_v50, %v688_v49  ;;  %v458_v39 = vld [vmem:[%s5042_s22 + $0x268] sm:$0xff]  ;;  %v723_v49 = vld [vmem:[#allocation5 + $0x730] sm:$0xff] }
 0x122   : > { %1690 = vmatmul.mubr.f32.gmra.mrb[6].mxu1 %v402_v55  ;;  %3538 = vmatpush1.bf16.msra.mxu0 %v3537_v56  ;;  %v3555_v55 = vpack.c.bf16 %v690_v46, %v686_v45  ;;  %v687_v56 = vld [vmem:[#allocation5 + $0x610] sm:$0xff]  ;;  %v721_v45 = vld [vmem:[#allocation5 + $0x720] sm:$0xff]  ;;  %v466_v46 = vld [vmem:[%s5042_s22 + $0x2a8] sm:$0xff] }
 0x123   : > { %3762 = vmatpush1.bf16.msra.mxu1 %v3761_v59  ;;  %1051 = vmatprep.mubr.f32.mxu0 %v410_v62  ;;  %v694_v59 = vld [vmem:[#allocation5 + $0x648] sm:$0xff]  ;;  %v3781_v1 = vpack.c.bf16 %v691_v57, %v687_v56  ;;  %v732_v56 = vld [vmem:[#allocation5 + $0x778] sm:$0xff] }
 0x124   : > { %1695 = vmatprep.mubr.f32.mxu1 %v410_v62  ;;  %3540 = vmatprep.subr.bf16.mxu0 %v3539_v63  ;;  %v3557_v62 = vpack.c.bf16 %v689_v53, %v685_v52  ;;  %v696_v63 = vld [vmem:[#allocation5 + $0x658] sm:$0xff]  ;;  %v730_v52 = vld [vmem:[#allocation5 + $0x768] sm:$0xff]  ;;  %v465_v53 = vld [vmem:[%s5042_s22 + $0x2a0] sm:$0xff] }
 0x125   : > { %1052 = vmatmul.mubr.f32.gmra.mrb[8].mxu0 %v409_v5  ;;  %3764 = vmatprep.subr.bf16.mxu1 %v3763_v2  ;;  %v693_v2 = vld [vmem:[#allocation5 + $0x640] sm:$0xff]  ;;  %v3783_v8 = vpack.c.bf16 %v700_v0, %v696_v63  ;;  %v731_v63 = vld [vmem:[#allocation5 + $0x770] sm:$0xff] }
 0x126   : > { %1696 = vmatmul.mubr.f32.gmra.mrb[8].mxu1 %v409_v5  ;;  %3542 = vmatpush1.bf16.msra.mxu0 %v3541_v6  ;;  %v3559_v5 = vpack.c.bf16 %v698_v60, %v694_v59  ;;  %v695_v6 = vld [vmem:[#allocation5 + $0x650] sm:$0xff]  ;;  %v729_v59 = vld [vmem:[#allocation5 + $0x760] sm:$0xff] }
 0x127   : > { %3766 = vmatpush1.bf16.msra.mxu1 %v3765_v9  ;;  %1057 = vmatprep.mubr.f32.mxu0 %v417_v12  ;;  %v702_v9 = vld [vmem:[#allocation5 + $0x688] sm:$0xff]  ;;  %v3785_v15 = vpack.c.bf16 %v699_v7, %v695_v6  ;;  %v473_v60 = vld [vmem:[%s5042_s22 + $0x2e0] sm:$0xff]  ;;  %v740_v6 = vld [vmem:[#allocation5 + $0x7b8] sm:$0xff] }
 0x128   : > { %1701 = vmatprep.mubr.f32.mxu1 %v417_v12  ;;  %3544 = vmatprep.subr.bf16.mxu0 %v3543_v13  ;;  %v3561_v12 = vpack.c.bf16 %v697_v3, %v693_v2  ;;  %v704_v13 = vld [vmem:[#allocation5 + $0x698] sm:$0xff]  ;;  %v738_v2 = vld [vmem:[#allocation5 + $0x7a8] sm:$0xff] }
 0x129   : > { %1058 = vmatmul.mubr.f32.gmra.mrb[10].mxu0 %v416_v19  ;;  %3768 = vmatprep.subr.bf16.mxu1 %v3767_v16  ;;  %v701_v16 = vld [vmem:[#allocation5 + $0x680] sm:$0xff]  ;;  %v3787_v22 = vpack.c.bf16 %v708_v14, %v704_v13  ;;  %v472_v3 = vld [vmem:[%s5042_s22 + $0x2d8] sm:$0xff]  ;;  %v739_v13 = vld [vmem:[#allocation5 + $0x7b0] sm:$0xff] }
 0x12a   : > { %1702 = vmatmul.mubr.f32.gmra.mrb[10].mxu1 %v416_v19  ;;  %3546 = vmatpush1.bf16.msra.mxu0 %v3545_v20  ;;  %v3563_v19 = vpack.c.bf16 %v706_v10, %v702_v9  ;;  %v703_v20 = vld [vmem:[#allocation5 + $0x690] sm:$0xff]  ;;  %v737_v9 = vld [vmem:[#allocation5 + $0x7a0] sm:$0xff]  ;;  %v480_v10 = vld [vmem:[%s5042_s22 + $0x318] sm:$0xff] }
 0x12b   : > { %3770 = vmatpush1.bf16.msra.mxu1 %v3769_v23  ;;  %1063 = vmatprep.mubr.f32.mxu0 %v424_v26  ;;  %v710_v23 = vld [vmem:[#allocation5 + $0x6c8] sm:$0xff]  ;;  %v3789_v29 = vpack.c.bf16 %v707_v21, %v703_v20  ;;  %v748_v20 = vld [vmem:[#allocation5 + $0x7f8] sm:$0xff] }
 0x12c   : > { %1707 = vmatprep.mubr.f32.mxu1 %v424_v26  ;;  %3548 = vmatprep.subr.bf16.mxu0 %v3547_v27  ;;  %v3565_v26 = vpack.c.bf16 %v705_v17, %v701_v16  ;;  %v712_v27 = vld [vmem:[#allocation5 + $0x6d8] sm:$0xff]  ;;  %v746_v16 = vld [vmem:[#allocation5 + $0x7e8] sm:$0xff]  ;;  %v479_v17 = vld [vmem:[%s5042_s22 + $0x310] sm:$0xff] }
 0x12d   : > { %1064 = vmatmul.mubr.f32.gmra.mrb[12].mxu0 %v423_v33  ;;  %3772 = vmatprep.subr.bf16.mxu1 %v3771_v30  ;;  %v709_v30 = vld [vmem:[#allocation5 + $0x6c0] sm:$0xff]  ;;  %v3791_v36 = vpack.c.bf16 %v716_v28, %v712_v27  ;;  %v747_v27 = vld [vmem:[#allocation5 + $0x7f0] sm:$0xff] }
 0x12e   : > { %1708 = vmatmul.mubr.f32.gmra.mrb[12].mxu1 %v423_v33  ;;  %3550 = vmatpush1.bf16.msra.mxu0 %v3549_v34  ;;  %v3567_v33 = vpack.c.bf16 %v714_v24, %v710_v23  ;;  %v711_v34 = vld [vmem:[#allocation5 + $0x6d0] sm:$0xff]  ;;  %v745_v23 = vld [vmem:[#allocation5 + $0x7e0] sm:$0xff] }
 0x12f   : > { %3774 = vmatpush1.bf16.msra.mxu1 %v3773_v37  ;;  %1069 = vmatprep.mubr.f32.mxu0 %v431_v40  ;;  %v718_v37 = vld [vmem:[#allocation5 + $0x708] sm:$0xff]  ;;  %v3793_v43 = vpack.c.bf16 %v715_v35, %v711_v34  ;;  %v487_v24 = vld [vmem:[%s5042_s22 + $0x350] sm:$0xff]  ;;  %v756_v34 = vld [vmem:[#allocation5 + $0x838] sm:$0xff] }
 0x130   : > { %1713 = vmatprep.mubr.f32.mxu1 %v431_v40  ;;  %3552 = vmatprep.subr.bf16.mxu0 %v3551_v41  ;;  %v3569_v40 = vpack.c.bf16 %v713_v31, %v709_v30  ;;  %v720_v41 = vld [vmem:[#allocation5 + $0x718] sm:$0xff]  ;;  %v754_v30 = vld [vmem:[#allocation5 + $0x828] sm:$0xff] }
 0x131   : > { %1070 = vmatmul.mubr.f32.gmra.mrb[14].mxu0 %v430_v47  ;;  %3776 = vmatprep.subr.bf16.mxu1 %v3775_v44  ;;  %v717_v44 = vld [vmem:[#allocation5 + $0x700] sm:$0xff]  ;;  %v3795_v50 = vpack.c.bf16 %v724_v42, %v720_v41  ;;  %v486_v31 = vld [vmem:[%s5042_s22 + $0x348] sm:$0xff]  ;;  %v755_v41 = vld [vmem:[#allocation5 + $0x830] sm:$0xff] }
 0x132   : > { %1714 = vmatmul.mubr.f32.gmra.mrb[14].mxu1 %v430_v47  ;;  %3554 = vmatpush1.bf16.msra.mxu0 %v3553_v48  ;;  %v3571_v47 = vpack.c.bf16 %v722_v38, %v718_v37  ;;  %v719_v48 = vld [vmem:[#allocation5 + $0x710] sm:$0xff]  ;;  %v753_v37 = vld [vmem:[#allocation5 + $0x820] sm:$0xff]  ;;  %v384_v38 = vld [vmem:[%s5042_s22 + $0x18] sm:$0xff] }
 0x133   : > { %3778 = vmatpush1.bf16.msra.mxu1 %v3777_v51  ;;  %1075 = vmatprep.mubr.f32.mxu0 %v438_v54  ;;  %v726_v51 = vld [vmem:[#allocation5 + $0x748] sm:$0xff]  ;;  %v3797_v57 = vpack.c.bf16 %v723_v49, %v719_v48  ;;  %v764_v48 = vld [vmem:[#allocation5 + $0x878] sm:$0xff] }
 0x134   : > { %1719 = vmatprep.mubr.f32.mxu1 %v438_v54  ;;  %3556 = vmatprep.subr.bf16.mxu0 %v3555_v55  ;;  %v3573_v54 = vpack.c.bf16 %v721_v45, %v717_v44  ;;  %v728_v55 = vld [vmem:[#allocation5 + $0x758] sm:$0xff]  ;;  %v762_v44 = vld [vmem:[#allocation5 + $0x868] sm:$0xff]  ;;  %v383_v45 = vld [vmem:[%s5042_s22 + $0x10] sm:$0xff] }
 0x135   : > { %1076 = vmatmul.mubr.f32.gmra.mrb[16].mxu0 %v437_v61  ;;  %3780 = vmatprep.subr.bf16.mxu1 %v3779_v58  ;;  %v725_v58 = vld [vmem:[#allocation5 + $0x740] sm:$0xff]  ;;  %v3799_v0 = vpack.c.bf16 %v732_v56, %v728_v55  ;;  %v763_v55 = vld [vmem:[#allocation5 + $0x870] sm:$0xff] }
 0x136   : > { %1720 = vmatmul.mubr.f32.gmra.mrb[16].mxu1 %v437_v61  ;;  %3558 = vmatpush1.bf16.msra.mxu0 %v3557_v62  ;;  %v3575_v61 = vpack.c.bf16 %v730_v52, %v726_v51  ;;  %v727_v62 = vld [vmem:[#allocation5 + $0x750] sm:$0xff]  ;;  %v761_v51 = vld [vmem:[#allocation5 + $0x860] sm:$0xff] }
 0x137   : > { %3782 = vmatpush1.bf16.msra.mxu1 %v3781_v1  ;;  %1081 = vmatprep.mubr.f32.mxu0 %v445_v4  ;;  %v734_v1 = vld [vmem:[#allocation5 + $0x788] sm:$0xff]  ;;  %v3801_v7 = vpack.c.bf16 %v731_v63, %v727_v62  ;;  %v391_v52 = vld [vmem:[%s5042_s22 + $0x50] sm:$0xff]  ;;  %v772_v62 = vld [vmem:[#allocation5 + $0x8b8] sm:$0xff] }
 0x138   : > { %1725 = vmatprep.mubr.f32.mxu1 %v445_v4  ;;  %3560 = vmatprep.subr.bf16.mxu0 %v3559_v5  ;;  %v3577_v4 = vpack.c.bf16 %v729_v59, %v725_v58  ;;  %v736_v5 = vld [vmem:[#allocation5 + $0x798] sm:$0xff]  ;;  %v770_v58 = vld [vmem:[#allocation5 + $0x8a8] sm:$0xff] }
 0x139   : > { %1082 = vmatmul.mubr.f32.gmra.mrb[18].mxu0 %v444_v11  ;;  %3784 = vmatprep.subr.bf16.mxu1 %v3783_v8  ;;  %v733_v8 = vld [vmem:[#allocation5 + $0x780] sm:$0xff]  ;;  %v3803_v14 = vpack.c.bf16 %v740_v6, %v736_v5  ;;  %v390_v59 = vld [vmem:[%s5042_s22 + $0x48] sm:$0xff]  ;;  %v771_v5 = vld [vmem:[#allocation5 + $0x8b0] sm:$0xff] }
 0x13a   : > { %1726 = vmatmul.mubr.f32.gmra.mrb[18].mxu1 %v444_v11  ;;  %3562 = vmatpush1.bf16.msra.mxu0 %v3561_v12  ;;  %v3579_v11 = vpack.c.bf16 %v738_v2, %v734_v1  ;;  %v735_v12 = vld [vmem:[#allocation5 + $0x790] sm:$0xff]  ;;  %v769_v1 = vld [vmem:[#allocation5 + $0x8a0] sm:$0xff]  ;;  %v398_v2 = vld [vmem:[%s5042_s22 + $0x88] sm:$0xff] }
 0x13b   : > { %3786 = vmatpush1.bf16.msra.mxu1 %v3785_v15  ;;  %1087 = vmatprep.mubr.f32.mxu0 %v452_v18  ;;  %v742_v15 = vld [vmem:[#allocation5 + $0x7c8] sm:$0xff]  ;;  %v3805_v21 = vpack.c.bf16 %v739_v13, %v735_v12  ;;  %v780_v12 = vld [vmem:[#allocation5 + $0x8f8] sm:$0xff] }
 0x13c   : > { %1731 = vmatprep.mubr.f32.mxu1 %v452_v18  ;;  %3564 = vmatprep.subr.bf16.mxu0 %v3563_v19  ;;  %v3581_v18 = vpack.c.bf16 %v737_v9, %v733_v8  ;;  %v744_v19 = vld [vmem:[#allocation5 + $0x7d8] sm:$0xff]  ;;  %v778_v8 = vld [vmem:[#allocation5 + $0x8e8] sm:$0xff]  ;;  %v397_v9 = vld [vmem:[%s5042_s22 + $0x80] sm:$0xff] }
 0x13d   : > { %1088 = vmatmul.mubr.f32.gmra.mrb[20].mxu0 %v451_v25  ;;  %3788 = vmatprep.subr.bf16.mxu1 %v3787_v22  ;;  %v741_v22 = vld [vmem:[#allocation5 + $0x7c0] sm:$0xff]  ;;  %v3807_v28 = vpack.c.bf16 %v748_v20, %v744_v19  ;;  %v779_v19 = vld [vmem:[#allocation5 + $0x8f0] sm:$0xff] }
 0x13e   : > { %1732 = vmatmul.mubr.f32.gmra.mrb[20].mxu1 %v451_v25  ;;  %3566 = vmatpush1.bf16.msra.mxu0 %v3565_v26  ;;  %v3583_v25 = vpack.c.bf16 %v746_v16, %v742_v15  ;;  %v743_v26 = vld [vmem:[#allocation5 + $0x7d0] sm:$0xff]  ;;  %v777_v15 = vld [vmem:[#allocation5 + $0x8e0] sm:$0xff] }
 0x13f   : > { %3790 = vmatpush1.bf16.msra.mxu1 %v3789_v29  ;;  %1093 = vmatprep.mubr.f32.mxu0 %v459_v32  ;;  %v750_v29 = vld [vmem:[#allocation5 + $0x808] sm:$0xff]  ;;  %v3809_v35 = vpack.c.bf16 %v747_v27, %v743_v26  ;;  %v405_v16 = vld [vmem:[%s5042_s22 + $0xc0] sm:$0xff]  ;;  %v788_v26 = vld [vmem:[#allocation5 + $0x938] sm:$0xff] }
 0x140   : > { %1737 = vmatprep.mubr.f32.mxu1 %v459_v32  ;;  %3568 = vmatprep.subr.bf16.mxu0 %v3567_v33  ;;  %v3585_v32 = vpack.c.bf16 %v745_v23, %v741_v22  ;;  %v752_v33 = vld [vmem:[#allocation5 + $0x818] sm:$0xff]  ;;  %v786_v22 = vld [vmem:[#allocation5 + $0x928] sm:$0xff] }
 0x141   : > { %1094 = vmatmul.mubr.f32.gmra.mrb[22].mxu0 %v458_v39  ;;  %3792 = vmatprep.subr.bf16.mxu1 %v3791_v36  ;;  %v749_v36 = vld [vmem:[#allocation5 + $0x800] sm:$0xff]  ;;  %v3811_v42 = vpack.c.bf16 %v756_v34, %v752_v33  ;;  %v404_v23 = vld [vmem:[%s5042_s22 + $0xb8] sm:$0xff]  ;;  %v787_v33 = vld [vmem:[#allocation5 + $0x930] sm:$0xff] }
 0x142   : > { %1738 = vmatmul.mubr.f32.gmra.mrb[22].mxu1 %v458_v39  ;;  %3570 = vmatpush1.bf16.msra.mxu0 %v3569_v40  ;;  %v3587_v39 = vpack.c.bf16 %v754_v30, %v750_v29  ;;  %v751_v40 = vld [vmem:[#allocation5 + $0x810] sm:$0xff]  ;;  %v785_v29 = vld [vmem:[#allocation5 + $0x920] sm:$0xff]  ;;  %v412_v30 = vld [vmem:[%s5042_s22 + $0xf8] sm:$0xff] }
 0x143   : > { %3794 = vmatpush1.bf16.msra.mxu1 %v3793_v43  ;;  %1099 = vmatprep.mubr.f32.mxu0 %v466_v46  ;;  %v758_v43 = vld [vmem:[#allocation5 + $0x848] sm:$0xff]  ;;  %v3813_v49 = vpack.c.bf16 %v755_v41, %v751_v40  ;;  %v796_v40 = vld [vmem:[#allocation5 + $0x978] sm:$0xff] }
 0x144   : > { %1743 = vmatprep.mubr.f32.mxu1 %v466_v46  ;;  %3572 = vmatprep.subr.bf16.mxu0 %v3571_v47  ;;  %v3589_v46 = vpack.c.bf16 %v753_v37, %v749_v36  ;;  %v760_v47 = vld [vmem:[#allocation5 + $0x858] sm:$0xff]  ;;  %v794_v36 = vld [vmem:[#allocation5 + $0x968] sm:$0xff]  ;;  %v411_v37 = vld [vmem:[%s5042_s22 + $0xf0] sm:$0xff] }
 0x145   : > { %1100 = vmatmul.mubr.f32.gmra.mrb[24].mxu0 %v465_v53  ;;  %3796 = vmatprep.subr.bf16.mxu1 %v3795_v50  ;;  %v757_v50 = vld [vmem:[#allocation5 + $0x840] sm:$0xff]  ;;  %v3815_v56 = vpack.c.bf16 %v764_v48, %v760_v47  ;;  %v795_v47 = vld [vmem:[#allocation5 + $0x970] sm:$0xff] }
 0x146   : > { %1744 = vmatmul.mubr.f32.gmra.mrb[24].mxu1 %v465_v53  ;;  %3574 = vmatpush1.bf16.msra.mxu0 %v3573_v54  ;;  %v3591_v53 = vpack.c.bf16 %v762_v44, %v758_v43  ;;  %v759_v54 = vld [vmem:[#allocation5 + $0x850] sm:$0xff]  ;;  %v793_v43 = vld [vmem:[#allocation5 + $0x960] sm:$0xff] }
 0x147   : > { %3798 = vmatpush1.bf16.msra.mxu1 %v3797_v57  ;;  %1105 = vmatprep.mubr.f32.mxu0 %v473_v60  ;;  %v766_v57 = vld [vmem:[#allocation5 + $0x888] sm:$0xff]  ;;  %v3817_v63 = vpack.c.bf16 %v763_v55, %v759_v54  ;;  %v419_v44 = vld [vmem:[%s5042_s22 + $0x130] sm:$0xff]  ;;  %v804_v54 = vld [vmem:[#allocation5 + $0x9b8] sm:$0xff] }
 0x148   : > { %1749 = vmatprep.mubr.f32.mxu1 %v473_v60  ;;  %3576 = vmatprep.subr.bf16.mxu0 %v3575_v61  ;;  %v3593_v60 = vpack.c.bf16 %v761_v51, %v757_v50  ;;  %v768_v61 = vld [vmem:[#allocation5 + $0x898] sm:$0xff]  ;;  %v802_v50 = vld [vmem:[#allocation5 + $0x9a8] sm:$0xff] }
 0x149   : > { %1106 = vmatmul.mubr.f32.gmra.mrb[26].mxu0 %v472_v3  ;;  %3800 = vmatprep.subr.bf16.mxu1 %v3799_v0  ;;  %v765_v0 = vld [vmem:[#allocation5 + $0x880] sm:$0xff]  ;;  %v3819_v6 = vpack.c.bf16 %v772_v62, %v768_v61  ;;  %v418_v51 = vld [vmem:[%s5042_s22 + $0x128] sm:$0xff]  ;;  %v803_v61 = vld [vmem:[#allocation5 + $0x9b0] sm:$0xff] }
 0x14a   : > { %1750 = vmatmul.mubr.f32.gmra.mrb[26].mxu1 %v472_v3  ;;  %3578 = vmatpush1.bf16.msra.mxu0 %v3577_v4  ;;  %v3595_v3 = vpack.c.bf16 %v770_v58, %v766_v57  ;;  %v767_v4 = vld [vmem:[#allocation5 + $0x890] sm:$0xff]  ;;  %v801_v57 = vld [vmem:[#allocation5 + $0x9a0] sm:$0xff]  ;;  %v426_v58 = vld [vmem:[%s5042_s22 + $0x168] sm:$0xff] }
 0x14b   : > { %3802 = vmatpush1.bf16.msra.mxu1 %v3801_v7  ;;  %1111 = vmatprep.mubr.f32.mxu0 %v480_v10  ;;  %v774_v7 = vld [vmem:[#allocation5 + $0x8c8] sm:$0xff]  ;;  %v3821_v13 = vpack.c.bf16 %v771_v5, %v767_v4  ;;  %v812_v4 = vld [vmem:[#allocation5 + $0x9f8] sm:$0xff] }
 0x14c   : > { %1755 = vmatprep.mubr.f32.mxu1 %v480_v10  ;;  %3580 = vmatprep.subr.bf16.mxu0 %v3579_v11  ;;  %v3597_v10 = vpack.c.bf16 %v769_v1, %v765_v0  ;;  %v776_v11 = vld [vmem:[#allocation5 + $0x8d8] sm:$0xff]  ;;  %v810_v0 = vld [vmem:[#allocation5 + $0x9e8] sm:$0xff]  ;;  %v425_v1 = vld [vmem:[%s5042_s22 + $0x160] sm:$0xff] }
 0x14d   : > { %1112 = vmatmul.mubr.f32.gmra.mrb[28].mxu0 %v479_v17  ;;  %3804 = vmatprep.subr.bf16.mxu1 %v3803_v14  ;;  %v773_v14 = vld [vmem:[#allocation5 + $0x8c0] sm:$0xff]  ;;  %v3823_v20 = vpack.c.bf16 %v780_v12, %v776_v11  ;;  %v811_v11 = vld [vmem:[#allocation5 + $0x9f0] sm:$0xff] }
 0x14e   : > { %1756 = vmatmul.mubr.f32.gmra.mrb[28].mxu1 %v479_v17  ;;  %3582 = vmatpush1.bf16.msra.mxu0 %v3581_v18  ;;  %v3599_v17 = vpack.c.bf16 %v778_v8, %v774_v7  ;;  %v775_v18 = vld [vmem:[#allocation5 + $0x8d0] sm:$0xff]  ;;  %v809_v7 = vld [vmem:[#allocation5 + $0x9e0] sm:$0xff] }
 0x14f   : > { %3806 = vmatpush1.bf16.msra.mxu1 %v3805_v21  ;;  %1117 = vmatprep.mubr.f32.mxu0 %v487_v24  ;;  %v782_v21 = vld [vmem:[#allocation5 + $0x908] sm:$0xff]  ;;  %v3825_v27 = vpack.c.bf16 %v779_v19, %v775_v18  ;;  %v433_v8 = vld [vmem:[%s5042_s22 + $0x1a0] sm:$0xff]  ;;  %v820_v18 = vld [vmem:[#allocation5 + $0xa38] sm:$0xff] }
 0x150   : > { %1761 = vmatprep.mubr.f32.mxu1 %v487_v24  ;;  %3584 = vmatprep.subr.bf16.mxu0 %v3583_v25  ;;  %v3601_v24 = vpack.c.bf16 %v777_v15, %v773_v14  ;;  %v784_v25 = vld [vmem:[#allocation5 + $0x918] sm:$0xff]  ;;  %v818_v14 = vld [vmem:[#allocation5 + $0xa28] sm:$0xff] }
 0x151   : > { %1118 = vmatmul.mubr.f32.gmra.mrb[30].mxu0 %v486_v31  ;;  %3808 = vmatprep.subr.bf16.mxu1 %v3807_v28  ;;  %v781_v28 = vld [vmem:[#allocation5 + $0x900] sm:$0xff]  ;;  %v3827_v34 = vpack.c.bf16 %v788_v26, %v784_v25  ;;  %v432_v15 = vld [vmem:[%s5042_s22 + $0x198] sm:$0xff]  ;;  %v819_v25 = vld [vmem:[#allocation5 + $0xa30] sm:$0xff] }
 0x152   : > { %1762 = vmatmul.mubr.f32.gmra.mrb[30].mxu1 %v486_v31  ;;  %3586 = vmatpush1.bf16.msra.mxu0 %v3585_v32  ;;  %v3603_v31 = vpack.c.bf16 %v786_v22, %v782_v21  ;;  %v783_v32 = vld [vmem:[#allocation5 + $0x910] sm:$0xff]  ;;  %v817_v21 = vld [vmem:[#allocation5 + $0xa20] sm:$0xff]  ;;  %v440_v22 = vld [vmem:[%s5042_s22 + $0x1d8] sm:$0xff] }
 0x153   : > { %3810 = vmatpush1.bf16.msra.mxu1 %v3809_v35  ;;  %1188 = vmatprep.mubr.f32.mxu0 %v384_v38  ;;  %v790_v35 = vld [vmem:[#allocation5 + $0x948] sm:$0xff]  ;;  %v3829_v41 = vpack.c.bf16 %v787_v33, %v783_v32  ;;  %v828_v32 = vld [vmem:[#allocation5 + $0xa78] sm:$0xff] }
 0x154   : > { %1832 = vmatprep.mubr.f32.mxu1 %v384_v38  ;;  %3588 = vmatprep.subr.bf16.mxu0 %v3587_v39  ;;  %v3605_v38 = vpack.c.bf16 %v785_v29, %v781_v28  ;;  %v792_v39 = vld [vmem:[#allocation5 + $0x958] sm:$0xff]  ;;  %v826_v28 = vld [vmem:[#allocation5 + $0xa68] sm:$0xff]  ;;  %v439_v29 = vld [vmem:[%s5042_s22 + $0x1d0] sm:$0xff] }
 0x155   : > { %1189 = vmatmul.mubr.f32.vlgmr.msra.gmra.mrb[0].mxu0 %v383_v45  ;;  %3812 = vmatprep.subr.bf16.mxu1 %v3811_v42  ;;  %v789_v42 = vld [vmem:[#allocation5 + $0x940] sm:$0xff]  ;;  %v3831_v48 = vpack.c.bf16 %v796_v40, %v792_v39  ;;  %v827_v39 = vld [vmem:[#allocation5 + $0xa70] sm:$0xff] }
 0x156   : > { %1833 = vmatmul.mubr.f32.vlgmr.msra.gmra.mrb[0].mxu1 %v383_v45  ;;  %3590 = vmatpush1.bf16.msra.mxu0 %v3589_v46  ;;  %v3607_v45 = vpack.c.bf16 %v794_v36, %v790_v35  ;;  %v791_v46 = vld [vmem:[#allocation5 + $0x950] sm:$0xff]  ;;  %v825_v35 = vld [vmem:[#allocation5 + $0xa60] sm:$0xff] }
 0x157   : > { %3814 = vmatpush1.bf16.msra.mxu1 %v3813_v49  ;;  %1194 = vmatprep.mubr.f32.mxu0 %v391_v52  ;;  %v798_v49 = vld [vmem:[#allocation5 + $0x988] sm:$0xff]  ;;  %v3833_v55 = vpack.c.bf16 %v795_v47, %v791_v46  ;;  %v447_v36 = vld [vmem:[%s5042_s22 + $0x210] sm:$0xff]  ;;  %v836_v46 = vld [vmem:[#allocation5 + $0xab8] sm:$0xff] }
 0x158   : > { %1838 = vmatprep.mubr.f32.mxu1 %v391_v52  ;;  %3592 = vmatprep.subr.bf16.mxu0 %v3591_v53  ;;  %v3609_v52 = vpack.c.bf16 %v793_v43, %v789_v42  ;;  %v800_v53 = vld [vmem:[#allocation5 + $0x998] sm:$0xff]  ;;  %v834_v42 = vld [vmem:[#allocation5 + $0xaa8] sm:$0xff] }
 0x159   : > { %1195 = vmatmul.mubr.f32.gmra.mrb[2].mxu0 %v390_v59  ;;  %3816 = vmatprep.subr.bf16.mxu1 %v3815_v56  ;;  %v797_v56 = vld [vmem:[#allocation5 + $0x980] sm:$0xff]  ;;  %v3835_v62 = vpack.c.bf16 %v804_v54, %v800_v53  ;;  %v446_v43 = vld [vmem:[%s5042_s22 + $0x208] sm:$0xff]  ;;  %v835_v53 = vld [vmem:[#allocation5 + $0xab0] sm:$0xff] }
 0x15a   : > { %1839 = vmatmul.mubr.f32.gmra.mrb[2].mxu1 %v390_v59  ;;  %3594 = vmatpush1.bf16.msra.mxu0 %v3593_v60  ;;  %v3611_v59 = vpack.c.bf16 %v802_v50, %v798_v49  ;;  %v799_v60 = vld [vmem:[#allocation5 + $0x990] sm:$0xff]  ;;  %v833_v49 = vld [vmem:[#allocation5 + $0xaa0] sm:$0xff]  ;;  %v454_v50 = vld [vmem:[%s5042_s22 + $0x248] sm:$0xff] }
 0x15b   : > { %3818 = vmatpush1.bf16.msra.mxu1 %v3817_v63  ;;  %1200 = vmatprep.mubr.f32.mxu0 %v398_v2  ;;  %v806_v63 = vld [vmem:[#allocation5 + $0x9c8] sm:$0xff]  ;;  %v3837_v5 = vpack.c.bf16 %v803_v61, %v799_v60  ;;  %v844_v60 = vld [vmem:[#allocation5 + $0xaf8] sm:$0xff] }
 0x15c   : > { %1844 = vmatprep.mubr.f32.mxu1 %v398_v2  ;;  %3596 = vmatprep.subr.bf16.mxu0 %v3595_v3  ;;  %v3613_v2 = vpack.c.bf16 %v801_v57, %v797_v56  ;;  %v808_v3 = vld [vmem:[#allocation5 + $0x9d8] sm:$0xff]  ;;  %v842_v56 = vld [vmem:[#allocation5 + $0xae8] sm:$0xff]  ;;  %v453_v57 = vld [vmem:[%s5042_s22 + $0x240] sm:$0xff] }
 0x15d   : > { %1201 = vmatmul.mubr.f32.gmra.mrb[4].mxu0 %v397_v9  ;;  %3820 = vmatprep.subr.bf16.mxu1 %v3819_v6  ;;  %v805_v6 = vld [vmem:[#allocation5 + $0x9c0] sm:$0xff]  ;;  %v3839_v12 = vpack.c.bf16 %v812_v4, %v808_v3  ;;  %v843_v3 = vld [vmem:[#allocation5 + $0xaf0] sm:$0xff] }
 0x15e   : > { %1845 = vmatmul.mubr.f32.gmra.mrb[4].mxu1 %v397_v9  ;;  %3598 = vmatpush1.bf16.msra.mxu0 %v3597_v10  ;;  %v3615_v9 = vpack.c.bf16 %v810_v0, %v806_v63  ;;  %v807_v10 = vld [vmem:[#allocation5 + $0x9d0] sm:$0xff]  ;;  %v841_v63 = vld [vmem:[#allocation5 + $0xae0] sm:$0xff] }
 0x15f   : > { %3822 = vmatpush1.bf16.msra.mxu1 %v3821_v13  ;;  %1206 = vmatprep.mubr.f32.mxu0 %v405_v16  ;;  %v814_v13 = vld [vmem:[#allocation5 + $0xa08] sm:$0xff]  ;;  %v3841_v19 = vpack.c.bf16 %v811_v11, %v807_v10  ;;  %v461_v0 = vld [vmem:[%s5042_s22 + $0x280] sm:$0xff]  ;;  %v852_v10 = vld [vmem:[#allocation5 + $0xb38] sm:$0xff] }
 0x160   : > { %1850 = vmatprep.mubr.f32.mxu1 %v405_v16  ;;  %3600 = vmatprep.subr.bf16.mxu0 %v3599_v17  ;;  %v3617_v16 = vpack.c.bf16 %v809_v7, %v805_v6  ;;  %v816_v17 = vld [vmem:[#allocation5 + $0xa18] sm:$0xff]  ;;  %v850_v6 = vld [vmem:[#allocation5 + $0xb28] sm:$0xff] }
 0x161   : > { %1207 = vmatmul.mubr.f32.gmra.mrb[6].mxu0 %v404_v23  ;;  %3824 = vmatprep.subr.bf16.mxu1 %v3823_v20  ;;  %v813_v20 = vld [vmem:[#allocation5 + $0xa00] sm:$0xff]  ;;  %v3843_v26 = vpack.c.bf16 %v820_v18, %v816_v17  ;;  %v460_v7 = vld [vmem:[%s5042_s22 + $0x278] sm:$0xff]  ;;  %v851_v17 = vld [vmem:[#allocation5 + $0xb30] sm:$0xff] }
 0x162   : > { %1851 = vmatmul.mubr.f32.gmra.mrb[6].mxu1 %v404_v23  ;;  %3602 = vmatpush1.bf16.msra.mxu0 %v3601_v24  ;;  %v3619_v23 = vpack.c.bf16 %v818_v14, %v814_v13  ;;  %v815_v24 = vld [vmem:[#allocation5 + $0xa10] sm:$0xff]  ;;  %v849_v13 = vld [vmem:[#allocation5 + $0xb20] sm:$0xff]  ;;  %v468_v14 = vld [vmem:[%s5042_s22 + $0x2b8] sm:$0xff] }
 0x163   : > { %3826 = vmatpush1.bf16.msra.mxu1 %v3825_v27  ;;  %1212 = vmatprep.mubr.f32.mxu0 %v412_v30  ;;  %v822_v27 = vld [vmem:[#allocation5 + $0xa48] sm:$0xff]  ;;  %v3845_v33 = vpack.c.bf16 %v819_v25, %v815_v24  ;;  %v860_v24 = vld [vmem:[#allocation5 + $0xb78] sm:$0xff] }
 0x164   : > { %1856 = vmatprep.mubr.f32.mxu1 %v412_v30  ;;  %3604 = vmatprep.subr.bf16.mxu0 %v3603_v31  ;;  %v3621_v30 = vpack.c.bf16 %v817_v21, %v813_v20  ;;  %v824_v31 = vld [vmem:[#allocation5 + $0xa58] sm:$0xff]  ;;  %v858_v20 = vld [vmem:[#allocation5 + $0xb68] sm:$0xff]  ;;  %v467_v21 = vld [vmem:[%s5042_s22 + $0x2b0] sm:$0xff] }
 0x165   : > { %1213 = vmatmul.mubr.f32.gmra.mrb[8].mxu0 %v411_v37  ;;  %3828 = vmatprep.subr.bf16.mxu1 %v3827_v34  ;;  %v821_v34 = vld [vmem:[#allocation5 + $0xa40] sm:$0xff]  ;;  %v3847_v40 = vpack.c.bf16 %v828_v32, %v824_v31  ;;  %v859_v31 = vld [vmem:[#allocation5 + $0xb70] sm:$0xff] }
 0x166   : > { %1857 = vmatmul.mubr.f32.gmra.mrb[8].mxu1 %v411_v37  ;;  %3606 = vmatpush1.bf16.msra.mxu0 %v3605_v38  ;;  %v3623_v37 = vpack.c.bf16 %v826_v28, %v822_v27  ;;  %v823_v38 = vld [vmem:[#allocation5 + $0xa50] sm:$0xff]  ;;  %v857_v27 = vld [vmem:[#allocation5 + $0xb60] sm:$0xff] }
 0x167   : > { %3830 = vmatpush1.bf16.msra.mxu1 %v3829_v41  ;;  %1218 = vmatprep.mubr.f32.mxu0 %v419_v44  ;;  %v830_v41 = vld [vmem:[#allocation5 + $0xa88] sm:$0xff]  ;;  %v3849_v47 = vpack.c.bf16 %v827_v39, %v823_v38  ;;  %v475_v28 = vld [vmem:[%s5042_s22 + $0x2f0] sm:$0xff]  ;;  %v868_v38 = vld [vmem:[#allocation5 + $0xbb8] sm:$0xff] }
 0x168   : > { %1862 = vmatprep.mubr.f32.mxu1 %v419_v44  ;;  %3608 = vmatprep.subr.bf16.mxu0 %v3607_v45  ;;  %v3625_v44 = vpack.c.bf16 %v825_v35, %v821_v34  ;;  %v832_v45 = vld [vmem:[#allocation5 + $0xa98] sm:$0xff]  ;;  %v866_v34 = vld [vmem:[#allocation5 + $0xba8] sm:$0xff] }
 0x169   : > { %1219 = vmatmul.mubr.f32.gmra.mrb[10].mxu0 %v418_v51  ;;  %3832 = vmatprep.subr.bf16.mxu1 %v3831_v48  ;;  %v829_v48 = vld [vmem:[#allocation5 + $0xa80] sm:$0xff]  ;;  %v3851_v54 = vpack.c.bf16 %v836_v46, %v832_v45  ;;  %v474_v35 = vld [vmem:[%s5042_s22 + $0x2e8] sm:$0xff]  ;;  %v867_v45 = vld [vmem:[#allocation5 + $0xbb0] sm:$0xff] }
 0x16a   : > { %1863 = vmatmul.mubr.f32.gmra.mrb[10].mxu1 %v418_v51  ;;  %3610 = vmatpush1.bf16.msra.mxu0 %v3609_v52  ;;  %v3627_v51 = vpack.c.bf16 %v834_v42, %v830_v41  ;;  %v831_v52 = vld [vmem:[#allocation5 + $0xa90] sm:$0xff]  ;;  %v865_v41 = vld [vmem:[#allocation5 + $0xba0] sm:$0xff]  ;;  %v482_v42 = vld [vmem:[%s5042_s22 + $0x328] sm:$0xff] }
 0x16b   : > { %3834 = vmatpush1.bf16.msra.mxu1 %v3833_v55  ;;  %1224 = vmatprep.mubr.f32.mxu0 %v426_v58  ;;  %v838_v55 = vld [vmem:[#allocation5 + $0xac8] sm:$0xff]  ;;  %v3853_v61 = vpack.c.bf16 %v835_v53, %v831_v52  ;;  %v876_v52 = vld [vmem:[#allocation5 + $0xbf8] sm:$0xff] }
 0x16c   : > { %1868 = vmatprep.mubr.f32.mxu1 %v426_v58  ;;  %3612 = vmatprep.subr.bf16.mxu0 %v3611_v59  ;;  %v3629_v58 = vpack.c.bf16 %v833_v49, %v829_v48  ;;  %v840_v59 = vld [vmem:[#allocation5 + $0xad8] sm:$0xff]  ;;  %v874_v48 = vld [vmem:[#allocation5 + $0xbe8] sm:$0xff]  ;;  %v481_v49 = vld [vmem:[%s5042_s22 + $0x320] sm:$0xff] }
 0x16d   : > { %1225 = vmatmul.mubr.f32.gmra.mrb[12].mxu0 %v425_v1  ;;  %3836 = vmatprep.subr.bf16.mxu1 %v3835_v62  ;;  %v837_v62 = vld [vmem:[#allocation5 + $0xac0] sm:$0xff]  ;;  %v3855_v4 = vpack.c.bf16 %v844_v60, %v840_v59  ;;  %v875_v59 = vld [vmem:[#allocation5 + $0xbf0] sm:$0xff] }
 0x16e   : > { %1869 = vmatmul.mubr.f32.gmra.mrb[12].mxu1 %v425_v1  ;;  %3614 = vmatpush1.bf16.msra.mxu0 %v3613_v2  ;;  %v3631_v1 = vpack.c.bf16 %v842_v56, %v838_v55  ;;  %v839_v2 = vld [vmem:[#allocation5 + $0xad0] sm:$0xff]  ;;  %v873_v55 = vld [vmem:[#allocation5 + $0xbe0] sm:$0xff] }
 0x16f   : > { %3838 = vmatpush1.bf16.msra.mxu1 %v3837_v5  ;;  %1230 = vmatprep.mubr.f32.mxu0 %v433_v8  ;;  %v846_v5 = vld [vmem:[#allocation5 + $0xb08] sm:$0xff]  ;;  %v3857_v11 = vpack.c.bf16 %v843_v3, %v839_v2  ;;  %v489_v56 = vld [vmem:[%s5042_s22 + $0x360] sm:$0xff]  ;;  %v884_v2 = vld [vmem:[#allocation5 + $0xc38] sm:$0xff] }
 0x170   : > { %1874 = vmatprep.mubr.f32.mxu1 %v433_v8  ;;  %3616 = vmatprep.subr.bf16.mxu0 %v3615_v9  ;;  %v3633_v8 = vpack.c.bf16 %v841_v63, %v837_v62  ;;  %v848_v9 = vld [vmem:[#allocation5 + $0xb18] sm:$0xff]  ;;  %v882_v62 = vld [vmem:[#allocation5 + $0xc28] sm:$0xff] }
 0x171   : > { %1231 = vmatmul.mubr.f32.gmra.mrb[14].mxu0 %v432_v15  ;;  %3840 = vmatprep.subr.bf16.mxu1 %v3839_v12  ;;  %v845_v12 = vld [vmem:[#allocation5 + $0xb00] sm:$0xff]  ;;  %v3859_v18 = vpack.c.bf16 %v852_v10, %v848_v9  ;;  %v488_v63 = vld [vmem:[%s5042_s22 + $0x358] sm:$0xff]  ;;  %v883_v10 = vld [vmem:[#allocation5 + $0xc30] sm:$0xff] }
 0x172   : > { %1875 = vmatmul.mubr.f32.gmra.mrb[14].mxu1 %v432_v15  ;;  %3618 = vmatpush1.bf16.msra.mxu0 %v3617_v16  ;;  %v3635_v15 = vpack.c.bf16 %v850_v6, %v846_v5  ;;  %v847_v16 = vld [vmem:[#allocation5 + $0xb10] sm:$0xff]  ;;  %v881_v5 = vld [vmem:[#allocation5 + $0xc20] sm:$0xff]  ;;  %v386_v6 = vld [vmem:[%s5042_s22 + $0x28] sm:$0xff] }
 0x173   : > { %3842 = vmatpush1.bf16.msra.mxu1 %v3841_v19  ;;  %1236 = vmatprep.mubr.f32.mxu0 %v440_v22  ;;  %v854_v19 = vld [vmem:[#allocation5 + $0xb48] sm:$0xff]  ;;  %v3861_v25 = vpack.c.bf16 %v851_v17, %v847_v16  ;;  %v892_v16 = vld [vmem:[#allocation5 + $0xc78] sm:$0xff]  ;;  %v393_v17 = vld [vmem:[%s5042_s22 + $0x60] sm:$0xff] }
 0x174   : > { %1880 = vmatprep.mubr.f32.mxu1 %v440_v22  ;;  %3620 = vmatprep.subr.bf16.mxu0 %v3619_v23  ;;  %v3637_v22 = vpack.c.bf16 %v849_v13, %v845_v12  ;;  %v856_v23 = vld [vmem:[#allocation5 + $0xb58] sm:$0xff]  ;;  %v890_v12 = vld [vmem:[#allocation5 + $0xc68] sm:$0xff]  ;;  %v385_v13 = vld [vmem:[%s5042_s22 + $0x20] sm:$0xff] }
 0x175   : > { %1237 = vmatmul.mubr.f32.gmra.mrb[16].mxu0 %v439_v29  ;;  %3844 = vmatprep.subr.bf16.mxu1 %v3843_v26  ;;  %v853_v26 = vld [vmem:[#allocation5 + $0xb40] sm:$0xff]  ;;  %v3863_v32 = vpack.c.bf16 %v860_v24, %v856_v23  ;;  %v891_v24 = vld [vmem:[#allocation5 + $0xc70] sm:$0xff] }
 0x176   : > { %1881 = vmatmul.mubr.f32.gmra.mrb[16].mxu1 %v439_v29  ;;  %3622 = vmatpush1.bf16.msra.mxu0 %v3621_v30  ;;  %v3639_v29 = vpack.c.bf16 %v858_v20, %v854_v19  ;;  %v855_v30 = vld [vmem:[#allocation5 + $0xb50] sm:$0xff]  ;;  %v885_v20 = vld [vmem:[#allocation5 + $0xc40] sm:$0xff] }
 0x177   : > { %3846 = vmatpush1.bf16.msra.mxu1 %v3845_v33  ;;  %1242 = vmatprep.mubr.f32.mxu0 %v447_v36  ;;  %v862_v33 = vld [vmem:[#allocation5 + $0xb88] sm:$0xff]  ;;  %v3865_v39 = vpack.c.bf16 %v859_v31, %v855_v30  ;;  %v400_v30 = vld [vmem:[%s5042_s22 + $0x98] sm:$0xff] }
 0x178   : > { %1886 = vmatprep.mubr.f32.mxu1 %v447_v36  ;;  %3624 = vmatprep.subr.bf16.mxu0 %v3623_v37  ;;  %v3641_v36 = vpack.c.bf16 %v857_v27, %v853_v26  ;;  %v864_v37 = vld [vmem:[#allocation5 + $0xb98] sm:$0xff]  ;;  %v898_v26 = vld [vmem:[#allocation5 + $0xca8] sm:$0xff] }
 0x179   : > { %1243 = vmatmul.mubr.f32.gmra.mrb[18].mxu0 %v446_v43  ;;  %3848 = vmatprep.subr.bf16.mxu1 %v3847_v40  ;;  %v861_v40 = vld [vmem:[#allocation5 + $0xb80] sm:$0xff]  ;;  %v3867_v46 = vpack.c.bf16 %v868_v38, %v864_v37  ;;  %v392_v27 = vld [vmem:[%s5042_s22 + $0x58] sm:$0xff]  ;;  %v899_v38 = vld [vmem:[#allocation5 + $0xcb0] sm:$0xff] }
 0x17a   : > { %1887 = vmatmul.mubr.f32.gmra.mrb[18].mxu1 %v446_v43  ;;  %3626 = vmatpush1.bf16.msra.mxu0 %v3625_v44  ;;  %v3643_v43 = vpack.c.bf16 %v866_v34, %v862_v33  ;;  %v863_v44 = vld [vmem:[#allocation5 + $0xb90] sm:$0xff]  ;;  %v893_v34 = vld [vmem:[#allocation5 + $0xc80] sm:$0xff] }
 0x17b   : > { %3850 = vmatpush1.bf16.msra.mxu1 %v3849_v47  ;;  %1248 = vmatprep.mubr.f32.mxu0 %v454_v50  ;;  %v870_v47 = vld [vmem:[#allocation5 + $0xbc8] sm:$0xff]  ;;  %v3869_v53 = vpack.c.bf16 %v867_v45, %v863_v44  ;;  %v407_v44 = vld [vmem:[%s5042_s22 + $0xd0] sm:$0xff] }
 0x17c   : > { %1892 = vmatprep.mubr.f32.mxu1 %v454_v50  ;;  %3628 = vmatprep.subr.bf16.mxu0 %v3627_v51  ;;  %v3645_v50 = vpack.c.bf16 %v865_v41, %v861_v40  ;;  %v872_v51 = vld [vmem:[#allocation5 + $0xbd8] sm:$0xff]  ;;  %v906_v40 = vld [vmem:[#allocation5 + $0xce8] sm:$0xff]  ;;  %v399_v41 = vld [vmem:[%s5042_s22 + $0x90] sm:$0xff] }
 0x17d   : > { %1249 = vmatmul.mubr.f32.gmra.mrb[20].mxu0 %v453_v57  ;;  %3852 = vmatprep.subr.bf16.mxu1 %v3851_v54  ;;  %v869_v54 = vld [vmem:[#allocation5 + $0xbc0] sm:$0xff]  ;;  %v3871_v60 = vpack.c.bf16 %v876_v52, %v872_v51  ;;  %v907_v52 = vld [vmem:[#allocation5 + $0xcf0] sm:$0xff] }
 0x17e   : > { %1893 = vmatmul.mubr.f32.gmra.mrb[20].mxu1 %v453_v57  ;;  %3630 = vmatpush1.bf16.msra.mxu0 %v3629_v58  ;;  %v3647_v57 = vpack.c.bf16 %v874_v48, %v870_v47  ;;  %v871_v58 = vld [vmem:[#allocation5 + $0xbd0] sm:$0xff]  ;;  %v901_v48 = vld [vmem:[#allocation5 + $0xcc0] sm:$0xff] }
 0x17f   : > { %3854 = vmatpush1.bf16.msra.mxu1 %v3853_v61  ;;  %1254 = vmatprep.mubr.f32.mxu0 %v461_v0  ;;  %v878_v61 = vld [vmem:[#allocation5 + $0xc08] sm:$0xff]  ;;  %v3873_v3 = vpack.c.bf16 %v875_v59, %v871_v58 }
 0x180   : > { %1898 = vmatprep.mubr.f32.mxu1 %v461_v0  ;;  %3632 = vmatprep.subr.bf16.mxu0 %v3631_v1  ;;  %v3649_v0 = vpack.c.bf16 %v873_v55, %v869_v54  ;;  %v880_v1 = vld [vmem:[#allocation5 + $0xc18] sm:$0xff]  ;;  %v914_v54 = vld [vmem:[#allocation5 + $0xd28] sm:$0xff] }
 0x181   : > { %1255 = vmatmul.mubr.f32.gmra.mrb[22].mxu0 %v460_v7  ;;  %3856 = vmatprep.subr.bf16.mxu1 %v3855_v4  ;;  %v877_v4 = vld [vmem:[#allocation5 + $0xc00] sm:$0xff]  ;;  %v3875_v9 = vpack.c.bf16 %v884_v2, %v880_v1  ;;  %v406_v55 = vld [vmem:[%s5042_s22 + $0xc8] sm:$0xff]  ;;  %v915_v2 = vld [vmem:[#allocation5 + $0xd30] sm:$0xff] }
 0x182   : > { %1899 = vmatmul.mubr.f32.gmra.mrb[22].mxu1 %v460_v7  ;;  %3634 = vmatpush1.bf16.msra.mxu0 %v3633_v8  ;;  %v3651_v7 = vpack.c.bf16 %v882_v62, %v878_v61  ;;  %v879_v8 = vld [vmem:[#allocation5 + $0xc10] sm:$0xff]  ;;  %v414_v58 = vld [vmem:[%s5042_s22 + $0x108] sm:$0xff]  ;;  %v909_v62 = vld [vmem:[#allocation5 + $0xd00] sm:$0xff] }
 0x183   : > { %3858 = vmatpush1.bf16.msra.mxu1 %v3857_v11  ;;  %1260 = vmatprep.mubr.f32.mxu0 %v468_v14  ;;  %v886_v11 = vld [vmem:[#allocation5 + $0xc48] sm:$0xff] }
 0x184   : > { %1904 = vmatprep.mubr.f32.mxu1 %v468_v14  ;;  %3636 = vmatprep.subr.bf16.mxu0 %v3635_v15  ;;  %v3653_v14 = vpack.c.bf16 %v881_v5, %v877_v4  ;;  %v888_v15 = vld [vmem:[#allocation5 + $0xc58] sm:$0xff]  ;;  %v3655_v19 = vpack.c.bf16 %v890_v12, %v886_v11  ;;  %v922_v4 = vld [vmem:[#allocation5 + $0xd68] sm:$0xff]  ;;  %v413_v5 = vld [vmem:[%s5042_s22 + $0x100] sm:$0xff] }
 0x185   : > { %1261 = vmatmul.mubr.f32.gmra.mrb[24].mxu0 %v467_v21  ;;  %3860 = vmatprep.subr.bf16.mxu1 %v3859_v18  ;;  %v3877_v18 = vpack.c.bf16 %v883_v10, %v879_v8  ;;  %v3879_v23 = vpack.c.bf16 %v892_v16, %v888_v15  ;;  %v421_v8 = vld [vmem:[%s5042_s22 + $0x140] sm:$0xff]  ;;  %v923_v16 = vld [vmem:[#allocation5 + $0xd70] sm:$0xff] }
 0x186   : > { %1905 = vmatmul.mubr.f32.gmra.mrb[24].mxu1 %v467_v21  ;;  %3638 = vmatpush1.bf16.msra.mxu0 %v3637_v22  ;;  %v889_v21 = vld [vmem:[#allocation5 + $0xc60] sm:$0xff]  ;;  %v887_v22 = vld [vmem:[#allocation5 + $0xc50] sm:$0xff] }
 0x187   : > { %3862 = vmatpush1.bf16.msra.mxu1 %v3861_v25  ;;  %1266 = vmatprep.mubr.f32.mxu0 %v475_v28  ;;  %v894_v25 = vld [vmem:[#allocation5 + $0xc88] sm:$0xff]  ;;  %v3657_v31 = vpack.c.bf16 %v889_v21, %v885_v20  ;;  %v917_v12 = vld [vmem:[#allocation5 + $0xd40] sm:$0xff]  ;;  %v928_v20 = vld [vmem:[#allocation5 + $0xd98] sm:$0xff] }
 0x188   : > { %1910 = vmatprep.mubr.f32.mxu1 %v475_v28  ;;  %3640 = vmatprep.subr.bf16.mxu0 %v3639_v29  ;;  %v896_v28 = vld [vmem:[#allocation5 + $0xc98] sm:$0xff]  ;;  %v3659_v33 = vpack.c.bf16 %v898_v26, %v894_v25  ;;  %v925_v26 = vld [vmem:[#allocation5 + $0xd80] sm:$0xff] }
 0x189   : > { %1267 = vmatmul.mubr.f32.gmra.mrb[26].mxu0 %v474_v35  ;;  %3864 = vmatprep.subr.bf16.mxu1 %v3863_v32  ;;  %v900_v29 = vld [vmem:[#allocation5 + $0xcb8] sm:$0xff]  ;;  %v3881_v32 = vpack.c.bf16 %v891_v24, %v887_v22 }
 0x18a   : > { %1911 = vmatmul.mubr.f32.gmra.mrb[26].mxu1 %v474_v35  ;;  %3642 = vmatpush1.bf16.msra.mxu0 %v3641_v36  ;;  %v897_v35 = vld [vmem:[#allocation5 + $0xca0] sm:$0xff]  ;;  %v895_v36 = vld [vmem:[#allocation5 + $0xc90] sm:$0xff]  ;;  %v3883_v37 = vpack.c.bf16 %v900_v29, %v896_v28  ;;  %v932_v21 = vld [vmem:[#allocation5 + $0xdb8] sm:$0xff] }
 0x18b   : > { %3866 = vmatpush1.bf16.msra.mxu1 %v3865_v39  ;;  %1272 = vmatprep.mubr.f32.mxu0 %v482_v42  ;;  %v902_v39 = vld [vmem:[#allocation5 + $0xcc8] sm:$0xff]  ;;  %v3661_v45 = vpack.c.bf16 %v897_v35, %v893_v34  ;;  %v428_v22 = vld [vmem:[%s5042_s22 + $0x178] sm:$0xff]  ;;  %v927_v28 = vld [vmem:[#allocation5 + $0xd90] sm:$0xff]  ;;  %v3899_v29 = vpack.c.bf16 %v932_v21, %v928_v20 }
 0x18c   : > { %1916 = vmatprep.mubr.f32.mxu1 %v482_v42  ;;  %3644 = vmatprep.subr.bf16.mxu0 %v3643_v43  ;;  %v904_v42 = vld [vmem:[#allocation5 + $0xcd8] sm:$0xff]  ;;  %v3663_v47 = vpack.c.bf16 %v906_v40, %v902_v39  ;;  %v933_v40 = vld [vmem:[#allocation5 + $0xdc0] sm:$0xff] }
 0x18d   : > { %1273 = vmatmul.mubr.f32.gmra.mrb[28].mxu0 %v481_v49  ;;  %3868 = vmatprep.subr.bf16.mxu1 %v3867_v46  ;;  %v908_v43 = vld [vmem:[#allocation5 + $0xcf8] sm:$0xff]  ;;  %v3885_v46 = vpack.c.bf16 %v899_v38, %v895_v36  ;;  %v435_v36 = vld [vmem:[%s5042_s22 + $0x1b0] sm:$0xff] }
 0x18e   : > { %1917 = vmatmul.mubr.f32.gmra.mrb[28].mxu1 %v481_v49  ;;  %3646 = vmatpush1.bf16.msra.mxu0 %v3645_v50  ;;  %v905_v49 = vld [vmem:[#allocation5 + $0xce0] sm:$0xff]  ;;  %v903_v50 = vld [vmem:[#allocation5 + $0xcd0] sm:$0xff]  ;;  %v3887_v51 = vpack.c.bf16 %v908_v43, %v904_v42  ;;  %v936_v34 = vld [vmem:[#allocation5 + $0xdd8] sm:$0xff] }
 0x18f   : > { %3870 = vmatpush1.bf16.msra.mxu1 %v3869_v53  ;;  %1278 = vmatprep.mubr.f32.mxu0 %v489_v56  ;;  %v910_v53 = vld [vmem:[#allocation5 + $0xd08] sm:$0xff]  ;;  %v3665_v59 = vpack.c.bf16 %v905_v49, %v901_v48  ;;  %v940_v35 = vld [vmem:[#allocation5 + $0xdf8] sm:$0xff]  ;;  %v935_v42 = vld [vmem:[#allocation5 + $0xdd0] sm:$0xff] }
 0x190   : > { %1922 = vmatprep.mubr.f32.mxu1 %v489_v56  ;;  %3648 = vmatprep.subr.bf16.mxu0 %v3647_v57  ;;  %v912_v56 = vld [vmem:[#allocation5 + $0xd18] sm:$0xff]  ;;  %v3667_v61 = vpack.c.bf16 %v914_v54, %v910_v53  ;;  %v3903_v43 = vpack.c.bf16 %v940_v35, %v936_v34  ;;  %v2363_v48 = vld [vmem:[#allocation8 + $0x180] sm:$0xff]  ;;  %v2364_v49 = vld [vmem:[#allocation8 + $0x188] sm:$0xff] }
 0x191   : > { %1279 = vmatmul.mubr.f32.gmra.mrb[30].mxu0 %v488_v63  ;;  %3872 = vmatprep.subr.bf16.mxu1 %v3871_v60  ;;  %v916_v57 = vld [vmem:[#allocation5 + $0xd38] sm:$0xff]  ;;  %v3889_v60 = vpack.c.bf16 %v907_v52, %v903_v50  ;;  %v442_v50 = vld [vmem:[%s5042_s22 + $0x1e8] sm:$0xff]  ;;  %v3939_v54 = vpack.c.bf16 %v2364_v49, %v2363_v48 }
 0x192   : > { %1923 = vmatmul.mubr.f32.gmra.mrb[30].mxu1 %v488_v63  ;;  %3650 = vmatpush1.bf16.msra.mxu0 %v3649_v0  ;;  %v913_v63 = vld [vmem:[#allocation5 + $0xd20] sm:$0xff]  ;;  %v911_v0 = vld [vmem:[#allocation5 + $0xd10] sm:$0xff]  ;;  %v3891_v1 = vpack.c.bf16 %v916_v57, %v912_v56  ;;  %v448_v57 = vld [vmem:[%s5042_s22 + $0x218] sm:$0xff] }
 0x193   : > { %3874 = vmatpush1.bf16.msra.mxu1 %v3873_v3  ;;  %1349 = vmatprep.mubr.f32.mxu0 %v386_v6  ;;  %v918_v3 = vld [vmem:[#allocation5 + $0xd48] sm:$0xff]  ;;  %v3893_v10 = vpack.c.bf16 %v915_v2, %v911_v0  ;;  %v449_v56 = vld [vmem:[%s5042_s22 + $0x220] sm:$0xff]  ;;  %v484_v2 = vld [vmem:[%s5042_s22 + $0x338] sm:$0xff] }
 0x194   : > { %1993 = vmatprep.mubr.f32.mxu1 %v386_v6  ;;  %3652 = vmatprep.subr.bf16.mxu0 %v3651_v7  ;;  %v920_v6 = vld [vmem:[#allocation5 + $0xd58] sm:$0xff]  ;;  %v3671_v11 = vpack.c.bf16 %v922_v4, %v918_v3  ;;  %v477_v0 = vld [vmem:[%s5042_s22 + $0x300] sm:$0xff]  ;;  %v483_v3 = vld [vmem:[%s5042_s22 + $0x330] sm:$0xff] }
 0x195   : > { %1350 = vmatmul.mubr.f32.vlgmr.msra.gmra.mrb[0].mxu0 %v385_v13  ;;  %3876 = vmatprep.subr.bf16.mxu1 %v3875_v9  ;;  %v924_v7 = vld [vmem:[#allocation5 + $0xd78] sm:$0xff]  ;;  %v3669_v9 = vpack.c.bf16 %v913_v63, %v909_v62  ;;  %v470_v62 = vld [vmem:[%s5042_s22 + $0x2c8] sm:$0xff]  ;;  %v469_v63 = vld [vmem:[%s5042_s22 + $0x2c0] sm:$0xff] }
 0x196   : > { %1994 = vmatmul.mubr.f32.vlgmr.msra.gmra.mrb[0].mxu1 %v385_v13  ;;  %3654 = vmatpush1.bf16.msra.mxu0 %v3653_v14  ;;  %v921_v13 = vld [vmem:[#allocation5 + $0xd60] sm:$0xff]  ;;  %v919_v14 = vld [vmem:[#allocation5 + $0xd50] sm:$0xff]  ;;  %v3895_v15 = vpack.c.bf16 %v924_v7, %v920_v6 }
 0x197   : > { %1355 = vmatprep.mubr.f32.mxu0 %v393_v17  ;;  %1999 = vmatprep.mubr.f32.mxu1 %v393_v17  ;;  %v926_v17 = vld [vmem:[#allocation5 + $0xd88] sm:$0xff]  ;;  %v3897_v24 = vpack.c.bf16 %v923_v16, %v919_v14  ;;  %v491_v4 = vld [vmem:[%s5042_s22 + $0x370] sm:$0xff]  ;;  %v2318_v20 = vld [vmem:[#allocation8 + $0x18] sm:$0xff] }
 0x198   : > { %3878 = vmatpush1.bf16.msra.mxu1 %v3877_v18  ;;  %3656 = vmatprep.subr.bf16.mxu0 %v3655_v19  ;;  %v930_v18 = vld [vmem:[#allocation5 + $0xda8] sm:$0xff]  ;;  %v420_v19 = vld [vmem:[%s5042_s22 + $0x138] sm:$0xff] }
 0x199   : > { %1356 = vmatmul.mubr.f32.gmra.mrb[2].mxu0 %v392_v27  ;;  %3880 = vmatprep.subr.bf16.mxu1 %v3879_v23  ;;  %v3673_v23 = vpack.c.bf16 %v921_v13, %v917_v12  ;;  %v3675_v25 = vpack.c.bf16 %v930_v18, %v926_v17  ;;  %v2315_v6 = vld [vmem:[#allocation8] sm:$0xff]  ;;  %v2316_v7 = vld [vmem:[#allocation8 + $0x8] sm:$0xff]  ;;  %v4749_v12 = vmov 0.0   ;;  %v2365_v14 = vld [vmem:[#allocation8 + $0x190] sm:$0xff] }
 0x19a   : > { %2000 = vmatmul.mubr.f32.gmra.mrb[2].mxu1 %v392_v27  ;;  %1361 = vmatprep.mubr.f32.mxu0 %v400_v30  ;;  %v929_v27 = vld [vmem:[#allocation5 + $0xda0] sm:$0xff]  ;;  %v387_v13 = vld [vmem:[%s5042_s22 + $0x30] sm:$0xff]  ;;  %v3909_v16 = vpack.c.bf16 %v2316_v7, %v2315_v6 }
 0x19b   : > { %2005 = vmatprep.mubr.f32.mxu1 %v400_v30  ;;  %3658 = vmatpush1.bf16.msra.mxu0 %v3657_v31  ;;  %v931_v30 = vld [vmem:[#allocation5 + $0xdb0] sm:$0xff]  ;;  %v934_v31 = vld [vmem:[#allocation5 + $0xdc8] sm:$0xff]  ;;  %v2354_v49 = vld [vmem:[#allocation8 + $0x138] sm:$0xff] }
 0x19c   : > { %3882 = vmatpush1.bf16.msra.mxu1 %v3881_v32  ;;  %3660 = vmatprep.subr.bf16.mxu0 %v3659_v33  ;;  %v938_v32 = vld [vmem:[#allocation5 + $0xde8] sm:$0xff]  ;;  %v427_v33 = vld [vmem:[%s5042_s22 + $0x170] sm:$0xff]  ;;  %v3901_v38 = vpack.c.bf16 %v931_v30, %v927_v28 }
 0x19d   : > { %1362 = vmatmul.mubr.f32.gmra.mrb[4].mxu0 %v399_v41  ;;  %3884 = vmatprep.subr.bf16.mxu1 %v3883_v37  ;;  %v3677_v37 = vpack.c.bf16 %v929_v27, %v925_v26  ;;  %v3679_v39 = vpack.c.bf16 %v938_v32, %v934_v31  ;;  %v2349_v21 = vld [vmem:[#allocation8 + $0x110] sm:$0xff]  ;;  %v394_v26 = vld [vmem:[%s5042_s22 + $0x68] sm:$0xff] }
 0x19e   : > { %2006 = vmatmul.mubr.f32.gmra.mrb[4].mxu1 %v399_v41  ;;  %1367 = vmatprep.mubr.f32.mxu0 %v407_v44  ;;  %v937_v41 = vld [vmem:[#allocation5 + $0xde0] sm:$0xff]  ;;  %v2368_v28 = vld [vmem:[#allocation8 + $0x1a8] sm:$0xff]  ;;  %v2325_v7 = vld [vmem:[#allocation8 + $0x50] sm:$0xff] }
 0x19f   : > { %2011 = vmatprep.mubr.f32.mxu1 %v407_v44  ;;  %3662 = vmatpush1.bf16.msra.mxu0 %v3661_v45  ;;  %v939_v44 = vld [vmem:[#allocation5 + $0xdf0] sm:$0xff]  ;;  %v2331_v45 = vld [vmem:[#allocation8 + $0x80] sm:$0xff] }
 0x1a0   : > { %3886 = vmatpush1.bf16.msra.mxu1 %v3885_v46  ;;  %3664 = vmatprep.subr.bf16.mxu0 %v3663_v47  ;;  %v2332_v46 = vld [vmem:[#allocation8 + $0x88] sm:$0xff]  ;;  %v3905_v52 = vpack.c.bf16 %v939_v44, %v935_v42  ;;  %v2367_v27 = vld [vmem:[#allocation8 + $0x1a0] sm:$0xff] }
 0x1a1   : > { %1368 = vmatmul.mubr.f32.gmra.mrb[6].mxu0 %v406_v55  ;;  %3888 = vmatprep.subr.bf16.mxu1 %v3887_v51  ;;  %v434_v47 = vld [vmem:[%s5042_s22 + $0x1a8] sm:$0xff]  ;;  %v3681_v51 = vpack.c.bf16 %v937_v41, %v933_v40  ;;  %v3907_v53 = vpack.c.bf16 %v2332_v46, %v2331_v45  ;;  %v3947_v35 = vpack.c.bf16 %v2368_v28, %v2367_v27  ;;  %v2369_v40 = vld [vmem:[#allocation8 + $0x1b0] sm:$0xff]  ;;  %v2370_v41 = vld [vmem:[#allocation8 + $0x1b8] sm:$0xff] }
 0x1a2   : > { %2012 = vmatmul.mubr.f32.gmra.mrb[6].mxu1 %v406_v55  ;;  %1373 = vmatprep.mubr.f32.mxu0 %v414_v58  ;;  %v441_v55 = vld [vmem:[%s5042_s22 + $0x1e0] sm:$0xff]  ;;  %v2321_v45 = vld [vmem:[#allocation8 + $0x30] sm:$0xff]  ;;  %v3951_v48 = vpack.c.bf16 %v2370_v41, %v2369_v40 }
 0x1a3   : > { %2017 = vmatprep.mubr.f32.mxu1 %v414_v58  ;;  %3666 = vmatpush1.bf16.msra.mxu0 %v3665_v59  ;;  %v456_v58 = vld [vmem:[%s5042_s22 + $0x258] sm:$0xff]  ;;  %v455_v59 = vld [vmem:[%s5042_s22 + $0x250] sm:$0xff]  ;;  %v2319_v32 = vld [vmem:[#allocation8 + $0x20] sm:$0xff] }
 0x1a4   : > { %3890 = vmatpush1.bf16.msra.mxu1 %v3889_v60  ;;  %3668 = vmatprep.subr.bf16.mxu0 %v3667_v61  ;;  %v463_v60 = vld [vmem:[%s5042_s22 + $0x290] sm:$0xff]  ;;  %v462_v61 = vld [vmem:[%s5042_s22 + $0x288] sm:$0xff]  ;;  %v2322_v46 = vld [vmem:[#allocation8 + $0x38] sm:$0xff] }
 0x1a5   : > { %1374 = vmatmul.mubr.f32.gmra.mrb[8].mxu0 %v413_v5  ;;  %3892 = vmatprep.subr.bf16.mxu1 %v3891_v1  ;;  %v476_v1 = vld [vmem:[%s5042_s22 + $0x2f8] sm:$0xff]  ;;  %v2351_v34 = vld [vmem:[#allocation8 + $0x120] sm:$0xff] }
 0x1a6   : > { %2018 = vmatmul.mubr.f32.gmra.mrb[8].mxu1 %v413_v5  ;;  %1379 = vmatprep.mubr.f32.mxu0 %v421_v8  ;;  %v490_v5 = vld [vmem:[%s5042_s22 + $0x368] sm:$0xff]  ;;  %v2346_v27 = vld [vmem:[#allocation8 + $0xf8] sm:$0xff]  ;;  %v2377_v41 = vld [vmem:[#allocation8 + $0x1f0] sm:$0xff] }
 0x1a7   : > { %2023 = vmatprep.mubr.f32.mxu1 %v421_v8  ;;  %3670 = vmatpush1.bf16.msra.mxu0 %v3669_v9  ;;  %v2347_v8 = vld [vmem:[#allocation8 + $0x100] sm:$0xff]  ;;  %v2348_v9 = vld [vmem:[#allocation8 + $0x108] sm:$0xff]  ;;  %v492_v40 = vld [vmem:[%s5042_s22 + $0x378] sm:$0xff] }
 0x1a8   : > { %3894 = vmatpush1.bf16.msra.mxu1 %v3893_v10  ;;  %3672 = vmatprep.subr.bf16.mxu0 %v3671_v11  ;;  %v2333_v10 = vld [vmem:[#allocation8 + $0x90] sm:$0xff]  ;;  %v2334_v11 = vld [vmem:[#allocation8 + $0x98] sm:$0xff]  ;;  %v3941_v17 = vpack.c.bf16 %v2348_v9, %v2347_v8 }
 0x1a9   : > { %1380 = vmatmul.mubr.f32.gmra.mrb[10].mxu0 %v420_v19  ;;  %3896 = vmatprep.subr.bf16.mxu1 %v3895_v15  ;;  %v2366_v15 = vld [vmem:[#allocation8 + $0x198] sm:$0xff]  ;;  %v3911_v18 = vpack.c.bf16 %v2334_v11, %v2333_v10  ;;  %v2357_v9 = vld [vmem:[#allocation8 + $0x150] sm:$0xff] }
 0x1aa   : > { %2024 = vmatmul.mubr.f32.gmra.mrb[10].mxu1 %v420_v19  ;;  %1385 = vmatprep.mubr.f32.mxu0 %v428_v22  ;;  %v2317_v19 = vld [vmem:[#allocation8 + $0x10] sm:$0xff]  ;;  %v2326_v8 = vld [vmem:[#allocation8 + $0x58] sm:$0xff] }
 0x1ab   : > { %2029 = vmatprep.mubr.f32.mxu1 %v428_v22  ;;  %3674 = vmatpush1.bf16.msra.mxu0 %v3673_v23  ;;  %v3943_v22 = vpack.c.bf16 %v2366_v15, %v2365_v14  ;;  %v2350_v23 = vld [vmem:[#allocation8 + $0x118] sm:$0xff]  ;;  %v2344_v14 = vld [vmem:[#allocation8 + $0xe8] sm:$0xff] }
 0x1ac   : > { %3898 = vmatpush1.bf16.msra.mxu1 %v3897_v24  ;;  %3676 = vmatprep.subr.bf16.mxu0 %v3675_v25  ;;  %v2335_v24 = vld [vmem:[#allocation8 + $0xa0] sm:$0xff]  ;;  %v2336_v25 = vld [vmem:[#allocation8 + $0xa8] sm:$0xff]  ;;  %v3945_v30 = vpack.c.bf16 %v2350_v23, %v2349_v21  ;;  %v2358_v11 = vld [vmem:[#allocation8 + $0x158] sm:$0xff] }
 0x1ad   : > { %1386 = vmatmul.mubr.f32.gmra.mrb[12].mxu0 %v427_v33  ;;  %3900 = vmatprep.subr.bf16.mxu1 %v3899_v29  ;;  %v3913_v29 = vpack.c.bf16 %v2318_v20, %v2317_v19  ;;  %v3915_v31 = vpack.c.bf16 %v2336_v25, %v2335_v24  ;;  %v422_v15 = vld [vmem:[%s5042_s22 + $0x148] sm:$0xff]  ;;  %v3961_v19 = vpack.c.bf16 %v2358_v11, %v2357_v9  ;;  %v429_v28 = vld [vmem:[%s5042_s22 + $0x180] sm:$0xff] }
 0x1ae   : > { %2030 = vmatmul.mubr.f32.gmra.mrb[12].mxu1 %v427_v33  ;;  %1391 = vmatprep.mubr.f32.mxu0 %v435_v36  ;;  %v2320_v33 = vld [vmem:[#allocation8 + $0x28] sm:$0xff]  ;;  %v2327_v21 = vld [vmem:[#allocation8 + $0x60] sm:$0xff] }
 0x1af   : > { %2035 = vmatprep.mubr.f32.mxu1 %v435_v36  ;;  %3678 = vmatpush1.bf16.msra.mxu0 %v3677_v37  ;;  %v2352_v36 = vld [vmem:[#allocation8 + $0x128] sm:$0xff]  ;;  %v2337_v37 = vld [vmem:[#allocation8 + $0xb0] sm:$0xff]  ;;  %v3917_v42 = vpack.c.bf16 %v2320_v33, %v2319_v32  ;;  %v2359_v23 = vld [vmem:[#allocation8 + $0x160] sm:$0xff] }
 0x1b0   : > { %3902 = vmatpush1.bf16.msra.mxu1 %v3901_v38  ;;  %3680 = vmatprep.subr.bf16.mxu0 %v3679_v39  ;;  %v2338_v38 = vld [vmem:[#allocation8 + $0xb8] sm:$0xff]  ;;  %v2360_v25 = vld [vmem:[#allocation8 + $0x168] sm:$0xff] }
 0x1b1   : > { %1392 = vmatmul.mubr.f32.gmra.mrb[14].mxu0 %v434_v47  ;;  %3904 = vmatprep.subr.bf16.mxu1 %v3903_v43  ;;  %v401_v39 = vld [vmem:[%s5042_s22 + $0xa0] sm:$0xff]  ;;  %v3949_v43 = vpack.c.bf16 %v2352_v36, %v2351_v34  ;;  %v3919_v44 = vpack.c.bf16 %v2338_v38, %v2337_v37  ;;  %v436_v32 = vld [vmem:[%s5042_s22 + $0x1b8] sm:$0xff]  ;;  %v443_v33 = vld [vmem:[%s5042_s22 + $0x1f0] sm:$0xff] }
 0x1b2   : > { %2036 = vmatmul.mubr.f32.gmra.mrb[14].mxu1 %v434_v47  ;;  %1397 = vmatprep.mubr.f32.mxu0 %v442_v50  ;;  %v2353_v47 = vld [vmem:[#allocation8 + $0x130] sm:$0xff]  ;;  %v450_v34 = vld [vmem:[%s5042_s22 + $0x228] sm:$0xff] }
 0x1b3   : > { %2041 = vmatprep.mubr.f32.mxu1 %v442_v50  ;;  %3682 = vmatpush1.bf16.msra.mxu0 %v3681_v51  ;;  %v2339_v50 = vld [vmem:[#allocation8 + $0xc0] sm:$0xff]  ;;  %v2340_v51 = vld [vmem:[#allocation8 + $0xc8] sm:$0xff]  ;;  %v464_v36 = vld [vmem:[%s5042_s22 + $0x298] sm:$0xff] }
 0x1b4   : > { %3906 = vmatpush1.bf16.msra.mxu1 %v3905_v52  ;;  %3908 = vmatprep.subr.bf16.mxu0 %v3907_v53  ;;  %v408_v52 = vld [vmem:[%s5042_s22 + $0xd8] sm:$0xff]  ;;  %v2371_v53 = vld [vmem:[#allocation8 + $0x1c0] sm:$0xff]  ;;  %v471_v37 = vld [vmem:[%s5042_s22 + $0x2d0] sm:$0xff] }
 0x1b5   : > { %1398 = vmatmul.mubr.f32.gmra.mrb[16].mxu0 %v441_v55  ;;  %3940 = vmatprep.subr.bf16.mxu1 %v3939_v54  ;;  %v2372_v54 = vld [vmem:[#allocation8 + $0x1c8] sm:$0xff] }
 0x1b6   : > { %2042 = vmatmul.mubr.f32.gmra.mrb[16].mxu1 %v441_v55  ;;  %1403 = vmatprep.mubr.f32.mxu0 %v449_v56  ;;  %v3921_v55 = vpack.c.bf16 %v2322_v46, %v2321_v45  ;;  %v478_v38 = vld [vmem:[%s5042_s22 + $0x308] sm:$0xff]  ;;  %v2361_v46 = vld [vmem:[#allocation8 + $0x170] sm:$0xff] }
 0x1b7   : > { %2047 = vmatprep.mubr.f32.mxu1 %v449_v56  ;;  %v3953_v56 = vpack.c.bf16 %v2354_v49, %v2353_v47 }
 0x1b9   : > { %1404 = vmatmul.mubr.f32.gmra.mrb[18].mxu0 %v448_v57 }
 0x1ba   : > { %2048 = vmatmul.mubr.f32.gmra.mrb[18].mxu1 %v448_v57  ;;  %1409 = vmatprep.mubr.f32.mxu0 %v456_v58  ;;  %v3923_v57 = vpack.c.bf16 %v2340_v51, %v2339_v50  ;;  %v2692_v50 = vld [vmem:[#allocation11] sm:$0xff]  ;;  %v2693_v51 = vld [vmem:[#allocation11 + $0x8] sm:$0xff] }
 0x1bb   : > { %2053 = vmatprep.mubr.f32.mxu1 %v456_v58  ;;  %v2323_v58 = vld [vmem:[#allocation8 + $0x40] sm:$0xff] }
 0x1bd   : > { %1410 = vmatmul.mubr.f32.gmra.mrb[20].mxu0 %v455_v59 }
 0x1be   : > { %2054 = vmatmul.mubr.f32.gmra.mrb[20].mxu1 %v455_v59  ;;  %1415 = vmatprep.mubr.f32.mxu0 %v463_v60  ;;  %v2324_v59 = vld [vmem:[#allocation8 + $0x48] sm:$0xff] }
 0x1bf   : > { %2059 = vmatprep.mubr.f32.mxu1 %v463_v60  ;;  %v2355_v60 = vld [vmem:[#allocation8 + $0x140] sm:$0xff] }
 0x1c1   : > { %1416 = vmatmul.mubr.f32.gmra.mrb[22].mxu0 %v462_v61 }
 0x1c2   : > { %2060 = vmatmul.mubr.f32.gmra.mrb[22].mxu1 %v462_v61  ;;  %1421 = vmatprep.mubr.f32.mxu0 %v470_v62  ;;  %v3955_v61 = vpack.c.bf16 %v2372_v54, %v2371_v53 }
 0x1c3   : > { %2065 = vmatprep.mubr.f32.mxu1 %v470_v62  ;;  %v2356_v62 = vld [vmem:[#allocation8 + $0x148] sm:$0xff] }
 0x1c5   : > { %1422 = vmatmul.mubr.f32.gmra.mrb[24].mxu0 %v469_v63 }
 0x1c6   : > { %2066 = vmatmul.mubr.f32.gmra.mrb[24].mxu1 %v469_v63  ;;  %1427 = vmatprep.mubr.f32.mxu0 %v477_v0  ;;  %v2341_v63 = vld [vmem:[#allocation8 + $0xd0] sm:$0xff] }
 0x1c7   : > { %2071 = vmatprep.mubr.f32.mxu1 %v477_v0  ;;  %v2342_v0 = vld [vmem:[#allocation8 + $0xd8] sm:$0xff] }
 0x1c8   : > { %v3927_v6 = vpack.c.bf16 %v2342_v0, %v2341_v63 }
 0x1c9   : > { %1428 = vmatmul.mubr.f32.gmra.mrb[26].mxu0 %v476_v1 }
 0x1ca   : > { %2072 = vmatmul.mubr.f32.gmra.mrb[26].mxu1 %v476_v1  ;;  %1433 = vmatprep.mubr.f32.mxu0 %v484_v2  ;;  %v415_v1 = vld [vmem:[%s5042_s22 + $0x110] sm:$0xff] }
 0x1cb   : > { %2077 = vmatprep.mubr.f32.mxu1 %v484_v2  ;;  %v2373_v2 = vld [vmem:[#allocation8 + $0x1d0] sm:$0xff] }
 0x1cd   : > { %1434 = vmatmul.mubr.f32.gmra.mrb[28].mxu0 %v483_v3 }
 0x1ce   : > { %2078 = vmatmul.mubr.f32.gmra.mrb[28].mxu1 %v483_v3  ;;  %1439 = vmatprep.mubr.f32.mxu0 %v491_v4  ;;  %v2374_v3 = vld [vmem:[#allocation8 + $0x1d8] sm:$0xff] }
 0x1cf   : > { %2083 = vmatprep.mubr.f32.mxu1 %v491_v4  ;;  %v3925_v4 = vpack.c.bf16 %v2324_v59, %v2323_v58  ;;  %v3959_v10 = vpack.c.bf16 %v2374_v3, %v2373_v2 }
 0x1d1   : > { %1440 = vmatmul.mubr.f32.gmra.mrb[30].mxu0 %v490_v5 }
 0x1d2   : > { %2084 = vmatmul.mubr.f32.gmra.mrb[30].mxu1 %v490_v5  ;;  %1510 = vmatprep.mubr.f32.mxu0 %v4749_v12  ;;  %v3957_v5 = vpack.c.bf16 %v2356_v62, %v2355_v60 }
 0x1d3   : > { %2154 = vmatprep.mubr.f32.mxu1 %v4749_v12 }
 0x1d5   : > { %1511 = vmatmul.mubr.f32.vlgmr.msra.gmra.mrb[0].mxu0 %v387_v13 }
 0x1d6   : > { %2155 = vmatmul.mubr.f32.vlgmr.msra.gmra.mrb[0].mxu1 %v387_v13  ;;  %1516 = vmatprep.mubr.f32.mxu0 %v4749_v12  ;;  %v2343_v13 = vld [vmem:[#allocation8 + $0xe0] sm:$0xff] }
 0x1d7   : > { %2160 = vmatprep.mubr.f32.mxu1 %v4749_v12  ;;  %3910 = vmatpush3.bf16.msra.mxu0 %v3909_v16  ;;  %v2375_v16 = vld [vmem:[#allocation8 + $0x1e0] sm:$0xff]  ;;  %v3931_v20 = vpack.c.bf16 %v2344_v14, %v2343_v13 }
 0x1d8   : > { %3942 = vmatpush3.bf16.msra.mxu1 %v3941_v17  ;;  %3912 = vmatprep.subr.bf16.mxu0 %v3911_v18  ;;  %v2376_v17 = vld [vmem:[#allocation8 + $0x1e8] sm:$0xff]  ;;  %v3929_v18 = vpack.c.bf16 %v2326_v8, %v2325_v7  ;;  %v2695_v7 = vld [vmem:[#allocation11 + $0x18] sm:$0xff] }
 0x1d9   : > { %1517 = vmatmul.mubr.f32.gmra.mrb[2].mxu0 %v394_v26  ;;  %3944 = vmatprep.subr.bf16.mxu1 %v3943_v22  ;;  %v2328_v22 = vld [vmem:[#allocation8 + $0x68] sm:$0xff]  ;;  %v3963_v24 = vpack.c.bf16 %v2376_v17, %v2375_v16 }
 0x1da   : > { %2161 = vmatmul.mubr.f32.gmra.mrb[2].mxu1 %v394_v26  ;;  %1522 = vmatprep.mubr.f32.mxu0 %v4749_v12  ;;  %v2345_v26 = vld [vmem:[#allocation8 + $0xf0] sm:$0xff] }
 0x1db   : > { %2166 = vmatprep.mubr.f32.mxu1 %v4749_v12  ;;  %3914 = vmatpush3.bf16.msra.mxu0 %v3913_v29  ;;  %v3933_v29 = vpack.c.bf16 %v2328_v22, %v2327_v21  ;;  %v2696_v22 = vld [vmem:[#allocation11 + $0x20] sm:$0xff] }
 0x1dc   : > { %3946 = vmatpush3.bf16.msra.mxu1 %v3945_v30  ;;  %3916 = vmatprep.subr.bf16.mxu0 %v3915_v31  ;;  %v3965_v30 = vpack.c.bf16 %v2360_v25, %v2359_v23  ;;  %v3935_v31 = vpack.c.bf16 %v2346_v27, %v2345_v26  ;;  %v2697_v23 = vld [vmem:[#allocation11 + $0x28] sm:$0xff] }
 0x1dd   : > { %1523 = vmatmul.mubr.f32.gmra.mrb[4].mxu0 %v401_v39  ;;  %3948 = vmatprep.subr.bf16.mxu1 %v3947_v35  ;;  %v457_v35 = vld [vmem:[%s5042_s22 + $0x260] sm:$0xff] }
 0x1de   : > { %2167 = vmatmul.mubr.f32.gmra.mrb[4].mxu1 %v401_v39  ;;  %1528 = vmatprep.mubr.f32.mxu0 %v4749_v12  ;;  %v485_v39 = vld [vmem:[%s5042_s22 + $0x340] sm:$0xff] }
 0x1df   : > { %2172 = vmatprep.mubr.f32.mxu1 %v4749_v12  ;;  %3918 = vmatpush3.bf16.msra.mxu0 %v3917_v42  ;;  %v2378_v42 = vld [vmem:[#allocation8 + $0x1f8] sm:$0xff] }
 0x1e0   : > { %3950 = vmatpush3.bf16.msra.mxu1 %v3949_v43  ;;  %3920 = vmatprep.subr.bf16.mxu0 %v3919_v44  ;;  %v2329_v43 = vld [vmem:[#allocation8 + $0x70] sm:$0xff]  ;;  %v2330_v44 = vld [vmem:[#allocation8 + $0x78] sm:$0xff]  ;;  %v3967_v45 = vpack.c.bf16 %v2378_v42, %v2377_v41 }
 0x1e1   : > { %1529 = vmatmul.mubr.f32.gmra.mrb[6].mxu0 %v408_v52  ;;  %3952 = vmatprep.subr.bf16.mxu1 %v3951_v48  ;;  %v3937_v47 = vpack.c.bf16 %v2330_v44, %v2329_v43  ;;  %v2362_v48 = vld [vmem:[#allocation8 + $0x178] sm:$0xff] }
 0x1e2   : > { %2173 = vmatmul.mubr.f32.gmra.mrb[6].mxu1 %v408_v52  ;;  %1534 = vmatprep.mubr.f32.mxu0 %v4749_v12  ;;  %v3969_v49 = vpack.c.bf16 %v2362_v48, %v2361_v46  ;;  %v3971_v52 = vpack.c.bf16 %v2693_v51, %v2692_v50 }
 0x1e3   : > { %2178 = vmatprep.mubr.f32.mxu1 %v4749_v12  ;;  %3922 = vmatpush3.bf16.msra.mxu0 %v3921_v55  ;;  %v941_v55 = vld [vmem:[#allocation7] sm:$0xf] }
 0x1e4   : > { %3954 = vmatpush3.bf16.msra.mxu1 %v3953_v56  ;;  %3924 = vmatprep.subr.bf16.mxu0 %v3923_v57 }
 0x1e5   : > { %1535 = vmatmul.mubr.f32.gmra.mrb[8].mxu0 %v415_v1  ;;  %3956 = vmatprep.subr.bf16.mxu1 %v3955_v61 }
 0x1e6   : > { %2179 = vmatmul.mubr.f32.gmra.mrb[8].mxu1 %v415_v1  ;;  %1540 = vmatprep.mubr.f32.mxu0 %v4749_v12 }
 0x1e7   : > { %2184 = vmatprep.mubr.f32.mxu1 %v4749_v12  ;;  %3926 = vmatpush3.bf16.msra.mxu0 %v3925_v4 }
 0x1e8   : > { %3958 = vmatpush3.bf16.msra.mxu1 %v3957_v5  ;;  %3928 = vmatprep.subr.bf16.mxu0 %v3927_v6  ;;  %v2694_v6 = vld [vmem:[#allocation11 + $0x10] sm:$0xff] }
 0x1e9   : > { %1541 = vmatmul.mubr.f32.gmra.mrb[10].mxu0 %v422_v15  ;;  %3960 = vmatprep.subr.bf16.mxu1 %v3959_v10  ;;  %v3975_v17 = vpack.c.bf16 %v2695_v7, %v2694_v6 }
 0x1ea   : > { %2185 = vmatmul.mubr.f32.gmra.mrb[10].mxu1 %v422_v15  ;;  %1546 = vmatprep.mubr.f32.mxu0 %v4749_v12 }
 0x1eb   : > { %2190 = vmatprep.mubr.f32.mxu1 %v4749_v12  ;;  %3930 = vmatpush3.bf16.msra.mxu0 %v3929_v18 }
 0x1ec   : > { %3962 = vmatpush3.bf16.msra.mxu1 %v3961_v19  ;;  %3932 = vmatprep.subr.bf16.mxu0 %v3931_v20 }
 0x1ed   : > { %1547 = vmatmul.mubr.f32.gmra.mrb[12].mxu0 %v429_v28  ;;  %3964 = vmatprep.subr.bf16.mxu1 %v3963_v24 }
 0x1ee   : > { %2191 = vmatmul.mubr.f32.gmra.mrb[12].mxu1 %v429_v28  ;;  %1552 = vmatprep.mubr.f32.mxu0 %v4749_v12 }
 0x1ef   : > { %2196 = vmatprep.mubr.f32.mxu1 %v4749_v12  ;;  %3934 = vmatpush3.bf16.msra.mxu0 %v3933_v29 }
 0x1f0   : > { %3966 = vmatpush3.bf16.msra.mxu1 %v3965_v30  ;;  %3936 = vmatprep.subr.bf16.mxu0 %v3935_v31 }
 0x1f1   : > { %1553 = vmatmul.mubr.f32.gmra.mrb[14].mxu0 %v436_v32  ;;  %3968 = vmatprep.subr.bf16.mxu1 %v3967_v45 }
 0x1f2   : > { %2197 = vmatmul.mubr.f32.gmra.mrb[14].mxu1 %v436_v32  ;;  %1558 = vmatprep.mubr.f32.mxu0 %v4749_v12  ;;  %v3979_v32 = vpack.c.bf16 %v2697_v23, %v2696_v22 }
 0x1f3   : > { %2202 = vmatprep.mubr.f32.mxu1 %v4749_v12  ;;  %3938 = vmatpush3.bf16.msra.mxu0 %v3937_v47 }
 0x1f4   : > { %3970 = vmatpush3.bf16.msra.mxu1 %v3969_v49  ;;  %3972 = vmatprep.subr.bf16.mxu0 %v3971_v52 }
 0x1f5   : > { %1559 = vmatmul.mubr.f32.gmra.mrb[16].mxu0 %v443_v33  ;;  %4003 = vmatprep.subr.bf16.mxu1 %v3971_v52 }
 0x1f6   : > { %2203 = vmatmul.mubr.f32.gmra.mrb[16].mxu1 %v443_v33  ;;  %1564 = vmatprep.mubr.f32.mxu0 %v4749_v12 }
 0x1f7   : > { %2208 = vmatprep.mubr.f32.mxu1 %v4749_v12 }
 0x1f9   : > { %1565 = vmatmul.mubr.f32.gmra.mrb[18].mxu0 %v450_v34 }
 0x1fa   : > { %2209 = vmatmul.mubr.f32.gmra.mrb[18].mxu1 %v450_v34  ;;  %1570 = vmatprep.mubr.f32.mxu0 %v4749_v12 }
 0x1fb   : > { %2214 = vmatprep.mubr.f32.mxu1 %v4749_v12 }
 0x1fd   : > { %1571 = vmatmul.mubr.f32.gmra.mrb[20].mxu0 %v457_v35 }
 0x1fe   : > { %2215 = vmatmul.mubr.f32.gmra.mrb[20].mxu1 %v457_v35  ;;  %1576 = vmatprep.mubr.f32.mxu0 %v4749_v12 }
 0x1ff   : > { %2220 = vmatprep.mubr.f32.mxu1 %v4749_v12 }
 0x201   : > { %1577 = vmatmul.mubr.f32.gmra.mrb[22].mxu0 %v464_v36 }
 0x202   : > { %2221 = vmatmul.mubr.f32.gmra.mrb[22].mxu1 %v464_v36  ;;  %1582 = vmatprep.mubr.f32.mxu0 %v4749_v12 }
 0x203   : > { %2226 = vmatprep.mubr.f32.mxu1 %v4749_v12 }
 0x205   : > { %1583 = vmatmul.mubr.f32.gmra.mrb[24].mxu0 %v471_v37 }
 0x206   : > { %2227 = vmatmul.mubr.f32.gmra.mrb[24].mxu1 %v471_v37  ;;  %1588 = vmatprep.mubr.f32.mxu0 %v4749_v12  ;;  %v2698_v37 = vld [vmem:[#allocation11 + $0x30] sm:$0xff] }
 0x207   : > { %2232 = vmatprep.mubr.f32.mxu1 %v4749_v12 }
 0x209   : > { %1589 = vmatmul.mubr.f32.gmra.mrb[26].mxu0 %v478_v38 }
 0x20a   : > { %2233 = vmatmul.mubr.f32.gmra.mrb[26].mxu1 %v478_v38  ;;  %1594 = vmatprep.mubr.f32.mxu0 %v4749_v12  ;;  %v2699_v38 = vld [vmem:[#allocation11 + $0x38] sm:$0xff] }
 0x20b   : > { %2238 = vmatprep.mubr.f32.mxu1 %v4749_v12  ;;  %v3983_v47 = vpack.c.bf16 %v2699_v38, %v2698_v37 }
 0x20d   : > { %1595 = vmatmul.mubr.f32.gmra.mrb[28].mxu0 %v485_v39 }
 0x20e   : > { %2239 = vmatmul.mubr.f32.gmra.mrb[28].mxu1 %v485_v39  ;;  %1600 = vmatprep.mubr.f32.mxu0 %v4749_v12 }
 0x20f   : > { %2244 = vmatprep.mubr.f32.mxu1 %v4749_v12  ;;  %v943_v12 = vlaneseq }
 0x211   : > { %1601 = vmatmul.mubr.f32.gmra.mrb[30].mxu0 %v492_v40  ;;  %v944_v53 = vshrl.u32 %v943_v12, 7 }
 0x212   : > { %2245 = vmatmul.mubr.f32.gmra.mrb[30].mxu1 %v492_v40 }
 0x213   : > { %v945_v54 = vsub.s32 0, %v944_v53  ;;  %v953_v56 = vsub.s32 2, %v944_v53  ;;  %v949_v57 = vsub.s32 1, %v944_v53  ;;  %v957_v58 = vsub.s32 3, %v944_v53  ;;  %v2701_v53 = vld [vmem:[#allocation11 + $0x48] sm:$0xff] }
 0x215   : > { %v5205_v59 = vrot.slane %v941_v55, %v945_v54  ;;  %v5207_v60 = vrot.slane %v941_v55, %v953_v56  ;;  %v5209_v61 = vrot.slane %v941_v55, %v949_v57  ;;  %v5211_v62 = vrot.slane %v941_v55, %v957_v58 }
 0x2a8   : > { %v1512_v63 = vpop.f32.mrb[0].mxu0 }
 0x2a9   : > { %v4019_v0 = vadd.f32 %v1512_v63, %v5205_v59  ;;  %v2156_v1 = vpop.f32.mrb[0].mxu1  ;;  %v1514_v2 = vpop.f32.mrb[1].mxu0 }
 0x2aa   : > { %v4051_v3 = vadd.f32 %v2156_v1, %v5207_v60  ;;  %v4020_v4 = vadd.f32 %v1514_v2, %v5209_v61  ;;  %v2158_v5 = vpop.f32.mrb[1].mxu1 }
 0x2ab   : > { %v4052_v8 = vadd.f32 %v2158_v5, %v5211_v62  ;;  %v2251_v11 = vmax.f32 %v4019_v0, 0.0 }
 0x2ac   : > { %v2252_v9 = vmax.f32 %v4020_v4, 0.0  ;;  %v1518_v10 = vpop.f32.mrb[2].mxu0  ;;  %v2253_v18 = vmax.f32 %v4051_v3, 0.0 }
 0x2ad   : > { %v2254_v13 = vmax.f32 %v4052_v8, 0.0  ;;  %v4021_v14 = vadd.f32 %v1518_v10, %v5205_v59  ;;  %v2162_v15 = vpop.f32.mrb[2].mxu1  ;;  %v1520_v16 = vpop.f32.mrb[3].mxu0 }
 0x2ae   : > { %v4053_v19 = vadd.f32 %v2162_v15, %v5207_v60  ;;  %v4022_v20 = vadd.f32 %v1520_v16, %v5209_v61  ;;  %v2164_v21 = vpop.f32.mrb[3].mxu1  ;;  %2450 = vmatprep.mubr.f32.mxu0 %v2252_v9 }
 0x2af   : > { %v4054_v24 = vadd.f32 %v2164_v21, %v5211_v62  ;;  %2595 = vmatprep.mubr.f32.mxu1 %v2254_v13  ;;  %2451 = vmatmul.mubr.f32.vlgmr.msra.gmra.mrb[32].mxu0 %v2251_v11  ;;  %v2255_v27 = vmax.f32 %v4021_v14, 0.0 }
 0x2b0   : > { %v2256_v25 = vmax.f32 %v4022_v20, 0.0  ;;  %2596 = vmatmul.mubr.f32.vlgmr.msra.gmra.mrb[32].mxu1 %v2253_v18  ;;  %v1524_v26 = vpop.f32.mrb[4].mxu0  ;;  %3974 = vmatpush3.bf16.msra.mxu0 %v3971_v52  ;;  %v2257_v33 = vmax.f32 %v4053_v19, 0.0 }
 0x2b1   : > { %v2258_v28 = vmax.f32 %v4054_v24, 0.0  ;;  %v4023_v29 = vadd.f32 %v1524_v26, %v5205_v59  ;;  %v2168_v30 = vpop.f32.mrb[4].mxu1  ;;  %v1526_v31 = vpop.f32.mrb[5].mxu0  ;;  %3976 = vmatprep.subr.bf16.mxu0 %v3975_v17  ;;  %4011 = vmatpush3.bf16.msra.mxu1 %v3971_v52  ;;  %v2700_v52 = vld [vmem:[#allocation11 + $0x40] sm:$0xff] }
 0x2b2   : > { %v4055_v34 = vadd.f32 %v2168_v30, %v5207_v60  ;;  %v4024_v35 = vadd.f32 %v1526_v31, %v5209_v61  ;;  %v2170_v36 = vpop.f32.mrb[5].mxu1  ;;  %2455 = vmatprep.mubr.f32.mxu0 %v2256_v25  ;;  %4004 = vmatprep.subr.bf16.mxu1 %v3975_v17  ;;  %v3987_v2 = vpack.c.bf16 %v2701_v53, %v2700_v52 }
 0x2b3   : > { %v4056_v39 = vadd.f32 %v2170_v36, %v5211_v62  ;;  %2600 = vmatprep.mubr.f32.mxu1 %v2258_v28  ;;  %2456 = vmatmul.mubr.f32.gmra.mrb[34].mxu0 %v2255_v27  ;;  %v2259_v42 = vmax.f32 %v4023_v29, 0.0 }
 0x2b4   : > { %v2260_v40 = vmax.f32 %v4024_v35, 0.0  ;;  %2601 = vmatmul.mubr.f32.gmra.mrb[34].mxu1 %v2257_v33  ;;  %v1530_v41 = vpop.f32.mrb[6].mxu0  ;;  %3978 = vmatpush3.bf16.msra.mxu0 %v3975_v17  ;;  %v2261_v48 = vmax.f32 %v4055_v34, 0.0 }
 0x2b5   : > { %v2262_v43 = vmax.f32 %v4056_v39, 0.0  ;;  %v4025_v44 = vadd.f32 %v1530_v41, %v5205_v59  ;;  %v2174_v45 = vpop.f32.mrb[6].mxu1  ;;  %v1532_v46 = vpop.f32.mrb[7].mxu0  ;;  %3980 = vmatprep.subr.bf16.mxu0 %v3979_v32  ;;  %4012 = vmatpush3.bf16.msra.mxu1 %v3975_v17 }
 0x2b6   : > { %v4057_v49 = vadd.f32 %v2174_v45, %v5207_v60  ;;  %v4026_v50 = vadd.f32 %v1532_v46, %v5209_v61  ;;  %v2176_v51 = vpop.f32.mrb[7].mxu1  ;;  %2460 = vmatprep.mubr.f32.mxu0 %v2260_v40  ;;  %4005 = vmatprep.subr.bf16.mxu1 %v3979_v32 }
 0x2b7   : > { %v4058_v54 = vadd.f32 %v2176_v51, %v5211_v62  ;;  %2605 = vmatprep.mubr.f32.mxu1 %v2262_v43  ;;  %2461 = vmatmul.mubr.f32.gmra.mrb[36].mxu0 %v2259_v42  ;;  %v2263_v57 = vmax.f32 %v4025_v44, 0.0 }
 0x2b8   : > { %v2264_v55 = vmax.f32 %v4026_v50, 0.0  ;;  %2606 = vmatmul.mubr.f32.gmra.mrb[36].mxu1 %v2261_v48  ;;  %v1536_v56 = vpop.f32.mrb[8].mxu0  ;;  %3982 = vmatpush3.bf16.msra.mxu0 %v3979_v32  ;;  %v2265_v3 = vmax.f32 %v4057_v49, 0.0 }
 0x2b9   : > { %v2266_v58 = vmax.f32 %v4058_v54, 0.0  ;;  %v4027_v63 = vadd.f32 %v1536_v56, %v5205_v59  ;;  %v2180_v0 = vpop.f32.mrb[8].mxu1  ;;  %v1538_v1 = vpop.f32.mrb[9].mxu0  ;;  %3984 = vmatprep.subr.bf16.mxu0 %v3983_v47  ;;  %4013 = vmatpush3.bf16.msra.mxu1 %v3979_v32 }
 0x2ba   : > { %v4059_v4 = vadd.f32 %v2180_v0, %v5207_v60  ;;  %v4028_v5 = vadd.f32 %v1538_v1, %v5209_v61  ;;  %v2182_v6 = vpop.f32.mrb[9].mxu1  ;;  %2465 = vmatprep.mubr.f32.mxu0 %v2264_v55  ;;  %4006 = vmatprep.subr.bf16.mxu1 %v3983_v47 }
 0x2bb   : > { %v4060_v7 = vadd.f32 %v2182_v6, %v5211_v62  ;;  %2610 = vmatprep.mubr.f32.mxu1 %v2266_v58  ;;  %2466 = vmatmul.mubr.f32.gmra.mrb[38].mxu0 %v2263_v57  ;;  %v2267_v10 = vmax.f32 %v4027_v63, 0.0 }
 0x2bc   : > { %v2268_v8 = vmax.f32 %v4028_v5, 0.0  ;;  %2611 = vmatmul.mubr.f32.gmra.mrb[38].mxu1 %v2265_v3  ;;  %v1542_v9 = vpop.f32.mrb[10].mxu0  ;;  %3986 = vmatpush3.bf16.msra.mxu0 %v3983_v47  ;;  %v2269_v16 = vmax.f32 %v4059_v4, 0.0 }
 0x2bd   : > { %v2270_v11 = vmax.f32 %v4060_v7, 0.0  ;;  %v4029_v13 = vadd.f32 %v1542_v9, %v5205_v59  ;;  %v2186_v14 = vpop.f32.mrb[10].mxu1  ;;  %v1544_v15 = vpop.f32.mrb[11].mxu0  ;;  %3988 = vmatprep.subr.bf16.mxu0 %v3987_v2  ;;  %4014 = vmatpush3.bf16.msra.mxu1 %v3983_v47 }
 0x2be   : > { %v4061_v17 = vadd.f32 %v2186_v14, %v5207_v60  ;;  %v4030_v18 = vadd.f32 %v1544_v15, %v5209_v61  ;;  %v2188_v19 = vpop.f32.mrb[11].mxu1  ;;  %2470 = vmatprep.mubr.f32.mxu0 %v2268_v8  ;;  %4007 = vmatprep.subr.bf16.mxu1 %v3987_v2 }
 0x2bf   : > { %v4062_v20 = vadd.f32 %v2188_v19, %v5211_v62  ;;  %2615 = vmatprep.mubr.f32.mxu1 %v2270_v11  ;;  %2471 = vmatmul.mubr.f32.gmra.mrb[40].mxu0 %v2267_v10  ;;  %v2271_v23 = vmax.f32 %v4029_v13, 0.0 }
 0x2c0   : > { %v2272_v21 = vmax.f32 %v4030_v18, 0.0  ;;  %2616 = vmatmul.mubr.f32.gmra.mrb[40].mxu1 %v2269_v16  ;;  %v1548_v22 = vpop.f32.mrb[12].mxu0  ;;  %3990 = vmatpush3.bf16.msra.mxu0 %v3987_v2  ;;  %v2273_v28 = vmax.f32 %v4061_v17, 0.0 }
 0x2c1   : > { %v2274_v24 = vmax.f32 %v4062_v20, 0.0  ;;  %v4031_v25 = vadd.f32 %v1548_v22, %v5205_v59  ;;  %v2192_v26 = vpop.f32.mrb[12].mxu1  ;;  %v1550_v27 = vpop.f32.mrb[13].mxu0  ;;  %4015 = vmatpush3.bf16.msra.mxu1 %v3987_v2 }
 0x2c2   : > { %v4063_v29 = vadd.f32 %v2192_v26, %v5207_v60  ;;  %v4032_v30 = vadd.f32 %v1550_v27, %v5209_v61  ;;  %v2194_v31 = vpop.f32.mrb[13].mxu1  ;;  %2475 = vmatprep.mubr.f32.mxu0 %v2272_v21 }
 0x2c3   : > { %v4064_v32 = vadd.f32 %v2194_v31, %v5211_v62  ;;  %2620 = vmatprep.mubr.f32.mxu1 %v2274_v24  ;;  %2476 = vmatmul.mubr.f32.gmra.mrb[42].mxu0 %v2271_v23  ;;  %v2275_v35 = vmax.f32 %v4031_v25, 0.0 }
 0x2c4   : > { %v2276_v33 = vmax.f32 %v4032_v30, 0.0  ;;  %2621 = vmatmul.mubr.f32.gmra.mrb[42].mxu1 %v2273_v28  ;;  %v1554_v34 = vpop.f32.mrb[14].mxu0  ;;  %v2277_v40 = vmax.f32 %v4063_v29, 0.0 }
 0x2c5   : > { %v2278_v36 = vmax.f32 %v4064_v32, 0.0  ;;  %v4033_v37 = vadd.f32 %v1554_v34, %v5205_v59  ;;  %v2198_v38 = vpop.f32.mrb[14].mxu1  ;;  %v1556_v39 = vpop.f32.mrb[15].mxu0 }
 0x2c6   : > { %v4065_v41 = vadd.f32 %v2198_v38, %v5207_v60  ;;  %v4034_v42 = vadd.f32 %v1556_v39, %v5209_v61  ;;  %v2200_v43 = vpop.f32.mrb[15].mxu1  ;;  %2480 = vmatprep.mubr.f32.mxu0 %v2276_v33 }
 0x2c7   : > { %v4066_v44 = vadd.f32 %v2200_v43, %v5211_v62  ;;  %2625 = vmatprep.mubr.f32.mxu1 %v2278_v36  ;;  %2481 = vmatmul.mubr.f32.gmra.mrb[44].mxu0 %v2275_v35  ;;  %v2279_v47 = vmax.f32 %v4033_v37, 0.0 }
 0x2c8   : > { %v2280_v45 = vmax.f32 %v4034_v42, 0.0  ;;  %2626 = vmatmul.mubr.f32.gmra.mrb[44].mxu1 %v2277_v40  ;;  %v1560_v46 = vpop.f32.mrb[16].mxu0  ;;  %v2281_v52 = vmax.f32 %v4065_v41, 0.0 }
 0x2c9   : > { %v2282_v48 = vmax.f32 %v4066_v44, 0.0  ;;  %v4035_v49 = vadd.f32 %v1560_v46, %v5205_v59  ;;  %v2204_v50 = vpop.f32.mrb[16].mxu1  ;;  %v1562_v51 = vpop.f32.mrb[17].mxu0 }
 0x2ca   : > { %v4067_v53 = vadd.f32 %v2204_v50, %v5207_v60  ;;  %v4036_v54 = vadd.f32 %v1562_v51, %v5209_v61  ;;  %v2206_v55 = vpop.f32.mrb[17].mxu1  ;;  %2485 = vmatprep.mubr.f32.mxu0 %v2280_v45 }
 0x2cb   : > { %v4068_v56 = vadd.f32 %v2206_v55, %v5211_v62  ;;  %2630 = vmatprep.mubr.f32.mxu1 %v2282_v48  ;;  %2486 = vmatmul.mubr.f32.gmra.mrb[46].mxu0 %v2279_v47  ;;  %v2283_v63 = vmax.f32 %v4035_v49, 0.0 }
 0x2cc   : > { %v2284_v57 = vmax.f32 %v4036_v54, 0.0  ;;  %2631 = vmatmul.mubr.f32.gmra.mrb[46].mxu1 %v2281_v52  ;;  %v1566_v58 = vpop.f32.mrb[18].mxu0  ;;  %v2285_v4 = vmax.f32 %v4067_v53, 0.0 }
 0x2cd   : > { %v2286_v0 = vmax.f32 %v4068_v56, 0.0  ;;  %v4037_v1 = vadd.f32 %v1566_v58, %v5205_v59  ;;  %v2210_v2 = vpop.f32.mrb[18].mxu1  ;;  %v1568_v3 = vpop.f32.mrb[19].mxu0 }
 0x2ce   : > { %v4069_v5 = vadd.f32 %v2210_v2, %v5207_v60  ;;  %v4038_v6 = vadd.f32 %v1568_v3, %v5209_v61  ;;  %v2212_v7 = vpop.f32.mrb[19].mxu1  ;;  %2490 = vmatprep.mubr.f32.mxu0 %v2284_v57 }
 0x2cf   : > { %v4070_v8 = vadd.f32 %v2212_v7, %v5211_v62  ;;  %2635 = vmatprep.mubr.f32.mxu1 %v2286_v0  ;;  %2491 = vmatmul.mubr.f32.gmra.mrb[48].mxu0 %v2283_v63  ;;  %v2287_v11 = vmax.f32 %v4037_v1, 0.0 }
 0x2d0   : > { %v2288_v9 = vmax.f32 %v4038_v6, 0.0  ;;  %2636 = vmatmul.mubr.f32.gmra.mrb[48].mxu1 %v2285_v4  ;;  %v1572_v10 = vpop.f32.mrb[20].mxu0  ;;  %v2289_v17 = vmax.f32 %v4069_v5, 0.0 }
 0x2d1   : > { %v2290_v13 = vmax.f32 %v4070_v8, 0.0  ;;  %v4039_v14 = vadd.f32 %v1572_v10, %v5205_v59  ;;  %v2216_v15 = vpop.f32.mrb[20].mxu1  ;;  %v1574_v16 = vpop.f32.mrb[21].mxu0 }
 0x2d2   : > { %v4071_v18 = vadd.f32 %v2216_v15, %v5207_v60  ;;  %v4040_v19 = vadd.f32 %v1574_v16, %v5209_v61  ;;  %v2218_v20 = vpop.f32.mrb[21].mxu1  ;;  %2495 = vmatprep.mubr.f32.mxu0 %v2288_v9 }
 0x2d3   : > { %v4072_v21 = vadd.f32 %v2218_v20, %v5211_v62  ;;  %2640 = vmatprep.mubr.f32.mxu1 %v2290_v13  ;;  %2496 = vmatmul.mubr.f32.gmra.mrb[50].mxu0 %v2287_v11  ;;  %v2291_v24 = vmax.f32 %v4039_v14, 0.0 }
 0x2d4   : > { %v2292_v22 = vmax.f32 %v4040_v19, 0.0  ;;  %2641 = vmatmul.mubr.f32.gmra.mrb[50].mxu1 %v2289_v17  ;;  %v1578_v23 = vpop.f32.mrb[22].mxu0  ;;  %v2293_v29 = vmax.f32 %v4071_v18, 0.0 }
 0x2d5   : > { %v2294_v25 = vmax.f32 %v4072_v21, 0.0  ;;  %v4041_v26 = vadd.f32 %v1578_v23, %v5205_v59  ;;  %v2222_v27 = vpop.f32.mrb[22].mxu1  ;;  %v1580_v28 = vpop.f32.mrb[23].mxu0 }
 0x2d6   : > { %v4073_v30 = vadd.f32 %v2222_v27, %v5207_v60  ;;  %v4042_v31 = vadd.f32 %v1580_v28, %v5209_v61  ;;  %v2224_v32 = vpop.f32.mrb[23].mxu1  ;;  %2500 = vmatprep.mubr.f32.mxu0 %v2292_v22  ;;  %v2703_v27 = vld [vmem:[#allocation11 + $0x58] sm:$0xff]  ;;  %v2705_v28 = vld [vmem:[#allocation11 + $0x68] sm:$0xff] }
 0x2d7   : > { %v4074_v33 = vadd.f32 %v2224_v32, %v5211_v62  ;;  %2645 = vmatprep.mubr.f32.mxu1 %v2294_v25  ;;  %2501 = vmatmul.mubr.f32.gmra.mrb[52].mxu0 %v2291_v24  ;;  %v2295_v36 = vmax.f32 %v4041_v26, 0.0 }
 0x2d8   : > { %v2296_v34 = vmax.f32 %v4042_v31, 0.0  ;;  %2646 = vmatmul.mubr.f32.gmra.mrb[52].mxu1 %v2293_v29  ;;  %v1584_v35 = vpop.f32.mrb[24].mxu0  ;;  %v2297_v41 = vmax.f32 %v4073_v30, 0.0  ;;  %v2706_v29 = vld [vmem:[#allocation11 + $0x70] sm:$0xff]  ;;  %v2707_v30 = vld [vmem:[#allocation11 + $0x78] sm:$0xff] }
 0x2d9   : > { %v2298_v37 = vmax.f32 %v4074_v33, 0.0  ;;  %v4043_v38 = vadd.f32 %v1584_v35, %v5205_v59  ;;  %v2228_v39 = vpop.f32.mrb[24].mxu1  ;;  %v1586_v40 = vpop.f32.mrb[25].mxu0  ;;  %v3999_v31 = vpack.c.bf16 %v2707_v30, %v2706_v29 }
 0x2da   : > { %v4075_v42 = vadd.f32 %v2228_v39, %v5207_v60  ;;  %v4044_v43 = vadd.f32 %v1586_v40, %v5209_v61  ;;  %v2230_v44 = vpop.f32.mrb[25].mxu1  ;;  %2505 = vmatprep.mubr.f32.mxu0 %v2296_v34  ;;  %v5277_v34 = vld [vmem:[#allocation10] ss:$0 sm:$0xff] }
 0x2db   : > { %v4076_v45 = vadd.f32 %v2230_v44, %v5211_v62  ;;  %2650 = vmatprep.mubr.f32.mxu1 %v2298_v37  ;;  %2506 = vmatmul.mubr.f32.gmra.mrb[54].mxu0 %v2295_v36  ;;  %v2299_v48 = vmax.f32 %v4043_v38, 0.0 }
 0x2dc   : > { %v2300_v46 = vmax.f32 %v4044_v43, 0.0  ;;  %2651 = vmatmul.mubr.f32.gmra.mrb[54].mxu1 %v2297_v41  ;;  %v1590_v47 = vpop.f32.mrb[26].mxu0  ;;  %v2301_v53 = vmax.f32 %v4075_v42, 0.0 }
 0x2dd   : > { %v2302_v49 = vmax.f32 %v4076_v45, 0.0  ;;  %v4045_v50 = vadd.f32 %v1590_v47, %v5205_v59  ;;  %v2234_v51 = vpop.f32.mrb[26].mxu1  ;;  %v1592_v52 = vpop.f32.mrb[27].mxu0 }
 0x2de   : > { %v4077_v54 = vadd.f32 %v2234_v51, %v5207_v60  ;;  %v4046_v55 = vadd.f32 %v1592_v52, %v5209_v61  ;;  %v2236_v56 = vpop.f32.mrb[27].mxu1  ;;  %2510 = vmatprep.mubr.f32.mxu0 %v2300_v46 }
 0x2df   : > { %v4078_v57 = vadd.f32 %v2236_v56, %v5211_v62  ;;  %2655 = vmatprep.mubr.f32.mxu1 %v2302_v49  ;;  %2511 = vmatmul.mubr.f32.gmra.mrb[56].mxu0 %v2299_v48  ;;  %v2303_v0 = vmax.f32 %v4045_v50, 0.0 }
 0x2e0   : > { %v2304_v58 = vmax.f32 %v4046_v55, 0.0  ;;  %2656 = vmatmul.mubr.f32.gmra.mrb[56].mxu1 %v2301_v53  ;;  %v1596_v63 = vpop.f32.mrb[28].mxu0  ;;  %v2305_v5 = vmax.f32 %v4077_v54, 0.0 }
 0x2e1   : > { %v2306_v1 = vmax.f32 %v4078_v57, 0.0  ;;  %v4047_v2 = vadd.f32 %v1596_v63, %v5205_v59  ;;  %v2240_v3 = vpop.f32.mrb[28].mxu1  ;;  %v1598_v4 = vpop.f32.mrb[29].mxu0 }
 0x2e2   : > { %v4079_v6 = vadd.f32 %v2240_v3, %v5207_v60  ;;  %v4048_v7 = vadd.f32 %v1598_v4, %v5209_v61  ;;  %v2242_v8 = vpop.f32.mrb[29].mxu1  ;;  %2515 = vmatprep.mubr.f32.mxu0 %v2304_v58 }
 0x2e3   : > { %v4080_v9 = vadd.f32 %v2242_v8, %v5211_v62  ;;  %2660 = vmatprep.mubr.f32.mxu1 %v2306_v1  ;;  %2516 = vmatmul.mubr.f32.gmra.mrb[58].mxu0 %v2303_v0  ;;  %v2307_v13 = vmax.f32 %v4047_v2, 0.0 }
 0x2e4   : > { %v2308_v10 = vmax.f32 %v4048_v7, 0.0  ;;  %2661 = vmatmul.mubr.f32.gmra.mrb[58].mxu1 %v2305_v5  ;;  %v1602_v11 = vpop.f32.mrb[30].mxu0  ;;  %v2309_v18 = vmax.f32 %v4079_v6, 0.0 }
 0x2e5   : > { %v2310_v14 = vmax.f32 %v4080_v9, 0.0  ;;  %v4049_v15 = vadd.f32 %v1602_v11, %v5205_v59  ;;  %v2246_v16 = vpop.f32.mrb[30].mxu1  ;;  %v1604_v17 = vpop.f32.mrb[31].mxu0  ;;  %v2702_v59 = vld [vmem:[#allocation11 + $0x50] sm:$0xff] }
 0x2e6   : > { %v4081_v19 = vadd.f32 %v2246_v16, %v5207_v60  ;;  %v4050_v20 = vadd.f32 %v1604_v17, %v5209_v61  ;;  %v2248_v21 = vpop.f32.mrb[31].mxu1  ;;  %2520 = vmatprep.mubr.f32.mxu0 %v2308_v10  ;;  %v3991_v60 = vpack.c.bf16 %v2703_v27, %v2702_v59  ;;  %v2704_v61 = vld [vmem:[#allocation11 + $0x60] sm:$0xff] }
 0x2e7   : > { %v4082_v22 = vadd.f32 %v2248_v21, %v5211_v62  ;;  %2665 = vmatprep.mubr.f32.mxu1 %v2310_v14  ;;  %2521 = vmatmul.mubr.f32.gmra.mrb[60].mxu0 %v2307_v13  ;;  %v2311_v24 = vmax.f32 %v4049_v15, 0.0  ;;  %v3995_v62 = vpack.c.bf16 %v2705_v28, %v2704_v61 }
 0x2e8   : > { %v2312_v23 = vmax.f32 %v4050_v20, 0.0  ;;  %2666 = vmatmul.mubr.f32.gmra.mrb[60].mxu1 %v2309_v18  ;;  %v2313_v26 = vmax.f32 %v4081_v19, 0.0  ;;  %3992 = vmatprep.subr.bf16.mxu0 %v3991_v60 }
 0x2e9   : > { %v2314_v25 = vmax.f32 %v4082_v22, 0.0  ;;  %4008 = vmatprep.subr.bf16.mxu1 %v3991_v60  ;;  %3994 = vmatpush3.bf16.msra.mxu0 %v3991_v60 }
 0x2ea   : > { %2525 = vmatprep.mubr.f32.mxu0 %v2312_v23  ;;  %4016 = vmatpush3.bf16.msra.mxu1 %v3991_v60 }
 0x2eb   : > { %2670 = vmatprep.mubr.f32.mxu1 %v2314_v25  ;;  %2526 = vmatmul.mubr.f32.gmra.mrb[62].mxu0 %v2311_v24 }
 0x2ec   : > { %2671 = vmatmul.mubr.f32.gmra.mrb[62].mxu1 %v2313_v26  ;;  %3996 = vmatprep.subr.bf16.mxu0 %v3995_v62 }
 0x2ed   : > { %4009 = vmatprep.subr.bf16.mxu1 %v3995_v62  ;;  %3998 = vmatpush3.bf16.msra.mxu0 %v3995_v62 }
 0x2ee   : > { %4017 = vmatpush3.bf16.msra.mxu1 %v3995_v62  ;;  %4000 = vmatprep.subr.bf16.mxu0 %v3999_v31 }
 0x2ef   : > { %4010 = vmatprep.subr.bf16.mxu1 %v3999_v31 }
 0x2f1   : > { %4002 = vmatpush3.bf16.msra.mxu0 %v3999_v31 }
 0x2f2   : > { %4018 = vmatpush3.bf16.msra.mxu1 %v3999_v31 }
 0x382   : > { %v3243_v32 = vpop.f32.mrb[32].mxu0 }
 0x383   : > { %v3323_v33 = vpop.f32.mrb[32].mxu1  ;;  %v3244_v35 = vpop.f32.mrb[33].mxu0 }
 0x384   : > { %v3245_v36 = vadd.f32 %v3244_v35, %v3243_v32  ;;  %v3324_v37 = vpop.f32.mrb[33].mxu1 }
 0x385   : > { %v3325_v38 = vadd.f32 %v3324_v37, %v3323_v33 }
 0x386   : > { %v2453_v39 = vadd.f32 %v3245_v36, %v5277_v34  ;;  %v3246_v40 = vpop.f32.mrb[34].mxu0 }
 0x387   : > { %v3326_v41 = vpop.f32.mrb[34].mxu1  ;;  %v3247_v42 = vpop.f32.mrb[35].mxu0 }
 0x388   : > { %v2598_v43 = vadd.f32 %v3325_v38, %v2453_v39  ;;  %v3248_v44 = vadd.f32 %v3247_v42, %v3246_v40  ;;  %v3327_v45 = vpop.f32.mrb[35].mxu1 }
 0x389   : > { %v3328_v46 = vadd.f32 %v3327_v45, %v3326_v41 }
 0x38a   : > { %v2676_v47 = vmax.f32 %v2598_v43, 0.0  ;;  %v2458_v48 = vadd.f32 %v3248_v44, %v5277_v34  ;;  %v3249_v49 = vpop.f32.mrb[36].mxu0 }
 0x38b   : > { %v3329_v50 = vpop.f32.mrb[36].mxu1  ;;  %v3250_v51 = vpop.f32.mrb[37].mxu0 }
 0x38c   : > { %v2603_v52 = vadd.f32 %v3328_v46, %v2458_v48  ;;  %v3251_v53 = vadd.f32 %v3250_v51, %v3249_v49  ;;  %v3330_v54 = vpop.f32.mrb[37].mxu1  ;;  %3435 = vmatprep.mubr.f32.mxu0 %v2676_v47 }
 0x38d   : > { %v3331_v55 = vadd.f32 %v3330_v54, %v3329_v50 }
 0x38e   : > { %v2677_v56 = vmax.f32 %v2603_v52, 0.0  ;;  %v2463_v57 = vadd.f32 %v3251_v53, %v5277_v34  ;;  %v3252_v58 = vpop.f32.mrb[38].mxu0 }
 0x38f   : > { %v3332_v63 = vpop.f32.mrb[38].mxu1  ;;  %v3253_v0 = vpop.f32.mrb[39].mxu0 }
 0x390   : > { %v2608_v1 = vadd.f32 %v3331_v55, %v2463_v57  ;;  %v3254_v2 = vadd.f32 %v3253_v0, %v3252_v58  ;;  %v3333_v3 = vpop.f32.mrb[39].mxu1  ;;  %3436 = vmatmul.mubr.f32.vlgmr.msra.gmra.mrb[64].mxu0 %v2677_v56 }
 0x391   : > { %v3334_v4 = vadd.f32 %v3333_v3, %v3332_v63 }
 0x392   : > { %v2678_v5 = vmax.f32 %v2608_v1, 0.0  ;;  %v2468_v6 = vadd.f32 %v3254_v2, %v5277_v34  ;;  %v3255_v7 = vpop.f32.mrb[40].mxu0 }
 0x393   : > { %v3335_v8 = vpop.f32.mrb[40].mxu1  ;;  %v3256_v9 = vpop.f32.mrb[41].mxu0 }
 0x394   : > { %v2613_v10 = vadd.f32 %v3334_v4, %v2468_v6  ;;  %v3257_v11 = vadd.f32 %v3256_v9, %v3255_v7  ;;  %v3336_v13 = vpop.f32.mrb[41].mxu1  ;;  %3438 = vmatprep.mubr.f32.mxu0 %v2678_v5 }
 0x395   : > { %v3337_v14 = vadd.f32 %v3336_v13, %v3335_v8 }
 0x396   : > { %v2679_v15 = vmax.f32 %v2613_v10, 0.0  ;;  %v2473_v16 = vadd.f32 %v3257_v11, %v5277_v34  ;;  %v3258_v17 = vpop.f32.mrb[42].mxu0 }
 0x397   : > { %v3338_v18 = vpop.f32.mrb[42].mxu1  ;;  %v3259_v19 = vpop.f32.mrb[43].mxu0 }
 0x398   : > { %v2618_v20 = vadd.f32 %v3337_v14, %v2473_v16  ;;  %v3260_v21 = vadd.f32 %v3259_v19, %v3258_v17  ;;  %v3339_v22 = vpop.f32.mrb[43].mxu1  ;;  %3439 = vmatmul.mubr.f32.gmra.mrb[66].mxu0 %v2679_v15 }
 0x399   : > { %v3340_v23 = vadd.f32 %v3339_v22, %v3338_v18 }
 0x39a   : > { %v2680_v24 = vmax.f32 %v2618_v20, 0.0  ;;  %v2478_v25 = vadd.f32 %v3260_v21, %v5277_v34  ;;  %v3261_v26 = vpop.f32.mrb[44].mxu0 }
 0x39b   : > { %v3341_v59 = vpop.f32.mrb[44].mxu1  ;;  %v3262_v27 = vpop.f32.mrb[45].mxu0 }
 0x39c   : > { %v2623_v60 = vadd.f32 %v3340_v23, %v2478_v25  ;;  %v3263_v61 = vadd.f32 %v3262_v27, %v3261_v26  ;;  %v3342_v28 = vpop.f32.mrb[45].mxu1  ;;  %3441 = vmatprep.mubr.f32.mxu0 %v2680_v24 }
 0x39d   : > { %v3343_v62 = vadd.f32 %v3342_v28, %v3341_v59 }
 0x39e   : > { %v2681_v29 = vmax.f32 %v2623_v60, 0.0  ;;  %v2483_v30 = vadd.f32 %v3263_v61, %v5277_v34  ;;  %v3264_v31 = vpop.f32.mrb[46].mxu0 }
 0x39f   : > { %v3344_v32 = vpop.f32.mrb[46].mxu1  ;;  %v3265_v33 = vpop.f32.mrb[47].mxu0 }
 0x3a0   : > { %v2628_v35 = vadd.f32 %v3343_v62, %v2483_v30  ;;  %v3266_v36 = vadd.f32 %v3265_v33, %v3264_v31  ;;  %v3345_v37 = vpop.f32.mrb[47].mxu1  ;;  %3442 = vmatmul.mubr.f32.gmra.mrb[68].mxu0 %v2681_v29 }
 0x3a1   : > { %v3346_v38 = vadd.f32 %v3345_v37, %v3344_v32 }
 0x3a2   : > { %v2682_v39 = vmax.f32 %v2628_v35, 0.0  ;;  %v2488_v40 = vadd.f32 %v3266_v36, %v5277_v34  ;;  %v3267_v41 = vpop.f32.mrb[48].mxu0 }
 0x3a3   : > { %v3347_v42 = vpop.f32.mrb[48].mxu1  ;;  %v3268_v43 = vpop.f32.mrb[49].mxu0 }
 0x3a4   : > { %v2633_v44 = vadd.f32 %v3346_v38, %v2488_v40  ;;  %v3269_v45 = vadd.f32 %v3268_v43, %v3267_v41  ;;  %v3348_v46 = vpop.f32.mrb[49].mxu1  ;;  %3444 = vmatprep.mubr.f32.mxu0 %v2682_v39 }
 0x3a5   : > { %v3349_v47 = vadd.f32 %v3348_v46, %v3347_v42 }
 0x3a6   : > { %v2683_v48 = vmax.f32 %v2633_v44, 0.0  ;;  %v2493_v49 = vadd.f32 %v3269_v45, %v5277_v34  ;;  %v3270_v50 = vpop.f32.mrb[50].mxu0 }
 0x3a7   : > { %v3350_v51 = vpop.f32.mrb[50].mxu1  ;;  %v3271_v52 = vpop.f32.mrb[51].mxu0 }
 0x3a8   : > { %v2638_v53 = vadd.f32 %v3349_v47, %v2493_v49  ;;  %v3272_v54 = vadd.f32 %v3271_v52, %v3270_v50  ;;  %v3351_v55 = vpop.f32.mrb[51].mxu1  ;;  %3445 = vmatmul.mubr.f32.gmra.mrb[70].mxu0 %v2683_v48 }
 0x3a9   : > { %v3352_v56 = vadd.f32 %v3351_v55, %v3350_v51 }
 0x3aa   : > { %v2684_v57 = vmax.f32 %v2638_v53, 0.0  ;;  %v2498_v58 = vadd.f32 %v3272_v54, %v5277_v34  ;;  %v3273_v63 = vpop.f32.mrb[52].mxu0  ;;  %v5296_v53 = vand.u32 127, %v943_v12  ;;  %v3204_v54 = vld [vmem:[#allocation13] ss:$0 sm:$0xff] }
 0x3ab   : > { %v3353_v0 = vpop.f32.mrb[52].mxu1  ;;  %v3274_v1 = vpop.f32.mrb[53].mxu0 }
 0x3ac   : > { %v2643_v2 = vadd.f32 %v3352_v56, %v2498_v58  ;;  %v3275_v3 = vadd.f32 %v3274_v1, %v3273_v63  ;;  %v3354_v4 = vpop.f32.mrb[53].mxu1  ;;  %3447 = vmatprep.mubr.f32.mxu1 %v2684_v57  ;;  %vm2862_vm0 = vcmp.lt.s32.totalorder %v5296_v53, 10 }
 0x3ad   : > { %v3355_v5 = vadd.f32 %v3354_v4, %v3353_v0 }
 0x3ae   : > { %v2685_v6 = vmax.f32 %v2643_v2, 0.0  ;;  %v2503_v7 = vadd.f32 %v3275_v3, %v5277_v34  ;;  %v3276_v8 = vpop.f32.mrb[54].mxu0 }
 0x3af   : > { %v3356_v9 = vpop.f32.mrb[54].mxu1  ;;  %v3277_v10 = vpop.f32.mrb[55].mxu0 }
 0x3b0   : > { %v2648_v11 = vadd.f32 %v3355_v5, %v2503_v7  ;;  %v3278_v13 = vadd.f32 %v3277_v10, %v3276_v8  ;;  %v3357_v14 = vpop.f32.mrb[55].mxu1  ;;  %3448 = vmatmul.mubr.f32.vlgmr.msra.gmra.mrb[64].mxu1 %v2685_v6 }
 0x3b1   : > { %v3358_v15 = vadd.f32 %v3357_v14, %v3356_v9 }
 0x3b2   : > { %v2686_v16 = vmax.f32 %v2648_v11, 0.0  ;;  %v2508_v17 = vadd.f32 %v3278_v13, %v5277_v34  ;;  %v3279_v18 = vpop.f32.mrb[56].mxu0 }
 0x3b3   : > { %v3359_v19 = vpop.f32.mrb[56].mxu1  ;;  %v3280_v20 = vpop.f32.mrb[57].mxu0 }
 0x3b4   : > { %v2653_v21 = vadd.f32 %v3358_v15, %v2508_v17  ;;  %v3281_v22 = vadd.f32 %v3280_v20, %v3279_v18  ;;  %v3360_v23 = vpop.f32.mrb[57].mxu1  ;;  %3450 = vmatprep.mubr.f32.mxu1 %v2686_v16 }
 0x3b5   : > { %v3361_v24 = vadd.f32 %v3360_v23, %v3359_v19 }
 0x3b6   : > { %v2687_v25 = vmax.f32 %v2653_v21, 0.0  ;;  %v2513_v26 = vadd.f32 %v3281_v22, %v5277_v34  ;;  %v3282_v59 = vpop.f32.mrb[58].mxu0 }
 0x3b7   : > { %v3362_v27 = vpop.f32.mrb[58].mxu1  ;;  %v3283_v60 = vpop.f32.mrb[59].mxu0 }
 0x3b8   : > { %v2658_v61 = vadd.f32 %v3361_v24, %v2513_v26  ;;  %v3284_v28 = vadd.f32 %v3283_v60, %v3282_v59  ;;  %v3363_v62 = vpop.f32.mrb[59].mxu1  ;;  %3451 = vmatmul.mubr.f32.gmra.mrb[66].mxu1 %v2687_v25 }
 0x3b9   : > { %v3364_v29 = vadd.f32 %v3363_v62, %v3362_v27 }
 0x3ba   : > { %v2688_v30 = vmax.f32 %v2658_v61, 0.0  ;;  %v2518_v31 = vadd.f32 %v3284_v28, %v5277_v34  ;;  %v3285_v32 = vpop.f32.mrb[60].mxu0 }
 0x3bb   : > { %v3365_v33 = vpop.f32.mrb[60].mxu1  ;;  %v3286_v35 = vpop.f32.mrb[61].mxu0 }
 0x3bc   : > { %v2663_v36 = vadd.f32 %v3364_v29, %v2518_v31  ;;  %v3287_v37 = vadd.f32 %v3286_v35, %v3285_v32  ;;  %v3366_v38 = vpop.f32.mrb[61].mxu1  ;;  %3453 = vmatprep.mubr.f32.mxu1 %v2688_v30 }
 0x3bd   : > { %v3367_v39 = vadd.f32 %v3366_v38, %v3365_v33 }
 0x3be   : > { %v2689_v40 = vmax.f32 %v2663_v36, 0.0  ;;  %v2523_v41 = vadd.f32 %v3287_v37, %v5277_v34  ;;  %v3288_v42 = vpop.f32.mrb[62].mxu0 }
 0x3bf   : > { %v3368_v43 = vpop.f32.mrb[62].mxu1  ;;  %v3289_v44 = vpop.f32.mrb[63].mxu0 }
 0x3c0   : > { %v2668_v45 = vadd.f32 %v3367_v39, %v2523_v41  ;;  %v3290_v46 = vadd.f32 %v3289_v44, %v3288_v42  ;;  %v3369_v47 = vpop.f32.mrb[63].mxu1  ;;  %3454 = vmatmul.mubr.f32.gmra.mrb[68].mxu1 %v2689_v40 }
 0x3c1   : > { %v3370_v48 = vadd.f32 %v3369_v47, %v3368_v43 }
 0x3c2   : > { %v2690_v49 = vmax.f32 %v2668_v45, 0.0  ;;  %v2528_v50 = vadd.f32 %v3290_v46, %v5277_v34 }
 0x3c4   : > { %v2673_v51 = vadd.f32 %v3370_v48, %v2528_v50  ;;  %3456 = vmatprep.mubr.f32.mxu1 %v2690_v49 }
 0x3c6   : > { %v2691_v52 = vmax.f32 %v2673_v51, 0.0 }
 0x3c8   : > { %3457 = vmatmul.mubr.f32.gmra.mrb[70].mxu1 %v2691_v52 }
 0x463   : > { %v3437_v55 = vpop.f32.mrb[64].mxu0 }
 0x464   : > { %v2787_v56 = vadd.f32 %v3437_v55, %v3204_v54  ;;  %v2781_v57 = vpop.f32.mrb[65].mxu0 }
 0x465   : > { %v2782_v58 = vadd.f32 %v3204_v54, %v2781_v57 }
 0x466   : > { %v2864_v63 = vsel %vm2862_vm0, %v2787_v56, -1e+30 }
 0x467   : > { %2881 = vmax.xlane.f32.xlu0 %v2864_v63  ;;  %v5303_v34 = vsel %vm2862_vm0, %v2782_v58, -1e+30 }
 0x46b   : > { %v3440_v0 = vpop.f32.mrb[66].mxu0  ;;  %2879 = vmax.xlane.f32.xlu0 %v5303_v34 }
 0x46c   : > { %v2797_v12 = vadd.f32 %v3440_v0, %v3204_v54  ;;  %v2791_v1 = vpop.f32.mrb[67].mxu0 }
 0x46d   : > { %v2792_v2 = vadd.f32 %v3204_v54, %v2791_v1 }
 0x46e   : > { %v2866_v3 = vsel %vm2862_vm0, %v2797_v12, -1e+30 }
 0x46f   : > { %2885 = vmax.xlane.f32.xlu1 %v2866_v3  ;;  %v5310_v4 = vsel %vm2862_vm0, %v2792_v2, -1e+30 }
 0x473   : > { %v3443_v5 = vpop.f32.mrb[68].mxu0  ;;  %2883 = vmax.xlane.f32.xlu1 %v5310_v4 }
 0x474   : > { %v2807_v6 = vadd.f32 %v3443_v5, %v3204_v54  ;;  %v2801_v7 = vpop.f32.mrb[69].mxu0 }
 0x475   : > { %v2802_v8 = vadd.f32 %v3204_v54, %v2801_v7 }
 0x476   : > { %v5315_v9 = vsel %vm2862_vm0, %v2807_v6, -1e+30 }
 0x477   : > { %2889 = vmax.xlane.f32.xlu1 %v5315_v9  ;;  %v5320_v10 = vsel %vm2862_vm0, %v2802_v8, -1e+30 }
 0x478   : > { %2887 = vmax.xlane.f32.xlu0 %v5320_v10 }
 0x47b   : > { %v3446_v11 = vpop.f32.mrb[70].mxu0 }
 0x47c   : > { %v2817_v13 = vadd.f32 %v3446_v11, %v3204_v54  ;;  %v2811_v14 = vpop.f32.mrb[71].mxu0 }
 0x47d   : > { %v2812_v15 = vadd.f32 %v3204_v54, %v2811_v14 }
 0x47e   : > { %v5325_v16 = vsel %vm2862_vm0, %v2817_v13, -1e+30 }
 0x47f   : > { %2893 = vmax.xlane.f32.xlu1 %v5325_v16  ;;  %v5330_v17 = vsel %vm2862_vm0, %v2812_v15, -1e+30 }
 0x480   : > { %2891 = vmax.xlane.f32.xlu0 %v5330_v17 }
 0x483   : > { %v3449_v18 = vpop.f32.mrb[64].mxu1 }
 0x484   : > { %v2827_v19 = vadd.f32 %v3449_v18, %v3204_v54  ;;  %v2821_v20 = vpop.f32.mrb[65].mxu1 }
 0x485   : > { %v2822_v21 = vadd.f32 %v3204_v54, %v2821_v20 }
 0x486   : > { %v5335_v22 = vsel %vm2862_vm0, %v2827_v19, -1e+30 }
 0x487   : > { %2897 = vmax.xlane.f32.xlu1 %v5335_v22  ;;  %v5340_v23 = vsel %vm2862_vm0, %v2822_v21, -1e+30 }
 0x488   : > { %2895 = vmax.xlane.f32.xlu0 %v5340_v23 }
 0x48b   : > { %v3452_v24 = vpop.f32.mrb[66].mxu1 }
 0x48c   : > { %v2837_v25 = vadd.f32 %v3452_v24, %v3204_v54  ;;  %v2831_v26 = vpop.f32.mrb[67].mxu1 }
 0x48d   : > { %v2832_v59 = vadd.f32 %v3204_v54, %v2831_v26 }
 0x48e   : > { %v5345_v27 = vsel %vm2862_vm0, %v2837_v25, -1e+30 }
 0x48f   : > { %2901 = vmax.xlane.f32.xlu1 %v5345_v27  ;;  %v5350_v60 = vsel %vm2862_vm0, %v2832_v59, -1e+30 }
 0x490   : > { %2899 = vmax.xlane.f32.xlu0 %v5350_v60 }
 0x493   : > { %v3455_v61 = vpop.f32.mrb[68].mxu1 }
 0x494   : > { %v2847_v28 = vadd.f32 %v3455_v61, %v3204_v54  ;;  %v2841_v62 = vpop.f32.mrb[69].mxu1 }
 0x495   : > { %v2842_v29 = vadd.f32 %v3204_v54, %v2841_v62 }
 0x496   : > { %v5355_v30 = vsel %vm2862_vm0, %v2847_v28, -1e+30 }
 0x497   : > { %2905 = vmax.xlane.f32.xlu1 %v5355_v30  ;;  %v5360_v31 = vsel %vm2862_vm0, %v2842_v29, -1e+30 }
 0x498   : > { %2903 = vmax.xlane.f32.xlu0 %v5360_v31 }
 0x49b   : > { %v3458_v32 = vpop.f32.mrb[70].mxu1 }
 0x49c   : > { %v2857_v33 = vadd.f32 %v3458_v32, %v3204_v54  ;;  %v2851_v35 = vpop.f32.mrb[71].mxu1 }
 0x49d   : > { %v2852_v36 = vadd.f32 %v3204_v54, %v2851_v35 }
 0x49e   : > { %v5365_v37 = vsel %vm2862_vm0, %v2857_v33, -1e+30 }
 0x49f   : > { %2909 = vmax.xlane.f32.xlu1 %v5365_v37  ;;  %v5370_v38 = vsel %vm2862_vm0, %v2852_v36, -1e+30 }
 0x4a0   : > { %2907 = vmax.xlane.f32.xlu0 %v5370_v38 }
 0x4f4   : > { %v2882_v39 = vpop.xlane.xlu0 %2881 }
 0x4f5   : > { %v2912_v40 = vsub.f32 %v2864_v63, %v2882_v39 }
 0x4f7   : > { %v2929_v41 = vmul.f32 1.442695, %v2912_v40 }
 0x4f8   : > { %v2880_v42 = vpop.xlane.xlu0 %2879 }
 0x4f9   : > { %4394 = vpow2.f32 %v2929_v41  ;;  %v2911_v43 = vsub.f32 %v5303_v34, %v2880_v42 }
 0x4fb   : > { %v2927_v44 = vmul.f32 1.442695, %v2911_v43 }
 0x4fc   : > { %v2886_v45 = vpop.xlane.xlu1 %2885 }
 0x4fd   : > { %4396 = vpow2.f32 %v2927_v44  ;;  %v2914_v46 = vsub.f32 %v2866_v3, %v2886_v45 }
 0x4ff   : > { %v2933_v47 = vmul.f32 1.442695, %v2914_v46 }
 0x500   : > { %v2884_v48 = vpop.xlane.xlu1 %2883 }
 0x501   : > { %4398 = vpow2.f32 %v2933_v47  ;;  %v2913_v49 = vsub.f32 %v5310_v4, %v2884_v48 }
 0x503   : > { %v5375_v50 = vpop.eup %4394  ;;  %v2931_v51 = vmul.f32 1.442695, %v2913_v49 }
 0x504   : > { %2961 = vadd.xlane.f32.xlu1 %v5375_v50  ;;  %v2890_v52 = vpop.xlane.xlu1 %2889 }
 0x505   : > { %4400 = vpow2.f32 %v2931_v51  ;;  %v2916_v53 = vsub.f32 %v5315_v9, %v2890_v52  ;;  %v2888_v54 = vpop.xlane.xlu0 %2887 }
 0x506   : > { %v2915_v55 = vsub.f32 %v5320_v10, %v2888_v54 }
 0x507   : > { %v5380_v56 = vpop.eup %4396  ;;  %v2937_v57 = vmul.f32 1.442695, %v2916_v53 }
 0x508   : > { %v2935_v58 = vmul.f32 1.442695, %v2915_v55  ;;  %2959 = vadd.xlane.f32.xlu0 %v5380_v56 }
 0x509   : > { %4402 = vpow2.f32 %v2937_v57 }
 0x50a   : > { %4404 = vpow2.f32 %v2935_v58 }
 0x50b   : > { %v5383_v63 = vpop.eup %4398 }
 0x50c   : > { %2965 = vadd.xlane.f32.xlu1 %v5383_v63  ;;  %v2894_v34 = vpop.xlane.xlu1 %2893 }
 0x50d   : > { %v2918_v0 = vsub.f32 %v5325_v16, %v2894_v34  ;;  %v2892_v12 = vpop.xlane.xlu0 %2891 }
 0x50e   : > { %v2917_v1 = vsub.f32 %v5330_v17, %v2892_v12 }
 0x50f   : > { %v5388_v2 = vpop.eup %4400  ;;  %v2941_v3 = vmul.f32 1.442695, %v2918_v0 }
 0x510   : > { %v2939_v4 = vmul.f32 1.442695, %v2917_v1  ;;  %2963 = vadd.xlane.f32.xlu0 %v5388_v2 }
 0x511   : > { %4406 = vpow2.f32 %v2941_v3 }
 0x512   : > { %4408 = vpow2.f32 %v2939_v4 }
 0x513   : > { %v5391_v5 = vpop.eup %4402 }
 0x514   : > { %v5393_v6 = vpop.eup %4404  ;;  %2969 = vadd.xlane.f32.xlu1 %v5391_v5  ;;  %v2898_v7 = vpop.xlane.xlu1 %2897 }
 0x515   : > { %v2920_v8 = vsub.f32 %v5335_v22, %v2898_v7  ;;  %2967 = vadd.xlane.f32.xlu0 %v5393_v6  ;;  %v2896_v9 = vpop.xlane.xlu0 %2895 }
 0x516   : > { %v2919_v10 = vsub.f32 %v5340_v23, %v2896_v9 }
 0x517   : > { %v2945_v11 = vmul.f32 1.442695, %v2920_v8 }
 0x518   : > { %v2943_v13 = vmul.f32 1.442695, %v2919_v10 }
 0x519   : > { %4410 = vpow2.f32 %v2945_v11 }
 0x51a   : > { %4412 = vpow2.f32 %v2943_v13 }
 0x51b   : > { %v5399_v14 = vpop.eup %4406 }
 0x51c   : > { %v5401_v15 = vpop.eup %4408  ;;  %2973 = vadd.xlane.f32.xlu1 %v5399_v14  ;;  %v2902_v16 = vpop.xlane.xlu1 %2901 }
 0x51d   : > { %v2922_v17 = vsub.f32 %v5345_v27, %v2902_v16  ;;  %2971 = vadd.xlane.f32.xlu0 %v5401_v15  ;;  %v2900_v18 = vpop.xlane.xlu0 %2899 }
 0x51e   : > { %v2921_v19 = vsub.f32 %v5350_v60, %v2900_v18 }
 0x51f   : > { %v2949_v20 = vmul.f32 1.442695, %v2922_v17 }
 0x520   : > { %v2947_v21 = vmul.f32 1.442695, %v2921_v19 }
 0x521   : > { %4414 = vpow2.f32 %v2949_v20 }
 0x522   : > { %4416 = vpow2.f32 %v2947_v21 }
 0x523   : > { %v5407_v22 = vpop.eup %4410 }
 0x524   : > { %v5409_v23 = vpop.eup %4412  ;;  %2977 = vadd.xlane.f32.xlu1 %v5407_v22  ;;  %v2906_v24 = vpop.xlane.xlu1 %2905 }
 0x525   : > { %v2924_v25 = vsub.f32 %v5355_v30, %v2906_v24  ;;  %2975 = vadd.xlane.f32.xlu0 %v5409_v23  ;;  %v2904_v26 = vpop.xlane.xlu0 %2903 }
 0x526   : > { %v2923_v59 = vsub.f32 %v5360_v31, %v2904_v26 }
 0x527   : > { %v2953_v27 = vmul.f32 1.442695, %v2924_v25 }
 0x528   : > { %v2951_v60 = vmul.f32 1.442695, %v2923_v59 }
 0x529   : > { %4418 = vpow2.f32 %v2953_v27 }
 0x52a   : > { %4420 = vpow2.f32 %v2951_v60 }
 0x52b   : > { %v5415_v61 = vpop.eup %4414 }
 0x52c   : > { %v5417_v28 = vpop.eup %4416  ;;  %2981 = vadd.xlane.f32.xlu1 %v5415_v61  ;;  %v2910_v62 = vpop.xlane.xlu1 %2909 }
 0x52d   : > { %v2926_v29 = vsub.f32 %v5365_v37, %v2910_v62  ;;  %2979 = vadd.xlane.f32.xlu0 %v5417_v28  ;;  %v2908_v30 = vpop.xlane.xlu0 %2907 }
 0x52e   : > { %v2925_v32 = vsub.f32 %v5370_v38, %v2908_v30 }
 0x52f   : > { %v2957_v33 = vmul.f32 1.442695, %v2926_v29 }
 0x530   : > { %v2955_v31 = vmul.f32 1.442695, %v2925_v32 }
 0x531   : > { %4422 = vpow2.f32 %v2957_v33 }
 0x532   : > { %4424 = vpow2.f32 %v2955_v31 }
 0x533   : > { %v5423_v35 = vpop.eup %4418 }
 0x534   : > { %v5425_v36 = vpop.eup %4420  ;;  %2985 = vadd.xlane.f32.xlu1 %v5423_v35 }
 0x535   : > { %2983 = vadd.xlane.f32.xlu0 %v5425_v36 }
 0x53b   : > { %v5429_v39 = vpop.eup %4422 }
 0x53c   : > { %v5431_v37 = vpop.eup %4424  ;;  %2989 = vadd.xlane.f32.xlu1 %v5429_v39 }
 0x53d   : > { %2987 = vadd.xlane.f32.xlu0 %v5431_v37 }
 0x591   : > { %v2962_v38 = vpop.xlane.xlu1 %2961 }
 0x592   : > { %4426 = vrcp.f32 %v2962_v38 }
 0x595   : > { %v2960_v40 = vpop.xlane.xlu0 %2959 }
 0x596   : > { %4428 = vrcp.f32 %v2960_v40 }
 0x599   : > { %v2966_v41 = vpop.xlane.xlu1 %2965 }
 0x59a   : > { %4430 = vrcp.f32 %v2966_v41 }
 0x59c   : > { %v4427_v42 = vpop.eup %4426 }
 0x59d   : > { %v3008_v43 = vmul.f32 %v4427_v42, %v5375_v50  ;;  %v2964_v44 = vpop.xlane.xlu0 %2963 }
 0x59e   : > { %4432 = vrcp.f32 %v2964_v44 }
 0x59f   : > { %3024 = vst [vmem:[%s5437_s23 + $0x8] sm:$0xff] %v3008_v43 }
 0x5a0   : > { %v4429_v45 = vpop.eup %4428 }
 0x5a1   : > { %v3007_v46 = vmul.f32 %v4429_v45, %v5380_v56  ;;  %v2970_v47 = vpop.xlane.xlu1 %2969 }
 0x5a2   : > { %4434 = vrcp.f32 %v2970_v47  ;;  %v2968_v48 = vpop.xlane.xlu0 %2967 }
 0x5a3   : > { %3023 = vst [vmem:[%s5437_s23] sm:$0xff] %v3007_v46  ;;  %4436 = vrcp.f32 %v2968_v48 }
 0x5a4   : > { %v4431_v49 = vpop.eup %4430 }
 0x5a5   : > { %v3010_v50 = vmul.f32 %v4431_v49, %v5383_v63 }
 0x5a7   : > { %3026 = vst [vmem:[%s5437_s23 + $0x18] sm:$0xff] %v3010_v50 }
 0x5a8   : > { %v4433_v51 = vpop.eup %4432 }
 0x5a9   : > { %v3009_v52 = vmul.f32 %v4433_v51, %v5388_v2  ;;  %v2974_v53 = vpop.xlane.xlu1 %2973 }
 0x5aa   : > { %4438 = vrcp.f32 %v2974_v53  ;;  %v2972_v54 = vpop.xlane.xlu0 %2971 }
 0x5ab   : > { %3025 = vst [vmem:[%s5437_s23 + $0x10] sm:$0xff] %v3009_v52  ;;  %4440 = vrcp.f32 %v2972_v54 }
 0x5ac   : > { %v4435_v55 = vpop.eup %4434 }
 0x5ad   : > { %v4437_v56 = vpop.eup %4436  ;;  %v3012_v57 = vmul.f32 %v4435_v55, %v5391_v5 }
 0x5ae   : > { %v3011_v58 = vmul.f32 %v4437_v56, %v5393_v6 }
 0x5af   : > { %3028 = vst [vmem:[%s5437_s23 + $0x28] sm:$0xff] %v3012_v57 }
 0x5b0   : > { %3027 = vst [vmem:[%s5437_s23 + $0x20] sm:$0xff] %v3011_v58 }
 0x5b1   : > { %v2978_v63 = vpop.xlane.xlu1 %2977 }
 0x5b2   : > { %4442 = vrcp.f32 %v2978_v63  ;;  %v2976_v34 = vpop.xlane.xlu0 %2975 }
 0x5b3   : > { %4444 = vrcp.f32 %v2976_v34 }
 0x5b4   : > { %v4439_v0 = vpop.eup %4438 }
 0x5b5   : > { %v4441_v12 = vpop.eup %4440  ;;  %v3014_v1 = vmul.f32 %v4439_v0, %v5399_v14 }
 0x5b6   : > { %v3013_v2 = vmul.f32 %v4441_v12, %v5401_v15 }
 0x5b7   : > { %3030 = vst [vmem:[%s5437_s23 + $0x38] sm:$0xff] %v3014_v1 }
 0x5b8   : > { %3029 = vst [vmem:[%s5437_s23 + $0x30] sm:$0xff] %v3013_v2 }
 0x5b9   : > { %v2982_v3 = vpop.xlane.xlu1 %2981 }
 0x5ba   : > { %4446 = vrcp.f32 %v2982_v3  ;;  %v2980_v4 = vpop.xlane.xlu0 %2979 }
 0x5bb   : > { %4448 = vrcp.f32 %v2980_v4 }
 0x5bc   : > { %v4443_v5 = vpop.eup %4442 }
 0x5bd   : > { %v4445_v6 = vpop.eup %4444  ;;  %v3016_v7 = vmul.f32 %v4443_v5, %v5407_v22 }
 0x5be   : > { %v3015_v8 = vmul.f32 %v4445_v6, %v5409_v23 }
 0x5bf   : > { %3032 = vst [vmem:[%s5437_s23 + $0x48] sm:$0xff] %v3016_v7 }
 0x5c0   : > { %3031 = vst [vmem:[%s5437_s23 + $0x40] sm:$0xff] %v3015_v8 }
 0x5c1   : > { %v2986_v9 = vpop.xlane.xlu1 %2985 }
 0x5c2   : > { %4450 = vrcp.f32 %v2986_v9  ;;  %v2984_v10 = vpop.xlane.xlu0 %2983 }
 0x5c3   : > { %4452 = vrcp.f32 %v2984_v10 }
 0x5c4   : > { %v4447_v11 = vpop.eup %4446 }
 0x5c5   : > { %v4449_v13 = vpop.eup %4448  ;;  %v3018_v14 = vmul.f32 %v4447_v11, %v5415_v61 }
 0x5c6   : > { %v3017_v15 = vmul.f32 %v4449_v13, %v5417_v28 }
 0x5c7   : > { %3034 = vst [vmem:[%s5437_s23 + $0x58] sm:$0xff] %v3018_v14 }
 0x5c8   : > { %3033 = vst [vmem:[%s5437_s23 + $0x50] sm:$0xff] %v3017_v15 }
 0x5c9   : > { %v2990_v16 = vpop.xlane.xlu1 %2989 }
 0x5ca   : > { %4454 = vrcp.f32 %v2990_v16  ;;  %v2988_v17 = vpop.xlane.xlu0 %2987 }
 0x5cb   : > { %4456 = vrcp.f32 %v2988_v17 }
 0x5cc   : > { %v4451_v18 = vpop.eup %4450 }
 0x5cd   : > { %v4453_v19 = vpop.eup %4452  ;;  %v3020_v20 = vmul.f32 %v4451_v18, %v5423_v35 }
 0x5ce   : > { %v3019_v21 = vmul.f32 %v4453_v19, %v5425_v36 }
 0x5cf   : > { %3036 = vst [vmem:[%s5437_s23 + $0x68] sm:$0xff] %v3020_v20 }
 0x5d0   : > { %3035 = vst [vmem:[%s5437_s23 + $0x60] sm:$0xff] %v3019_v21 }
 0x5d4   : > { %v4455_v22 = vpop.eup %4454 }
 0x5d5   : > { %v4457_v23 = vpop.eup %4456  ;;  %v3022_v24 = vmul.f32 %v4455_v22, %v5429_v39 }
 0x5d6   : > { %v3021_v25 = vmul.f32 %v4457_v23, %v5431_v37 }
 0x5d7   : > { %3038 = vst [vmem:[%s5437_s23 + $0x78] sm:$0xff] %v3022_v24 }
 0x5d8   : > { %3037 = vst [vmem:[%s5437_s23 + $0x70] sm:$0xff] %v3021_v25 }
 0x5d9   : > { %4669 = shalt.err (!%p4666_p8)
}
 0x5da   : > { %s4670_s17 = scalar_lea.hbm %s5472_s12, 2048  ;;  %s4674_s8 = scalar_lea.hbm %s5528_s7, 4096 }
 0x5db   : > { %p4671_p7 = scmp.ne.s32.totalorder %s5472_s12, %s4670_s17  ;;  %p4675_p3 = scmp.lt.u32.totalorder %s5472_s12, %s5528_s7 }
 0x5dc   : > { %p4676_p6 = scmp.lt.u32.totalorder %s4674_s8, %s4670_s17  ;;  %p4678_p0 = scmp.lt.u32.totalorder %s4670_s17, %s5472_s12 }
 0x5dd   : > { %p4672_p9 = pnand %p4671_p7, %p5549_p5 }
 0x5de   : > { %p4677_p2 = por %p4676_p6, %p4675_p3 }
 0x5df   : > { %p4673_p4 = pneg %p4672_p9 }
 0x5e0   : > { %p4679_p10 = por %p4678_p0, %p4677_p2 }
 0x5e2   : > { %p4680_p1 = pnand %p4679_p10, %p4673_p4 }
 0x5e4   : > { %4683 = shalt.err (!%p4680_p1)
}
 0x5e5   : > { %s4751_s9 = smov 128   ;;  %s4752_s19 = smov 8  }
 0x5e6   : > { %4304 = dma.vmem_to_hbm [thread:$0]  (%p5549_p5), %s5474_s18, 2048, %s5472_s12, %s3040_s30, %s4751_s9, %s4751_s9, %s4752_s19  }
 0x5e7 PF: > { %s3068_s20 = sand.u32 1, %s4722_s24   ;;  %p5550_p11 = scmp.ne.s32.totalorder %s5540_s28, 0 }
 0x5e8   : > { %p5551_p12 = scmp.ge.s32.totalorder %s4734_s27, 2  ;;  %s3069_s1 = scalar_lea.sflag [#allocation4], %s3068_s20 }
 0x5ea   : > { %p4330_p13 = pnand %p5551_p12, %p5550_p11 }
 0x5ec   : > { %4717 = dma.done.wait (!%p4330_p13), %s3069_s1, 2048  }
 0x5ed   : > { %4719 = vsyncadd (!%p4330_p13), %s3069_s1, 4294965248  ;;  %p23_p8 = scmp.ge.s32.totalorder %s4965_s11, 4   ;;  %s5552_s24 = smov %s4726_s25 }
 0x5ee   : > { %s5553_s25 = smov %s4730_s26  ;;  %s5554_s26 = smov %s4976_s13 }
 0x5ef   : > { %s5555_s27 = smov %s4965_s11  ;;  %25 = sbr.rel (!%p23_p8) target bundleno = 10 (0xa), region = 117 }
 0x5f6   :  { %3074 = vsyncpa [#allocation3], 1 }
 0x5f7   :  { %3076 = vsyncpa [#allocation3 + $0x1], 1 }
 0x5f8   :  { %3077 = vsyncpa [#allocation6], 1 }
 0x5f9   :  { %3078 = vsyncpa [#allocation9], 1 }
 0x5fa   :  { %3079 = vsyncpa [#allocation12], 1 }
 0x5fb   :  { %3080 = vsyncpa [#allocation4], 1 }
 0x5fc   :  { %3082 = vsyncpa [#allocation4 + $0x1], 1 }

</bundles_post_ra>
